<compile_context>
chip_gen: v7x
topology: tpu7x:2x2x1
jax: 0.10.0
libtpu: 0.0.40
codegen_flags: <defaults>
</compile_context>

<pallas_src>
import functools

import jax
import jax.numpy as jnp
from jax import lax
from jax.experimental import pallas as pl
from jax.experimental.pallas import tpu as pltpu


def _conv3dc_kernel(wA_ref, wB_ref, wC_ref, b_ref, xr_ref, xi_ref,
                    yr_ref, yi_ref, *, k0, k1, tt, ow, w_stride, single_step):
    """One time-tile of the single-channel complex 3-D conv.

    Layout (per real/imag part):
      xr_ref/xi_ref : (Tp, IWp) VMEM, resident across the grid.
                      rows  = padded time (sublane axis)
                      lanes = flattened padded (D0, D1) plane, row stride W
      yr_ref/yi_ref : (tt, ow) VMEM output tile, ow = D0*W (lane-dense; 2*p0
                      dead columns per D0 row, stripped in the wrapper).
    Taps:
      kk (time) -> re-addressed row window load from the resident ref
      ki, kj    -> one static lane shift of ki*W + kj
    """
    if single_step:
        row0 = 0
    else:
        row0 = pl.multiple_of(pl.program_id(0) * tt, 8)

    accA = jnp.zeros((tt, ow), jnp.float32)   # sum wR * xR
    accB = jnp.zeros((tt, ow), jnp.float32)   # sum wI * xI
    accC = jnp.zeros((tt, ow), jnp.float32)   # sum (wR+wI) * (xR+xI)

    # Unrolled cross-correlation (PyTorch Conv3d does NOT flip the kernel).
    for kk in range(k1):
        # Only the live (tt, IWp) window is pulled into registers.
        xr_k = xr_ref[pl.ds(row0 + kk, tt), :]
        xi_k = xi_ref[pl.ds(row0 + kk, tt), :]
        for ki in range(k0):
            for kj in range(k0):
                s = ki * w_stride + kj
                idx = (ki * k0 + kj) * k1 + kk
                xr_s = lax.slice_in_dim(xr_k, s, s + ow, axis=1)
                xi_s = lax.slice_in_dim(xi_k, s, s + ow, axis=1)
                accA = accA + wA_ref[idx] * xr_s
                accB = accB + wB_ref[idx] * xi_s
                accC = accC + wC_ref[idx] * (xr_s + xi_s)

    # TODO(synk): for very wide lane widths the (ki, kj) taps could be recast
    # as a banded matmul on the MXU instead of VPU MACs + lane shifts.
    yr_ref[...] = accA - accB + b_ref[0]            # + (bR - bI)
    yi_ref[...] = accC - accA - accB + b_ref[1]     # + (bR + bI)


def _pick_time_tile(nh):
    """One grid step for small problems; >=2 steps with tt % 8 == 0 otherwise."""
    if nh % 8 != 0:
        return nh
    for tt in (32, 16, 8):
        if nh % tt == 0 and nh // tt >= 2:
            return tt
    return nh


def conv3dc_forward(x, wR, wI, bR, bI, kernel):
    """JAX/Pallas equivalent of Conv3dC.forward.

    x      : (D0, D1, T) float32, T even; last axis = [real | imag].
    wR, wI : (1, 1, k0, k0, k1) conv weights (convR / convI).
    bR, bI : (1,) conv biases.
    """
    k0, k1 = kernel
    # TODO(synk): even kernel sizes change the torch output shape (pad=(k-1)//2
    # is only SAME for odd k); only odd kernels are supported here.
    assert k0 % 2 == 1 and k1 % 2 == 1, "only odd kernel sizes supported"
    D0, D1, T = x.shape
    assert T % 2 == 0, "last axis must pack [real | imag]"
    nh = T // 2
    p0 = (k0 - 1) // 2
    p1 = (k1 - 1) // 2

    W = D1 + 2 * p0                 # padded D1 row width (flat row stride)
    Rp = D0 + 2 * p0 + 1            # padded D0 rows (+1 spare row so every
                                    # lane window [s, s+OW) stays in bounds)
    IWp = Rp * W                    # input flat lane width
    OW = D0 * W                     # output flat lane width (2*p0 dead cols/row)
    Tp = nh + 2 * p1                # padded time rows

    tt = _pick_time_tile(nh)
    gt = nh // tt

    orig_dtype = x.dtype
    xf32 = x.astype(jnp.float32)

    # --- single producer chain: split re/im + relayout + pad + flatten ------
    # (D0, D1, T) -> (2, nh, D0, D1) -> pad -> (2, Tp, Rp, W) -> (2, Tp, IWp)
    xc = xf32.reshape(D0, D1, 2, nh)
    xt = jnp.transpose(xc, (2, 3, 0, 1))
    xp = jnp.pad(xt, ((0, 0), (p1, p1), (p0, p0 + 1), (p0, p0)))
    xflat = xp.reshape(2, Tp, IWp)
    xR_f, xI_f = xflat[0], xflat[1]
    # TODO(synk): this relayout is still 1-2 XLA passes over the input; it
    # could be folded into the kernel input path (pl.ANY + in-kernel relayout)
    # if those passes ever dominate end-to-end time.

    wA = wR.reshape(-1).astype(jnp.float32)        # wR flat
    wB = wI.reshape(-1).astype(jnp.float32)        # wI flat
    wC = wA + wB                                   # (wR + wI) flat
    b = jnp.concatenate([bR - bI, bR + bI]).astype(jnp.float32)   # (2,)

    kern = functools.partial(_conv3dc_kernel, k0=k0, k1=k1, tt=tt, ow=OW,
                             w_stride=W, single_step=(gt == 1))

    smem = pl.BlockSpec(memory_space=pltpu.MemorySpace.SMEM)

    # VMEM budget: resident inputs + double-buffered output tiles (f32).
    vmem_need = 2 * Tp * IWp * 4 + 2 * 2 * tt * OW * 4
    if vmem_need > 44 * 1024 * 1024:
        # TODO(synk): block D0 with a manual halo DMA (pl.ANY + make_async_copy)
        # for problems that do not fit VMEM as a single resident block.
        raise ValueError("input too large for the single-resident-block "
                         f"Conv3dC kernel ({vmem_need} bytes of VMEM needed)")
    vmem_limit = max(32 * 1024 * 1024, vmem_need + (8 << 20))

    yR_f, yI_f = pl.pallas_call(
        kern,
        out_shape=(jax.ShapeDtypeStruct((nh, OW), jnp.float32),
                   jax.ShapeDtypeStruct((nh, OW), jnp.float32)),
        grid_spec=pltpu.PrefetchScalarGridSpec(
            num_scalar_prefetch=0,
            grid=(gt,),
            in_specs=[
                smem,                                          # wR flat
                smem,                                          # wI flat
                smem,                                          # wR+wI flat
                smem,                                          # biases
                pl.BlockSpec((Tp, IWp), lambda t: (0, 0)),     # xR (resident)
                pl.BlockSpec((Tp, IWp), lambda t: (0, 0)),     # xI (resident)
            ],
            out_specs=[
                pl.BlockSpec((tt, OW), lambda t: (t, 0)),      # yR time tile
                pl.BlockSpec((tt, OW), lambda t: (t, 0)),      # yI time tile
            ]),
        compiler_params=pltpu.CompilerParams(
            dimension_semantics=("parallel",),
            vmem_limit_bytes=vmem_limit),
    )(wA, wB, wC, b, xR_f, xI_f)

    # --- single consumer chain: unflatten + drop dead cols + final layout ---
    ys = jnp.stack([yR_f, yI_f], axis=0).reshape(2, nh, D0, W)[:, :, :, :D1]
    out = jnp.transpose(ys, (2, 3, 0, 1)).reshape(D0, D1, 2 * nh)
    return out.astype(orig_dtype)


def _reference_forward(x, wR, wI, bR, bI, kernel):
    """Pure-JAX reference matching torch.nn.Conv3d semantics."""
    k0, k1 = kernel
    D0, D1, T = x.shape
    nh = T // 2
    p0 = (k0 - 1) // 2
    p1 = (k1 - 1) // 2

    def conv(v, w, bias):
        out = lax.conv_general_dilated(
            v[None, None], w, (1, 1, 1),
            [(p0, p0), (p0, p0), (p1, p1)],
            dimension_numbers=("NCDHW", "OIDHW", "NCDHW"))
        return out[0, 0] + bias[0]

    xR, xI = x[..., :nh], x[..., nh:]
    yR = conv(xR, wR, bR) - conv(xI, wI, bI)
    yI = conv(xI, wR, bR) + conv(xR, wI, bI)
    return jnp.concatenate([yR, yI], axis=-1)


if __name__ == "__main__":
    kernel = (3, 3)          # -> Conv3d kernel (3, 3, 3), padding (1, 1, 1)
    D0, D1, T = 16, 16, 8    # small synthetic shapes; T even (real|imag)

    key = jax.random.PRNGKey(0)
    kx, kwr, kwi, kbr, kbi = jax.random.split(key, 5)

    x = jax.random.normal(kx, (D0, D1, T), dtype=jnp.float32)
    wR = jax.random.normal(kwr, (1, 1, kernel[0], kernel[0], kernel[1]),
                           dtype=jnp.float32) * 0.1
    wI = jax.random.normal(kwi, (1, 1, kernel[0], kernel[0], kernel[1]),
                           dtype=jnp.float32) * 0.1
    bR = jax.random.normal(kbr, (1,), dtype=jnp.float32) * 0.1
    bI = jax.random.normal(kbi, (1,), dtype=jnp.float32) * 0.1

    out = conv3dc_forward(x, wR, wI, bR, bI, kernel)
    out = jax.block_until_ready(out)

    ref = _reference_forward(x, wR, wI, bR, bI, kernel)
    assert out.shape == (D0, D1, T), out.shape
    assert jnp.allclose(out, ref, atol=1e-4, rtol=1e-4), \
        float(jnp.max(jnp.abs(out - ref)))

    print("KERNEL_OK")
</pallas_src>

<mosaic_0001>
module attributes {stable_mosaic.version = 11 : i64} {
  func.func @_conv3dc_kernel(%arg0: i32, %arg1: memref<27xf32, #tpu.memory_space<smem>>, %arg2: memref<27xf32, #tpu.memory_space<smem>>, %arg3: memref<27xf32, #tpu.memory_space<smem>>, %arg4: memref<2xf32, #tpu.memory_space<smem>>, %arg5: memref<6x342xf32, #tpu.memory_space<vmem>>, %arg6: memref<6x342xf32, #tpu.memory_space<vmem>>, %arg7: memref<4x288xf32, #tpu.memory_space<vmem>>, %arg8: memref<4x288xf32, #tpu.memory_space<vmem>>) attributes {dimension_semantics = [#tpu.dimension_semantics<parallel>], iteration_bounds = array<i64: 1>, scalar_prefetch = 0 : i64, scratch_operands = 0 : i64, tpu.core_type = #tpu.core_type<tc>, window_params = [{transform_indices = @transform_0, window_bounds = array<i64: 27>}, {transform_indices = @transform_1, window_bounds = array<i64: 27>}, {transform_indices = @transform_2, window_bounds = array<i64: 27>}, {transform_indices = @transform_3, window_bounds = array<i64: 2>}, {pipeline_mode = #tpu.pipeline_mode<synchronous>, transform_indices = @transform_4, window_bounds = array<i64: 6, 342>}, {pipeline_mode = #tpu.pipeline_mode<synchronous>, transform_indices = @transform_5, window_bounds = array<i64: 6, 342>}, {transform_indices = @transform_6, window_bounds = array<i64: 4, 288>}, {transform_indices = @transform_7, window_bounds = array<i64: 4, 288>}]} {
    %cst = arith.constant 0.000000e+00 : f32
    %0 = vector.broadcast %cst : f32 to vector<4x288xf32>
    %cst_0 = arith.constant 0.000000e+00 : f32
    %1 = vector.broadcast %cst_0 : f32 to vector<4x288xf32>
    %cst_1 = arith.constant 0.000000e+00 : f32
    %2 = vector.broadcast %cst_1 : f32 to vector<4x288xf32>
    %c0 = arith.constant 0 : index
    %c0_2 = arith.constant 0 : index
    %3 = vector.load %arg5[%c0, %c0_2] : memref<6x342xf32, #tpu.memory_space<vmem>>, vector<4x342xf32>
    %c0_3 = arith.constant 0 : index
    %c0_4 = arith.constant 0 : index
    %4 = vector.load %arg6[%c0_3, %c0_4] : memref<6x342xf32, #tpu.memory_space<vmem>>, vector<4x342xf32>
    %5 = vector.extract_strided_slice %3 {offsets = [0, 0], sizes = [4, 288], strides = [1, 1]} : vector<4x342xf32> to vector<4x288xf32>
    %6 = vector.extract_strided_slice %4 {offsets = [0, 0], sizes = [4, 288], strides = [1, 1]} : vector<4x342xf32> to vector<4x288xf32>
    %c0_5 = arith.constant 0 : index
    %7 = memref.load %arg1[%c0_5] : memref<27xf32, #tpu.memory_space<smem>>
    %8 = vector.broadcast %7 : f32 to vector<4x288xf32>
    %9 = arith.mulf %8, %5 : vector<4x288xf32>
    %10 = arith.addf %0, %9 : vector<4x288xf32>
    %c0_6 = arith.constant 0 : index
    %11 = memref.load %arg2[%c0_6] : memref<27xf32, #tpu.memory_space<smem>>
    %12 = vector.broadcast %11 : f32 to vector<4x288xf32>
    %13 = arith.mulf %12, %6 : vector<4x288xf32>
    %14 = arith.addf %1, %13 : vector<4x288xf32>
    %c0_7 = arith.constant 0 : index
    %15 = memref.load %arg3[%c0_7] : memref<27xf32, #tpu.memory_space<smem>>
    %16 = arith.addf %5, %6 : vector<4x288xf32>
    %17 = vector.broadcast %15 : f32 to vector<4x288xf32>
    %18 = arith.mulf %17, %16 : vector<4x288xf32>
    %19 = arith.addf %2, %18 : vector<4x288xf32>
    %20 = vector.extract_strided_slice %3 {offsets = [0, 1], sizes = [4, 288], strides = [1, 1]} : vector<4x342xf32> to vector<4x288xf32>
    %21 = vector.extract_strided_slice %4 {offsets = [0, 1], sizes = [4, 288], strides = [1, 1]} : vector<4x342xf32> to vector<4x288xf32>
    %c3 = arith.constant 3 : index
    %22 = memref.load %arg1[%c3] : memref<27xf32, #tpu.memory_space<smem>>
    %23 = vector.broadcast %22 : f32 to vector<4x288xf32>
    %24 = arith.mulf %23, %20 : vector<4x288xf32>
    %25 = arith.addf %10, %24 : vector<4x288xf32>
    %c3_8 = arith.constant 3 : index
    %26 = memref.load %arg2[%c3_8] : memref<27xf32, #tpu.memory_space<smem>>
    %27 = vector.broadcast %26 : f32 to vector<4x288xf32>
    %28 = arith.mulf %27, %21 : vector<4x288xf32>
    %29 = arith.addf %14, %28 : vector<4x288xf32>
    %c3_9 = arith.constant 3 : index
    %30 = memref.load %arg3[%c3_9] : memref<27xf32, #tpu.memory_space<smem>>
    %31 = arith.addf %20, %21 : vector<4x288xf32>
    %32 = vector.broadcast %30 : f32 to vector<4x288xf32>
    %33 = arith.mulf %32, %31 : vector<4x288xf32>
    %34 = arith.addf %19, %33 : vector<4x288xf32>
    %35 = vector.extract_strided_slice %3 {offsets = [0, 2], sizes = [4, 288], strides = [1, 1]} : vector<4x342xf32> to vector<4x288xf32>
    %36 = vector.extract_strided_slice %4 {offsets = [0, 2], sizes = [4, 288], strides = [1, 1]} : vector<4x342xf32> to vector<4x288xf32>
    %c6 = arith.constant 6 : index
    %37 = memref.load %arg1[%c6] : memref<27xf32, #tpu.memory_space<smem>>
    %38 = vector.broadcast %37 : f32 to vector<4x288xf32>
    %39 = arith.mulf %38, %35 : vector<4x288xf32>
    %40 = arith.addf %25, %39 : vector<4x288xf32>
    %c6_10 = arith.constant 6 : index
    %41 = memref.load %arg2[%c6_10] : memref<27xf32, #tpu.memory_space<smem>>
    %42 = vector.broadcast %41 : f32 to vector<4x288xf32>
    %43 = arith.mulf %42, %36 : vector<4x288xf32>
    %44 = arith.addf %29, %43 : vector<4x288xf32>
    %c6_11 = arith.constant 6 : index
    %45 = memref.load %arg3[%c6_11] : memref<27xf32, #tpu.memory_space<smem>>
    %46 = arith.addf %35, %36 : vector<4x288xf32>
    %47 = vector.broadcast %45 : f32 to vector<4x288xf32>
    %48 = arith.mulf %47, %46 : vector<4x288xf32>
    %49 = arith.addf %34, %48 : vector<4x288xf32>
    %50 = vector.extract_strided_slice %3 {offsets = [0, 18], sizes = [4, 288], strides = [1, 1]} : vector<4x342xf32> to vector<4x288xf32>
    %51 = vector.extract_strided_slice %4 {offsets = [0, 18], sizes = [4, 288], strides = [1, 1]} : vector<4x342xf32> to vector<4x288xf32>
    %c9 = arith.constant 9 : index
    %52 = memref.load %arg1[%c9] : memref<27xf32, #tpu.memory_space<smem>>
    %53 = vector.broadcast %52 : f32 to vector<4x288xf32>
    %54 = arith.mulf %53, %50 : vector<4x288xf32>
    %55 = arith.addf %40, %54 : vector<4x288xf32>
    %c9_12 = arith.constant 9 : index
    %56 = memref.load %arg2[%c9_12] : memref<27xf32, #tpu.memory_space<smem>>
    %57 = vector.broadcast %56 : f32 to vector<4x288xf32>
    %58 = arith.mulf %57, %51 : vector<4x288xf32>
    %59 = arith.addf %44, %58 : vector<4x288xf32>
    %c9_13 = arith.constant 9 : index
    %60 = memref.load %arg3[%c9_13] : memref<27xf32, #tpu.memory_space<smem>>
    %61 = arith.addf %50, %51 : vector<4x288xf32>
    %62 = vector.broadcast %60 : f32 to vector<4x288xf32>
    %63 = arith.mulf %62, %61 : vector<4x288xf32>
    %64 = arith.addf %49, %63 : vector<4x288xf32>
    %65 = vector.extract_strided_slice %3 {offsets = [0, 19], sizes = [4, 288], strides = [1, 1]} : vector<4x342xf32> to vector<4x288xf32>
    %66 = vector.extract_strided_slice %4 {offsets = [0, 19], sizes = [4, 288], strides = [1, 1]} : vector<4x342xf32> to vector<4x288xf32>
    %c12 = arith.constant 12 : index
    %67 = memref.load %arg1[%c12] : memref<27xf32, #tpu.memory_space<smem>>
    %68 = vector.broadcast %67 : f32 to vector<4x288xf32>
    %69 = arith.mulf %68, %65 : vector<4x288xf32>
    %70 = arith.addf %55, %69 : vector<4x288xf32>
    %c12_14 = arith.constant 12 : index
    %71 = memref.load %arg2[%c12_14] : memref<27xf32, #tpu.memory_space<smem>>
    %72 = vector.broadcast %71 : f32 to vector<4x288xf32>
    %73 = arith.mulf %72, %66 : vector<4x288xf32>
    %74 = arith.addf %59, %73 : vector<4x288xf32>
    %c12_15 = arith.constant 12 : index
    %75 = memref.load %arg3[%c12_15] : memref<27xf32, #tpu.memory_space<smem>>
    %76 = arith.addf %65, %66 : vector<4x288xf32>
    %77 = vector.broadcast %75 : f32 to vector<4x288xf32>
    %78 = arith.mulf %77, %76 : vector<4x288xf32>
    %79 = arith.addf %64, %78 : vector<4x288xf32>
    %80 = vector.extract_strided_slice %3 {offsets = [0, 20], sizes = [4, 288], strides = [1, 1]} : vector<4x342xf32> to vector<4x288xf32>
    %81 = vector.extract_strided_slice %4 {offsets = [0, 20], sizes = [4, 288], strides = [1, 1]} : vector<4x342xf32> to vector<4x288xf32>
    %c15 = arith.constant 15 : index
    %82 = memref.load %arg1[%c15] : memref<27xf32, #tpu.memory_space<smem>>
    %83 = vector.broadcast %82 : f32 to vector<4x288xf32>
    %84 = arith.mulf %83, %80 : vector<4x288xf32>
    %85 = arith.addf %70, %84 : vector<4x288xf32>
    %c15_16 = arith.constant 15 : index
    %86 = memref.load %arg2[%c15_16] : memref<27xf32, #tpu.memory_space<smem>>
    %87 = vector.broadcast %86 : f32 to vector<4x288xf32>
    %88 = arith.mulf %87, %81 : vector<4x288xf32>
    %89 = arith.addf %74, %88 : vector<4x288xf32>
    %c15_17 = arith.constant 15 : index
    %90 = memref.load %arg3[%c15_17] : memref<27xf32, #tpu.memory_space<smem>>
    %91 = arith.addf %80, %81 : vector<4x288xf32>
    %92 = vector.broadcast %90 : f32 to vector<4x288xf32>
    %93 = arith.mulf %92, %91 : vector<4x288xf32>
    %94 = arith.addf %79, %93 : vector<4x288xf32>
    %95 = vector.extract_strided_slice %3 {offsets = [0, 36], sizes = [4, 288], strides = [1, 1]} : vector<4x342xf32> to vector<4x288xf32>
    %96 = vector.extract_strided_slice %4 {offsets = [0, 36], sizes = [4, 288], strides = [1, 1]} : vector<4x342xf32> to vector<4x288xf32>
    %c18 = arith.constant 18 : index
    %97 = memref.load %arg1[%c18] : memref<27xf32, #tpu.memory_space<smem>>
    %98 = vector.broadcast %97 : f32 to vector<4x288xf32>
    %99 = arith.mulf %98, %95 : vector<4x288xf32>
    %100 = arith.addf %85, %99 : vector<4x288xf32>
    %c18_18 = arith.constant 18 : index
    %101 = memref.load %arg2[%c18_18] : memref<27xf32, #tpu.memory_space<smem>>
    %102 = vector.broadcast %101 : f32 to vector<4x288xf32>
    %103 = arith.mulf %102, %96 : vector<4x288xf32>
    %104 = arith.addf %89, %103 : vector<4x288xf32>
    %c18_19 = arith.constant 18 : index
    %105 = memref.load %arg3[%c18_19] : memref<27xf32, #tpu.memory_space<smem>>
    %106 = arith.addf %95, %96 : vector<4x288xf32>
    %107 = vector.broadcast %105 : f32 to vector<4x288xf32>
    %108 = arith.mulf %107, %106 : vector<4x288xf32>
    %109 = arith.addf %94, %108 : vector<4x288xf32>
    %110 = vector.extract_strided_slice %3 {offsets = [0, 37], sizes = [4, 288], strides = [1, 1]} : vector<4x342xf32> to vector<4x288xf32>
    %111 = vector.extract_strided_slice %4 {offsets = [0, 37], sizes = [4, 288], strides = [1, 1]} : vector<4x342xf32> to vector<4x288xf32>
    %c21 = arith.constant 21 : index
    %112 = memref.load %arg1[%c21] : memref<27xf32, #tpu.memory_space<smem>>
    %113 = vector.broadcast %112 : f32 to vector<4x288xf32>
    %114 = arith.mulf %113, %110 : vector<4x288xf32>
    %115 = arith.addf %100, %114 : vector<4x288xf32>
    %c21_20 = arith.constant 21 : index
    %116 = memref.load %arg2[%c21_20] : memref<27xf32, #tpu.memory_space<smem>>
    %117 = vector.broadcast %116 : f32 to vector<4x288xf32>
    %118 = arith.mulf %117, %111 : vector<4x288xf32>
    %119 = arith.addf %104, %118 : vector<4x288xf32>
    %c21_21 = arith.constant 21 : index
    %120 = memref.load %arg3[%c21_21] : memref<27xf32, #tpu.memory_space<smem>>
    %121 = arith.addf %110, %111 : vector<4x288xf32>
    %122 = vector.broadcast %120 : f32 to vector<4x288xf32>
    %123 = arith.mulf %122, %121 : vector<4x288xf32>
    %124 = arith.addf %109, %123 : vector<4x288xf32>
    %125 = vector.extract_strided_slice %3 {offsets = [0, 38], sizes = [4, 288], strides = [1, 1]} : vector<4x342xf32> to vector<4x288xf32>
    %126 = vector.extract_strided_slice %4 {offsets = [0, 38], sizes = [4, 288], strides = [1, 1]} : vector<4x342xf32> to vector<4x288xf32>
    %c24 = arith.constant 24 : index
    %127 = memref.load %arg1[%c24] : memref<27xf32, #tpu.memory_space<smem>>
    %128 = vector.broadcast %127 : f32 to vector<4x288xf32>
    %129 = arith.mulf %128, %125 : vector<4x288xf32>
    %130 = arith.addf %115, %129 : vector<4x288xf32>
    %c24_22 = arith.constant 24 : index
    %131 = memref.load %arg2[%c24_22] : memref<27xf32, #tpu.memory_space<smem>>
    %132 = vector.broadcast %131 : f32 to vector<4x288xf32>
    %133 = arith.mulf %132, %126 : vector<4x288xf32>
    %134 = arith.addf %119, %133 : vector<4x288xf32>
    %c24_23 = arith.constant 24 : index
    %135 = memref.load %arg3[%c24_23] : memref<27xf32, #tpu.memory_space<smem>>
    %136 = arith.addf %125, %126 : vector<4x288xf32>
    %137 = vector.broadcast %135 : f32 to vector<4x288xf32>
    %138 = arith.mulf %137, %136 : vector<4x288xf32>
    %139 = arith.addf %124, %138 : vector<4x288xf32>
    %c1 = arith.constant 1 : index
    %c0_24 = arith.constant 0 : index
    %140 = vector.load %arg5[%c1, %c0_24] : memref<6x342xf32, #tpu.memory_space<vmem>>, vector<4x342xf32>
    %c1_25 = arith.constant 1 : index
    %c0_26 = arith.constant 0 : index
    %141 = vector.load %arg6[%c1_25, %c0_26] : memref<6x342xf32, #tpu.memory_space<vmem>>, vector<4x342xf32>
    %142 = vector.extract_strided_slice %140 {offsets = [0, 0], sizes = [4, 288], strides = [1, 1]} : vector<4x342xf32> to vector<4x288xf32>
    %143 = vector.extract_strided_slice %141 {offsets = [0, 0], sizes = [4, 288], strides = [1, 1]} : vector<4x342xf32> to vector<4x288xf32>
    %c1_27 = arith.constant 1 : index
    %144 = memref.load %arg1[%c1_27] : memref<27xf32, #tpu.memory_space<smem>>
    %145 = vector.broadcast %144 : f32 to vector<4x288xf32>
    %146 = arith.mulf %145, %142 : vector<4x288xf32>
    %147 = arith.addf %130, %146 : vector<4x288xf32>
    %c1_28 = arith.constant 1 : index
    %148 = memref.load %arg2[%c1_28] : memref<27xf32, #tpu.memory_space<smem>>
    %149 = vector.broadcast %148 : f32 to vector<4x288xf32>
    %150 = arith.mulf %149, %143 : vector<4x288xf32>
    %151 = arith.addf %134, %150 : vector<4x288xf32>
    %c1_29 = arith.constant 1 : index
    %152 = memref.load %arg3[%c1_29] : memref<27xf32, #tpu.memory_space<smem>>
    %153 = arith.addf %142, %143 : vector<4x288xf32>
    %154 = vector.broadcast %152 : f32 to vector<4x288xf32>
    %155 = arith.mulf %154, %153 : vector<4x288xf32>
    %156 = arith.addf %139, %155 : vector<4x288xf32>
    %157 = vector.extract_strided_slice %140 {offsets = [0, 1], sizes = [4, 288], strides = [1, 1]} : vector<4x342xf32> to vector<4x288xf32>
    %158 = vector.extract_strided_slice %141 {offsets = [0, 1], sizes = [4, 288], strides = [1, 1]} : vector<4x342xf32> to vector<4x288xf32>
    %c4 = arith.constant 4 : index
    %159 = memref.load %arg1[%c4] : memref<27xf32, #tpu.memory_space<smem>>
    %160 = vector.broadcast %159 : f32 to vector<4x288xf32>
    %161 = arith.mulf %160, %157 : vector<4x288xf32>
    %162 = arith.addf %147, %161 : vector<4x288xf32>
    %c4_30 = arith.constant 4 : index
    %163 = memref.load %arg2[%c4_30] : memref<27xf32, #tpu.memory_space<smem>>
    %164 = vector.broadcast %163 : f32 to vector<4x288xf32>
    %165 = arith.mulf %164, %158 : vector<4x288xf32>
    %166 = arith.addf %151, %165 : vector<4x288xf32>
    %c4_31 = arith.constant 4 : index
    %167 = memref.load %arg3[%c4_31] : memref<27xf32, #tpu.memory_space<smem>>
    %168 = arith.addf %157, %158 : vector<4x288xf32>
    %169 = vector.broadcast %167 : f32 to vector<4x288xf32>
    %170 = arith.mulf %169, %168 : vector<4x288xf32>
    %171 = arith.addf %156, %170 : vector<4x288xf32>
    %172 = vector.extract_strided_slice %140 {offsets = [0, 2], sizes = [4, 288], strides = [1, 1]} : vector<4x342xf32> to vector<4x288xf32>
    %173 = vector.extract_strided_slice %141 {offsets = [0, 2], sizes = [4, 288], strides = [1, 1]} : vector<4x342xf32> to vector<4x288xf32>
    %c7 = arith.constant 7 : index
    %174 = memref.load %arg1[%c7] : memref<27xf32, #tpu.memory_space<smem>>
    %175 = vector.broadcast %174 : f32 to vector<4x288xf32>
    %176 = arith.mulf %175, %172 : vector<4x288xf32>
    %177 = arith.addf %162, %176 : vector<4x288xf32>
    %c7_32 = arith.constant 7 : index
    %178 = memref.load %arg2[%c7_32] : memref<27xf32, #tpu.memory_space<smem>>
    %179 = vector.broadcast %178 : f32 to vector<4x288xf32>
    %180 = arith.mulf %179, %173 : vector<4x288xf32>
    %181 = arith.addf %166, %180 : vector<4x288xf32>
    %c7_33 = arith.constant 7 : index
    %182 = memref.load %arg3[%c7_33] : memref<27xf32, #tpu.memory_space<smem>>
    %183 = arith.addf %172, %173 : vector<4x288xf32>
    %184 = vector.broadcast %182 : f32 to vector<4x288xf32>
    %185 = arith.mulf %184, %183 : vector<4x288xf32>
    %186 = arith.addf %171, %185 : vector<4x288xf32>
    %187 = vector.extract_strided_slice %140 {offsets = [0, 18], sizes = [4, 288], strides = [1, 1]} : vector<4x342xf32> to vector<4x288xf32>
    %188 = vector.extract_strided_slice %141 {offsets = [0, 18], sizes = [4, 288], strides = [1, 1]} : vector<4x342xf32> to vector<4x288xf32>
    %c10 = arith.constant 10 : index
    %189 = memref.load %arg1[%c10] : memref<27xf32, #tpu.memory_space<smem>>
    %190 = vector.broadcast %189 : f32 to vector<4x288xf32>
    %191 = arith.mulf %190, %187 : vector<4x288xf32>
    %192 = arith.addf %177, %191 : vector<4x288xf32>
    %c10_34 = arith.constant 10 : index
    %193 = memref.load %arg2[%c10_34] : memref<27xf32, #tpu.memory_space<smem>>
    %194 = vector.broadcast %193 : f32 to vector<4x288xf32>
    %195 = arith.mulf %194, %188 : vector<4x288xf32>
    %196 = arith.addf %181, %195 : vector<4x288xf32>
    %c10_35 = arith.constant 10 : index
    %197 = memref.load %arg3[%c10_35] : memref<27xf32, #tpu.memory_space<smem>>
    %198 = arith.addf %187, %188 : vector<4x288xf32>
    %199 = vector.broadcast %197 : f32 to vector<4x288xf32>
    %200 = arith.mulf %199, %198 : vector<4x288xf32>
    %201 = arith.addf %186, %200 : vector<4x288xf32>
    %202 = vector.extract_strided_slice %140 {offsets = [0, 19], sizes = [4, 288], strides = [1, 1]} : vector<4x342xf32> to vector<4x288xf32>
    %203 = vector.extract_strided_slice %141 {offsets = [0, 19], sizes = [4, 288], strides = [1, 1]} : vector<4x342xf32> to vector<4x288xf32>
    %c13 = arith.constant 13 : index
    %204 = memref.load %arg1[%c13] : memref<27xf32, #tpu.memory_space<smem>>
    %205 = vector.broadcast %204 : f32 to vector<4x288xf32>
    %206 = arith.mulf %205, %202 : vector<4x288xf32>
    %207 = arith.addf %192, %206 : vector<4x288xf32>
    %c13_36 = arith.constant 13 : index
    %208 = memref.load %arg2[%c13_36] : memref<27xf32, #tpu.memory_space<smem>>
    %209 = vector.broadcast %208 : f32 to vector<4x288xf32>
    %210 = arith.mulf %209, %203 : vector<4x288xf32>
    %211 = arith.addf %196, %210 : vector<4x288xf32>
    %c13_37 = arith.constant 13 : index
    %212 = memref.load %arg3[%c13_37] : memref<27xf32, #tpu.memory_space<smem>>
    %213 = arith.addf %202, %203 : vector<4x288xf32>
    %214 = vector.broadcast %212 : f32 to vector<4x288xf32>
    %215 = arith.mulf %214, %213 : vector<4x288xf32>
    %216 = arith.addf %201, %215 : vector<4x288xf32>
    %217 = vector.extract_strided_slice %140 {offsets = [0, 20], sizes = [4, 288], strides = [1, 1]} : vector<4x342xf32> to vector<4x288xf32>
    %218 = vector.extract_strided_slice %141 {offsets = [0, 20], sizes = [4, 288], strides = [1, 1]} : vector<4x342xf32> to vector<4x288xf32>
    %c16 = arith.constant 16 : index
    %219 = memref.load %arg1[%c16] : memref<27xf32, #tpu.memory_space<smem>>
    %220 = vector.broadcast %219 : f32 to vector<4x288xf32>
    %221 = arith.mulf %220, %217 : vector<4x288xf32>
    %222 = arith.addf %207, %221 : vector<4x288xf32>
    %c16_38 = arith.constant 16 : index
    %223 = memref.load %arg2[%c16_38] : memref<27xf32, #tpu.memory_space<smem>>
    %224 = vector.broadcast %223 : f32 to vector<4x288xf32>
    %225 = arith.mulf %224, %218 : vector<4x288xf32>
    %226 = arith.addf %211, %225 : vector<4x288xf32>
    %c16_39 = arith.constant 16 : index
    %227 = memref.load %arg3[%c16_39] : memref<27xf32, #tpu.memory_space<smem>>
    %228 = arith.addf %217, %218 : vector<4x288xf32>
    %229 = vector.broadcast %227 : f32 to vector<4x288xf32>
    %230 = arith.mulf %229, %228 : vector<4x288xf32>
    %231 = arith.addf %216, %230 : vector<4x288xf32>
    %232 = vector.extract_strided_slice %140 {offsets = [0, 36], sizes = [4, 288], strides = [1, 1]} : vector<4x342xf32> to vector<4x288xf32>
    %233 = vector.extract_strided_slice %141 {offsets = [0, 36], sizes = [4, 288], strides = [1, 1]} : vector<4x342xf32> to vector<4x288xf32>
    %c19 = arith.constant 19 : index
    %234 = memref.load %arg1[%c19] : memref<27xf32, #tpu.memory_space<smem>>
    %235 = vector.broadcast %234 : f32 to vector<4x288xf32>
    %236 = arith.mulf %235, %232 : vector<4x288xf32>
    %237 = arith.addf %222, %236 : vector<4x288xf32>
    %c19_40 = arith.constant 19 : index
    %238 = memref.load %arg2[%c19_40] : memref<27xf32, #tpu.memory_space<smem>>
    %239 = vector.broadcast %238 : f32 to vector<4x288xf32>
    %240 = arith.mulf %239, %233 : vector<4x288xf32>
    %241 = arith.addf %226, %240 : vector<4x288xf32>
    %c19_41 = arith.constant 19 : index
    %242 = memref.load %arg3[%c19_41] : memref<27xf32, #tpu.memory_space<smem>>
    %243 = arith.addf %232, %233 : vector<4x288xf32>
    %244 = vector.broadcast %242 : f32 to vector<4x288xf32>
    %245 = arith.mulf %244, %243 : vector<4x288xf32>
    %246 = arith.addf %231, %245 : vector<4x288xf32>
    %247 = vector.extract_strided_slice %140 {offsets = [0, 37], sizes = [4, 288], strides = [1, 1]} : vector<4x342xf32> to vector<4x288xf32>
    %248 = vector.extract_strided_slice %141 {offsets = [0, 37], sizes = [4, 288], strides = [1, 1]} : vector<4x342xf32> to vector<4x288xf32>
    %c22 = arith.constant 22 : index
    %249 = memref.load %arg1[%c22] : memref<27xf32, #tpu.memory_space<smem>>
    %250 = vector.broadcast %249 : f32 to vector<4x288xf32>
    %251 = arith.mulf %250, %247 : vector<4x288xf32>
    %252 = arith.addf %237, %251 : vector<4x288xf32>
    %c22_42 = arith.constant 22 : index
    %253 = memref.load %arg2[%c22_42] : memref<27xf32, #tpu.memory_space<smem>>
    %254 = vector.broadcast %253 : f32 to vector<4x288xf32>
    %255 = arith.mulf %254, %248 : vector<4x288xf32>
    %256 = arith.addf %241, %255 : vector<4x288xf32>
    %c22_43 = arith.constant 22 : index
    %257 = memref.load %arg3[%c22_43] : memref<27xf32, #tpu.memory_space<smem>>
    %258 = arith.addf %247, %248 : vector<4x288xf32>
    %259 = vector.broadcast %257 : f32 to vector<4x288xf32>
    %260 = arith.mulf %259, %258 : vector<4x288xf32>
    %261 = arith.addf %246, %260 : vector<4x288xf32>
    %262 = vector.extract_strided_slice %140 {offsets = [0, 38], sizes = [4, 288], strides = [1, 1]} : vector<4x342xf32> to vector<4x288xf32>
    %263 = vector.extract_strided_slice %141 {offsets = [0, 38], sizes = [4, 288], strides = [1, 1]} : vector<4x342xf32> to vector<4x288xf32>
    %c25 = arith.constant 25 : index
    %264 = memref.load %arg1[%c25] : memref<27xf32, #tpu.memory_space<smem>>
    %265 = vector.broadcast %264 : f32 to vector<4x288xf32>
    %266 = arith.mulf %265, %262 : vector<4x288xf32>
    %267 = arith.addf %252, %266 : vector<4x288xf32>
    %c25_44 = arith.constant 25 : index
    %268 = memref.load %arg2[%c25_44] : memref<27xf32, #tpu.memory_space<smem>>
    %269 = vector.broadcast %268 : f32 to vector<4x288xf32>
    %270 = arith.mulf %269, %263 : vector<4x288xf32>
    %271 = arith.addf %256, %270 : vector<4x288xf32>
    %c25_45 = arith.constant 25 : index
    %272 = memref.load %arg3[%c25_45] : memref<27xf32, #tpu.memory_space<smem>>
    %273 = arith.addf %262, %263 : vector<4x288xf32>
    %274 = vector.broadcast %272 : f32 to vector<4x288xf32>
    %275 = arith.mulf %274, %273 : vector<4x288xf32>
    %276 = arith.addf %261, %275 : vector<4x288xf32>
    %c2 = arith.constant 2 : index
    %c0_46 = arith.constant 0 : index
    %277 = vector.load %arg5[%c2, %c0_46] : memref<6x342xf32, #tpu.memory_space<vmem>>, vector<4x342xf32>
    %c2_47 = arith.constant 2 : index
    %c0_48 = arith.constant 0 : index
    %278 = vector.load %arg6[%c2_47, %c0_48] : memref<6x342xf32, #tpu.memory_space<vmem>>, vector<4x342xf32>
    %279 = vector.extract_strided_slice %277 {offsets = [0, 0], sizes = [4, 288], strides = [1, 1]} : vector<4x342xf32> to vector<4x288xf32>
    %280 = vector.extract_strided_slice %278 {offsets = [0, 0], sizes = [4, 288], strides = [1, 1]} : vector<4x342xf32> to vector<4x288xf32>
    %c2_49 = arith.constant 2 : index
    %281 = memref.load %arg1[%c2_49] : memref<27xf32, #tpu.memory_space<smem>>
    %282 = vector.broadcast %281 : f32 to vector<4x288xf32>
    %283 = arith.mulf %282, %279 : vector<4x288xf32>
    %284 = arith.addf %267, %283 : vector<4x288xf32>
    %c2_50 = arith.constant 2 : index
    %285 = memref.load %arg2[%c2_50] : memref<27xf32, #tpu.memory_space<smem>>
    %286 = vector.broadcast %285 : f32 to vector<4x288xf32>
    %287 = arith.mulf %286, %280 : vector<4x288xf32>
    %288 = arith.addf %271, %287 : vector<4x288xf32>
    %c2_51 = arith.constant 2 : index
    %289 = memref.load %arg3[%c2_51] : memref<27xf32, #tpu.memory_space<smem>>
    %290 = arith.addf %279, %280 : vector<4x288xf32>
    %291 = vector.broadcast %289 : f32 to vector<4x288xf32>
    %292 = arith.mulf %291, %290 : vector<4x288xf32>
    %293 = arith.addf %276, %292 : vector<4x288xf32>
    %294 = vector.extract_strided_slice %277 {offsets = [0, 1], sizes = [4, 288], strides = [1, 1]} : vector<4x342xf32> to vector<4x288xf32>
    %295 = vector.extract_strided_slice %278 {offsets = [0, 1], sizes = [4, 288], strides = [1, 1]} : vector<4x342xf32> to vector<4x288xf32>
    %c5 = arith.constant 5 : index
    %296 = memref.load %arg1[%c5] : memref<27xf32, #tpu.memory_space<smem>>
    %297 = vector.broadcast %296 : f32 to vector<4x288xf32>
    %298 = arith.mulf %297, %294 : vector<4x288xf32>
    %299 = arith.addf %284, %298 : vector<4x288xf32>
    %c5_52 = arith.constant 5 : index
    %300 = memref.load %arg2[%c5_52] : memref<27xf32, #tpu.memory_space<smem>>
    %301 = vector.broadcast %300 : f32 to vector<4x288xf32>
    %302 = arith.mulf %301, %295 : vector<4x288xf32>
    %303 = arith.addf %288, %302 : vector<4x288xf32>
    %c5_53 = arith.constant 5 : index
    %304 = memref.load %arg3[%c5_53] : memref<27xf32, #tpu.memory_space<smem>>
    %305 = arith.addf %294, %295 : vector<4x288xf32>
    %306 = vector.broadcast %304 : f32 to vector<4x288xf32>
    %307 = arith.mulf %306, %305 : vector<4x288xf32>
    %308 = arith.addf %293, %307 : vector<4x288xf32>
    %309 = vector.extract_strided_slice %277 {offsets = [0, 2], sizes = [4, 288], strides = [1, 1]} : vector<4x342xf32> to vector<4x288xf32>
    %310 = vector.extract_strided_slice %278 {offsets = [0, 2], sizes = [4, 288], strides = [1, 1]} : vector<4x342xf32> to vector<4x288xf32>
    %c8 = arith.constant 8 : index
    %311 = memref.load %arg1[%c8] : memref<27xf32, #tpu.memory_space<smem>>
    %312 = vector.broadcast %311 : f32 to vector<4x288xf32>
    %313 = arith.mulf %312, %309 : vector<4x288xf32>
    %314 = arith.addf %299, %313 : vector<4x288xf32>
    %c8_54 = arith.constant 8 : index
    %315 = memref.load %arg2[%c8_54] : memref<27xf32, #tpu.memory_space<smem>>
    %316 = vector.broadcast %315 : f32 to vector<4x288xf32>
    %317 = arith.mulf %316, %310 : vector<4x288xf32>
    %318 = arith.addf %303, %317 : vector<4x288xf32>
    %c8_55 = arith.constant 8 : index
    %319 = memref.load %arg3[%c8_55] : memref<27xf32, #tpu.memory_space<smem>>
    %320 = arith.addf %309, %310 : vector<4x288xf32>
    %321 = vector.broadcast %319 : f32 to vector<4x288xf32>
    %322 = arith.mulf %321, %320 : vector<4x288xf32>
    %323 = arith.addf %308, %322 : vector<4x288xf32>
    %324 = vector.extract_strided_slice %277 {offsets = [0, 18], sizes = [4, 288], strides = [1, 1]} : vector<4x342xf32> to vector<4x288xf32>
    %325 = vector.extract_strided_slice %278 {offsets = [0, 18], sizes = [4, 288], strides = [1, 1]} : vector<4x342xf32> to vector<4x288xf32>
    %c11 = arith.constant 11 : index
    %326 = memref.load %arg1[%c11] : memref<27xf32, #tpu.memory_space<smem>>
    %327 = vector.broadcast %326 : f32 to vector<4x288xf32>
    %328 = arith.mulf %327, %324 : vector<4x288xf32>
    %329 = arith.addf %314, %328 : vector<4x288xf32>
    %c11_56 = arith.constant 11 : index
    %330 = memref.load %arg2[%c11_56] : memref<27xf32, #tpu.memory_space<smem>>
    %331 = vector.broadcast %330 : f32 to vector<4x288xf32>
    %332 = arith.mulf %331, %325 : vector<4x288xf32>
    %333 = arith.addf %318, %332 : vector<4x288xf32>
    %c11_57 = arith.constant 11 : index
    %334 = memref.load %arg3[%c11_57] : memref<27xf32, #tpu.memory_space<smem>>
    %335 = arith.addf %324, %325 : vector<4x288xf32>
    %336 = vector.broadcast %334 : f32 to vector<4x288xf32>
    %337 = arith.mulf %336, %335 : vector<4x288xf32>
    %338 = arith.addf %323, %337 : vector<4x288xf32>
    %339 = vector.extract_strided_slice %277 {offsets = [0, 19], sizes = [4, 288], strides = [1, 1]} : vector<4x342xf32> to vector<4x288xf32>
    %340 = vector.extract_strided_slice %278 {offsets = [0, 19], sizes = [4, 288], strides = [1, 1]} : vector<4x342xf32> to vector<4x288xf32>
    %c14 = arith.constant 14 : index
    %341 = memref.load %arg1[%c14] : memref<27xf32, #tpu.memory_space<smem>>
    %342 = vector.broadcast %341 : f32 to vector<4x288xf32>
    %343 = arith.mulf %342, %339 : vector<4x288xf32>
    %344 = arith.addf %329, %343 : vector<4x288xf32>
    %c14_58 = arith.constant 14 : index
    %345 = memref.load %arg2[%c14_58] : memref<27xf32, #tpu.memory_space<smem>>
    %346 = vector.broadcast %345 : f32 to vector<4x288xf32>
    %347 = arith.mulf %346, %340 : vector<4x288xf32>
    %348 = arith.addf %333, %347 : vector<4x288xf32>
    %c14_59 = arith.constant 14 : index
    %349 = memref.load %arg3[%c14_59] : memref<27xf32, #tpu.memory_space<smem>>
    %350 = arith.addf %339, %340 : vector<4x288xf32>
    %351 = vector.broadcast %349 : f32 to vector<4x288xf32>
    %352 = arith.mulf %351, %350 : vector<4x288xf32>
    %353 = arith.addf %338, %352 : vector<4x288xf32>
    %354 = vector.extract_strided_slice %277 {offsets = [0, 20], sizes = [4, 288], strides = [1, 1]} : vector<4x342xf32> to vector<4x288xf32>
    %355 = vector.extract_strided_slice %278 {offsets = [0, 20], sizes = [4, 288], strides = [1, 1]} : vector<4x342xf32> to vector<4x288xf32>
    %c17 = arith.constant 17 : index
    %356 = memref.load %arg1[%c17] : memref<27xf32, #tpu.memory_space<smem>>
    %357 = vector.broadcast %356 : f32 to vector<4x288xf32>
    %358 = arith.mulf %357, %354 : vector<4x288xf32>
    %359 = arith.addf %344, %358 : vector<4x288xf32>
    %c17_60 = arith.constant 17 : index
    %360 = memref.load %arg2[%c17_60] : memref<27xf32, #tpu.memory_space<smem>>
    %361 = vector.broadcast %360 : f32 to vector<4x288xf32>
    %362 = arith.mulf %361, %355 : vector<4x288xf32>
    %363 = arith.addf %348, %362 : vector<4x288xf32>
    %c17_61 = arith.constant 17 : index
    %364 = memref.load %arg3[%c17_61] : memref<27xf32, #tpu.memory_space<smem>>
    %365 = arith.addf %354, %355 : vector<4x288xf32>
    %366 = vector.broadcast %364 : f32 to vector<4x288xf32>
    %367 = arith.mulf %366, %365 : vector<4x288xf32>
    %368 = arith.addf %353, %367 : vector<4x288xf32>
    %369 = vector.extract_strided_slice %277 {offsets = [0, 36], sizes = [4, 288], strides = [1, 1]} : vector<4x342xf32> to vector<4x288xf32>
    %370 = vector.extract_strided_slice %278 {offsets = [0, 36], sizes = [4, 288], strides = [1, 1]} : vector<4x342xf32> to vector<4x288xf32>
    %c20 = arith.constant 20 : index
    %371 = memref.load %arg1[%c20] : memref<27xf32, #tpu.memory_space<smem>>
    %372 = vector.broadcast %371 : f32 to vector<4x288xf32>
    %373 = arith.mulf %372, %369 : vector<4x288xf32>
    %374 = arith.addf %359, %373 : vector<4x288xf32>
    %c20_62 = arith.constant 20 : index
    %375 = memref.load %arg2[%c20_62] : memref<27xf32, #tpu.memory_space<smem>>
    %376 = vector.broadcast %375 : f32 to vector<4x288xf32>
    %377 = arith.mulf %376, %370 : vector<4x288xf32>
    %378 = arith.addf %363, %377 : vector<4x288xf32>
    %c20_63 = arith.constant 20 : index
    %379 = memref.load %arg3[%c20_63] : memref<27xf32, #tpu.memory_space<smem>>
    %380 = arith.addf %369, %370 : vector<4x288xf32>
    %381 = vector.broadcast %379 : f32 to vector<4x288xf32>
    %382 = arith.mulf %381, %380 : vector<4x288xf32>
    %383 = arith.addf %368, %382 : vector<4x288xf32>
    %384 = vector.extract_strided_slice %277 {offsets = [0, 37], sizes = [4, 288], strides = [1, 1]} : vector<4x342xf32> to vector<4x288xf32>
    %385 = vector.extract_strided_slice %278 {offsets = [0, 37], sizes = [4, 288], strides = [1, 1]} : vector<4x342xf32> to vector<4x288xf32>
    %c23 = arith.constant 23 : index
    %386 = memref.load %arg1[%c23] : memref<27xf32, #tpu.memory_space<smem>>
    %387 = vector.broadcast %386 : f32 to vector<4x288xf32>
    %388 = arith.mulf %387, %384 : vector<4x288xf32>
    %389 = arith.addf %374, %388 : vector<4x288xf32>
    %c23_64 = arith.constant 23 : index
    %390 = memref.load %arg2[%c23_64] : memref<27xf32, #tpu.memory_space<smem>>
    %391 = vector.broadcast %390 : f32 to vector<4x288xf32>
    %392 = arith.mulf %391, %385 : vector<4x288xf32>
    %393 = arith.addf %378, %392 : vector<4x288xf32>
    %c23_65 = arith.constant 23 : index
    %394 = memref.load %arg3[%c23_65] : memref<27xf32, #tpu.memory_space<smem>>
    %395 = arith.addf %384, %385 : vector<4x288xf32>
    %396 = vector.broadcast %394 : f32 to vector<4x288xf32>
    %397 = arith.mulf %396, %395 : vector<4x288xf32>
    %398 = arith.addf %383, %397 : vector<4x288xf32>
    %399 = vector.extract_strided_slice %277 {offsets = [0, 38], sizes = [4, 288], strides = [1, 1]} : vector<4x342xf32> to vector<4x288xf32>
    %400 = vector.extract_strided_slice %278 {offsets = [0, 38], sizes = [4, 288], strides = [1, 1]} : vector<4x342xf32> to vector<4x288xf32>
    %c26 = arith.constant 26 : index
    %401 = memref.load %arg1[%c26] : memref<27xf32, #tpu.memory_space<smem>>
    %402 = vector.broadcast %401 : f32 to vector<4x288xf32>
    %403 = arith.mulf %402, %399 : vector<4x288xf32>
    %404 = arith.addf %389, %403 : vector<4x288xf32>
    %c26_66 = arith.constant 26 : index
    %405 = memref.load %arg2[%c26_66] : memref<27xf32, #tpu.memory_space<smem>>
    %406 = vector.broadcast %405 : f32 to vector<4x288xf32>
    %407 = arith.mulf %406, %400 : vector<4x288xf32>
    %408 = arith.addf %393, %407 : vector<4x288xf32>
    %c26_67 = arith.constant 26 : index
    %409 = memref.load %arg3[%c26_67] : memref<27xf32, #tpu.memory_space<smem>>
    %410 = arith.addf %399, %400 : vector<4x288xf32>
    %411 = vector.broadcast %409 : f32 to vector<4x288xf32>
    %412 = arith.mulf %411, %410 : vector<4x288xf32>
    %413 = arith.addf %398, %412 : vector<4x288xf32>
    %414 = arith.subf %404, %408 : vector<4x288xf32>
    %c0_68 = arith.constant 0 : index
    %415 = memref.load %arg4[%c0_68] : memref<2xf32, #tpu.memory_space<smem>>
    %416 = vector.broadcast %415 : f32 to vector<4x288xf32>
    %417 = arith.addf %414, %416 : vector<4x288xf32>
    %c0_69 = arith.constant 0 : index
    %c0_70 = arith.constant 0 : index
    %418 = vector.load %arg7[%c0_69, %c0_70] : memref<4x288xf32, #tpu.memory_space<vmem>>, vector<4x288xf32>
    tpu.vector_store %arg7[%c0_69, %c0_70], %417 {strides = array<i32>} : memref<4x288xf32, #tpu.memory_space<vmem>>, vector<4x288xf32>,
    %419 = arith.subf %413, %404 : vector<4x288xf32>
    %420 = arith.subf %419, %408 : vector<4x288xf32>
    %c1_71 = arith.constant 1 : index
    %421 = memref.load %arg4[%c1_71] : memref<2xf32, #tpu.memory_space<smem>>
    %422 = vector.broadcast %421 : f32 to vector<4x288xf32>
    %423 = arith.addf %420, %422 : vector<4x288xf32>
    %c0_72 = arith.constant 0 : index
    %c0_73 = arith.constant 0 : index
    %424 = vector.load %arg8[%c0_72, %c0_73] : memref<4x288xf32, #tpu.memory_space<vmem>>, vector<4x288xf32>
    tpu.vector_store %arg8[%c0_72, %c0_73], %423 {strides = array<i32>} : memref<4x288xf32, #tpu.memory_space<vmem>>, vector<4x288xf32>,
    return
  }
  func.func @transform_0(%arg0: i32) -> i32 {
    %c0_i32 = arith.constant 0 : i32
    %c0_i32_0 = arith.constant 0 : i32
    return %c0_i32 : i32
  }
  func.func @transform_1(%arg0: i32) -> i32 {
    %c0_i32 = arith.constant 0 : i32
    %c0_i32_0 = arith.constant 0 : i32
    return %c0_i32 : i32
  }
  func.func @transform_2(%arg0: i32) -> i32 {
    %c0_i32 = arith.constant 0 : i32
    %c0_i32_0 = arith.constant 0 : i32
    return %c0_i32 : i32
  }
  func.func @transform_3(%arg0: i32) -> i32 {
    %c0_i32 = arith.constant 0 : i32
    %c0_i32_0 = arith.constant 0 : i32
    return %c0_i32 : i32
  }
  func.func @transform_4(%arg0: i32) -> (i32, i32) {
    %c0_i32 = arith.constant 0 : i32
    %c0_i32_0 = arith.constant 0 : i32
    %c0_i32_1 = arith.constant 0 : i32
    return %c0_i32, %c0_i32_0 : i32, i32
  }
  func.func @transform_5(%arg0: i32) -> (i32, i32) {
    %c0_i32 = arith.constant 0 : i32
    %c0_i32_0 = arith.constant 0 : i32
    %c0_i32_1 = arith.constant 0 : i32
    return %c0_i32, %c0_i32_0 : i32, i32
  }
  func.func @transform_6(%arg0: i32) -> (i32, i32) {
    %c0_i32 = arith.constant 0 : i32
    %c0_i32_0 = arith.constant 0 : i32
    return %arg0, %c0_i32 : i32, i32
  }
  func.func @transform_7(%arg0: i32) -> (i32, i32) {
    %c0_i32 = arith.constant 0 : i32
    %c0_i32_0 = arith.constant 0 : i32
    return %arg0, %c0_i32 : i32, i32
  }
}

</mosaic_0001>

<bundles_post_ra>
// kernel: tpu_custom_call.1
= control target key start
LH: loop header
LB: loop body
LE: loop exit
PB: predicated region body
PF: predicated region fallthrough
CT: control target
= control target key end

     0   :  { %13 = vsyncpa [#allocation5], 0  ;;  %s3862_s0 = inlined_call_operand.hbm [shape: f32[27], index: 0, kind: input, shape index: {}]   ;;  %s3863_s1 = inlined_call_operand.vmem [shape: f32[27], index: 1, kind: input, shape index: {}]   ;;  %s3864_s2 = inlined_call_operand.vmem [shape: f32[27], index: 2, kind: input, shape index: {}]   ;;  %s3865_s3 = inlined_call_operand.vmem [shape: f32[2], index: 3, kind: input, shape index: {}]   ;;  %s3866_s4 = inlined_call_operand.hbm [shape: f32[6,342], index: 4, kind: input, shape index: {}]   ;;  %s3867_s5 = inlined_call_operand.hbm [shape: f32[6,342], index: 5, kind: input, shape index: {}]   ;;  %s3868_s6 = inlined_call_operand.hbm [shape: f32[4,288], index: 6, kind: output, shape index: {0}]   ;;  %s3869_s7 = inlined_call_operand.hbm [shape: f32[4,288], index: 7, kind: output, shape index: {1}]  }
   0x1   :  { %14 = vsyncpa [#allocation6], 0 }
   0x2   :  { %15 = vsyncpa [#allocation9], 0 }
   0x3   :  { %16 = vsyncpa [#allocation3], 0 }
   0x4   :  { %17 = vsyncpa [#allocation13], 0 }
   0x5   :  { %18 = vsyncpa [#allocation4], 0  ;;  %s44_s26 = sshll.u32 %s3864_s2, 4  ;;  %s45_s26 = int_to_ptr.vmem [resolvable:$true] %s44_s26 }
   0x6   :  { %19 = vsyncpa [#allocation16], 0  ;;  %s2158_s27 = scalar_lea.vmem %s45_s26, 16  ;;  %p2163_p1 = scmp.lt.s32.totalorder %s45_s26, %s45_s26 }
   0x7   :  { %p2159_p0 = scmp.ne.s32.totalorder %s45_s26, %s2158_s27  ;;  %p2164_p2 = scmp.lt.s32.totalorder %s2158_s27, %s2158_s27 }
   0x9   :  { %p2165_p3 = por %p2164_p2, %p2163_p1 }
   0xb   :  { %p2166_p4 = pnand %p2165_p3, %p2159_p0 }
   0xd   :  { %2169 = shalt.err (!%p2166_p4)
}
   0xe   :  { %s2306_s28 = smov [#allocation8]   ;;  %s2170_s8 = scalar_lea.hbm %s3862_s0, 16 }
   0xf   :  { %47 = dma.vmem_to_smem %s45_s26, 16, %s2306_s28, [#allocation9]  }
  0x10   :  { %p2171_p5 = scmp.ne.s32.totalorder %s3862_s0, %s2170_s8  ;;  %p2174_p6 = scmp.lt.u32.totalorder %s2170_s8, %s3862_s0 }
  0x12   :  { %p2176_p7 = pnand %p2174_p6, %p2171_p5 }
  0x14   :  { %2179 = shalt.err (!%p2176_p7)
}
  0x15   :  { %s2307_s12 = smov [#allocation2]   ;;  %s34_s17 = sshll.u32 %s3863_s1, 4  ;;  %s35_s17 = int_to_ptr.vmem [resolvable:$true] %s34_s17 }
  0x16   :  { %27 = dma.hbm_to_smem %s3862_s0, 16, %s2307_s12, [#allocation5]  }
  0x17   :  { %s54_s20 = sshll.u32 %s3865_s3, 4  ;;  %s2180_s21 = scalar_lea.vmem %s35_s17, 16  ;;  %s55_s20 = int_to_ptr.vmem [resolvable:$true] %s54_s20 }
  0x18   :  { %p2181_p8 = scmp.ne.s32.totalorder %s35_s17, %s2180_s21  ;;  %p2185_p9 = scmp.lt.s32.totalorder %s35_s17, %s35_s17 }
  0x19   :  { %p2186_p10 = scmp.lt.s32.totalorder %s2180_s21, %s2180_s21 }
  0x1b   :  { %p2187_p11 = por %p2186_p10, %p2185_p9 }
  0x1d   :  { %p2188_p12 = pnand %p2187_p11, %p2181_p8 }
  0x1f   :  { %2191 = shalt.err (!%p2188_p12)
}
  0x20   :  { %s2308_s22 = smov [#allocation7]   ;;  %s2192_s0 = scalar_lea.vmem %s55_s20, 16 }
  0x21   :  { %37 = dma.vmem_to_smem %s35_s17, 16, %s2308_s22, [#allocation6]  }
  0x22   :  { %p2193_p13 = scmp.ne.s32.totalorder %s55_s20, %s2192_s0  ;;  %p2197_p0 = scmp.lt.s32.totalorder %s55_s20, %s55_s20 }
  0x23   :  { %p2198_p1 = scmp.lt.s32.totalorder %s2192_s0, %s2192_s0 }
  0x25   :  { %p2199_p2 = por %p2198_p1, %p2197_p0 }
  0x27   :  { %p2200_p3 = pnand %p2199_p2, %p2193_p13 }
  0x29   :  { %2203 = shalt.err (!%p2200_p3)
}
  0x2a   :  { %s2309_s1 = smov [#allocation10]   ;;  %s2310_s3 = smov [#allocation11]  }
  0x2b   :  { %57 = dma.vmem_to_smem %s55_s20, 16, %s2309_s1, [#allocation9]  }
  0x2c   :  { %s64_s23 = sshll.u32 %s2310_s3, 4  ;;  %s2311_s24 = smov [#allocation12]   ;;  %s65_s23 = int_to_ptr.vmem [resolvable:$true] %s64_s23 }
  0x2d   :  { %s74_s25 = sshll.u32 %s2311_s24, 4  ;;  %s2204_s28 = scalar_lea.hbm %s3866_s4, 384  ;;  %s75_s25 = int_to_ptr.vmem [resolvable:$true] %s74_s25 }
  0x2e   :  { %p2205_p4 = scmp.ne.s32.totalorder %s3866_s4, %s2204_s28  ;;  %p2208_p5 = scmp.lt.u32.totalorder %s2204_s28, %s3866_s4 }
  0x30   :  { %p2210_p6 = pnand %p2208_p5, %p2205_p4 }
  0x32   :  { %2213 = shalt.err (!%p2210_p6)
}
  0x33   :  { %s2214_s10 = scalar_lea.vmem %s65_s23, 384  ;;  %p2219_p8 = scmp.lt.s32.totalorder %s65_s23, %s65_s23 }
  0x34   :  { %p2215_p7 = scmp.ne.s32.totalorder %s65_s23, %s2214_s10  ;;  %p2220_p9 = scmp.lt.s32.totalorder %s2214_s10, %s2214_s10 }
  0x36   :  { %p2221_p10 = por %p2220_p9, %p2219_p8 }
  0x38   :  { %p2222_p11 = pnand %p2221_p10, %p2215_p7 }
  0x3a   :  { %2225 = shalt.err (!%p2222_p11)
}
  0x3b   :  { %67 = dma.hbm_to_vmem [thread:$0]  %s3866_s4, 384, %s65_s23, [#allocation3]  }
  0x3c   :  { %s2226_s14 = scalar_lea.hbm %s3867_s5, 384 }
  0x3d   :  { %p2227_p12 = scmp.ne.s32.totalorder %s3867_s5, %s2226_s14  ;;  %p2230_p13 = scmp.lt.u32.totalorder %s2226_s14, %s3867_s5 }
  0x3f   :  { %p2232_p0 = pnand %p2230_p13, %p2227_p12 }
  0x41   :  { %2235 = shalt.err (!%p2232_p0)
}
  0x42   :  { %s2236_s19 = scalar_lea.vmem %s75_s25, 384  ;;  %p2241_p2 = scmp.lt.s32.totalorder %s75_s25, %s75_s25 }
  0x43   :  { %p2237_p1 = scmp.ne.s32.totalorder %s75_s25, %s2236_s19  ;;  %p2242_p3 = scmp.lt.s32.totalorder %s2236_s19, %s2236_s19 }
  0x45   :  { %p2243_p4 = por %p2242_p3, %p2241_p2 }
  0x47   :  { %p2244_p5 = pnand %p2243_p4, %p2237_p1 }
  0x49   :  { %2247 = shalt.err (!%p2244_p5)
}
  0x4a   :  { %77 = dma.hbm_to_vmem [thread:$0]  %s3867_s5, 384, %s75_s25, [#allocation13]  }
  0x4b   :  { %2292 = dma.done.wait [#allocation5], 16  }
  0x4c   :  { %2293 = vsyncadd [#allocation5], 4294967280 }
  0x4d   :  { %2294 = dma.done.wait [#allocation6], 16  }
  0x4e   :  { %2295 = vsyncadd [#allocation6], 4294967280 }
  0x4f   :  { %2296 = dma.done.wait [#allocation9], 32  }
  0x50   :  { %2297 = vsyncadd [#allocation9], 4294967264 }
  0x51   :  { %2298 = dma.done.wait [#allocation3], 384  }
  0x52   :  { %2299 = vsyncadd [#allocation3], 4294966912 }
  0x53   :  { %2300 = dma.done.wait [#allocation13], 384  }
  0x54   :  { %2301 = vsyncadd [#allocation13], 4294966912 }
  0x55   :  { %96 = sfence }
  0x56   :  { %s2051_s21 = sld [smem:[#allocation2 + $0x3]]  ;;  %v2407_v0 = vld [vmem:[#allocation11 + $0x10] sm:$0xf]  ;;  %v2409_v1 = vld [vmem:[#allocation11] sm:$0xf]  ;;  %s2312_s0 = smov 127  }
  0x57   :  { %s2052_s22 = sld [smem:[#allocation7 + $0x3]]  ;;  %v2411_v3 = vld [vmem:[#allocation12] sm:$0xf]  ;;  %v2413_v4 = vld [vmem:[#allocation11 + $0x8] sm:$0xf]  ;;  %s2054_s1 = sld [smem:[#allocation2 + $0x6]] }
  0x58   :  { %s2053_s5 = sld [smem:[#allocation8 + $0x3]]  ;;  %v2421_v10 = vld [vmem:[#allocation12 + $0x10] sm:$0xf]  ;;  %v2423_v11 = vld [vmem:[#allocation12 + $0x8] sm:$0xf]  ;;  %v2427_v12 = vadd.f32 %v2411_v3, %v2409_v1  ;;  %s2055_s3 = sld [smem:[#allocation7 + $0x6]] }
  0x59   :  { %v2435_v15 = vadd.f32 %v2423_v11, %v2413_v4  ;;  %v2443_v19 = vadd.f32 %v2421_v10, %v2407_v0  ;;  %s2056_s23 = sld [smem:[#allocation8 + $0x6]]  ;;  %s2313_s24 = smov 126   ;;  %vm144_vm0 = vcmask 1039360   ;;  %vm211_vm1 = vcmask 1031168  }
  0x5a   :  { %s2057_s25 = sld [smem:[#allocation2 + $0x9]]  ;;  %s2314_s28 = smov 110   ;;  %vm278_vm2 = vcmask 900096   ;;  %vm345_vm3 = vcmask 891904   ;;  %vm412_vm4 = vcmask 883712   ;;  %vm479_vm5 = vcmask 752640  }
  0x5b   :  { %s2058_s26 = sld [smem:[#allocation7 + $0x9]]  ;;  %s2060_s29 = sld [smem:[#allocation2 + $0xc]]  ;;  %vm546_vm6 = vcmask 744448   ;;  %vm613_vm7 = vcmask 736256   ;;  %vm1999_vm8 = vcmask 257024  }
  0x5c   :  { %v131_v2 = vstv %s2051_s21  ;;  %s2059_s27 = sld [smem:[#allocation8 + $0x9]]  ;;  %s2061_s30 = sld [smem:[#allocation7 + $0xc]] }
  0x5d   :  { %v134_v5 = vmul.f32 %v131_v2, %v2407_v0  ;;  %v132_v6 = vmul.f32 %v131_v2, %v2409_v1  ;;  %v154_v7 = vstv %s2052_s22  ;;  %v133_v9 = vmul.f32 %v131_v2, %v2413_v4  ;;  %s2062_s8 = sld [smem:[#allocation8 + $0xc]]  ;;  %s2315_s9 = smov 109  }
  0x5e   :  { %v155_v8 = vmul.f32 %v154_v7, %v2411_v3  ;;  %v157_v13 = vmul.f32 %v154_v7, %v2421_v10  ;;  %v156_v14 = vmul.f32 %v154_v7, %v2423_v11  ;;  %v176_v16 = vstv %s2053_s5  ;;  %s2063_s10 = sld [smem:[#allocation2 + $0xf]]  ;;  %s2316_s12 = smov 108  }
  0x5f   :  { %142 = vrot.lane.b32.xlu1 %v134_v5, %s2312_s0  ;;  %138 = vrot.lane.b32.xlu0 %v132_v6, %s2312_s0  ;;  %v178_v17 = vmul.f32 %v176_v16, %v2435_v15  ;;  %v177_v18 = vmul.f32 %v176_v16, %v2427_v12  ;;  %v198_v20 = vstv %s2054_s1  ;;  %v179_v22 = vmul.f32 %v176_v16, %v2443_v19  ;;  %s2064_s2 = sld [smem:[#allocation7 + $0xf]]  ;;  %s2066_s13 = sld [smem:[#allocation2 + $0x12]] }
  0x60   :  { %v199_v21 = vmul.f32 %v198_v20, %v2409_v1  ;;  %v201_v23 = vmul.f32 %v198_v20, %v2407_v0  ;;  %v200_v24 = vmul.f32 %v198_v20, %v2413_v4  ;;  %v221_v25 = vstv %s2055_s3  ;;  %s2065_s11 = sld [smem:[#allocation8 + $0xf]]  ;;  %s2067_s14 = sld [smem:[#allocation7 + $0x12]] }
  0x61   :  { %v223_v26 = vmul.f32 %v221_v25, %v2423_v11  ;;  %v222_v27 = vmul.f32 %v221_v25, %v2411_v3  ;;  %v243_v28 = vstv %s2056_s23  ;;  %v224_v30 = vmul.f32 %v221_v25, %v2421_v10  ;;  %s2068_s15 = sld [smem:[#allocation8 + $0x12]]  ;;  %s2317_s16 = smov 92  }
  0x62   :  { %v244_v29 = vmul.f32 %v243_v28, %v2427_v12  ;;  %v246_v31 = vmul.f32 %v243_v28, %v2443_v19  ;;  %v245_v32 = vmul.f32 %v243_v28, %v2435_v15  ;;  %v265_v33 = vstv %s2057_s25  ;;  %s2069_s17 = sld [smem:[#allocation2 + $0x15]]  ;;  %s2318_s4 = smov 91  }
  0x63   :  { %161 = vrot.lane.b32.xlu1 %v155_v8, %s2312_s0  ;;  %140 = vrot.lane.b32.xlu0 %v133_v9, %s2312_s0  ;;  %v267_v34 = vmul.f32 %v265_v33, %v2413_v4  ;;  %v266_v35 = vmul.f32 %v265_v33, %v2409_v1  ;;  %v288_v36 = vstv %s2058_s26  ;;  %v268_v38 = vmul.f32 %v265_v33, %v2407_v0  ;;  %s2070_s18 = sld [smem:[#allocation7 + $0x15]]  ;;  %s2072_s20 = sld [smem:[#allocation2 + $0x18]] }
  0x64   :  { %v289_v37 = vmul.f32 %v288_v36, %v2411_v3  ;;  %v291_v39 = vmul.f32 %v288_v36, %v2421_v10  ;;  %v290_v40 = vmul.f32 %v288_v36, %v2423_v11  ;;  %v310_v41 = vstv %s2059_s27  ;;  %s2071_s19 = sld [smem:[#allocation8 + $0x15]]  ;;  %s2073_s21 = sld [smem:[#allocation7 + $0x18]] }
  0x65   :  { %v312_v42 = vmul.f32 %v310_v41, %v2435_v15  ;;  %v311_v43 = vmul.f32 %v310_v41, %v2427_v12  ;;  %v332_v44 = vstv %s2060_s29  ;;  %v313_v46 = vmul.f32 %v310_v41, %v2443_v19  ;;  %s2074_s22 = sld [smem:[#allocation8 + $0x18]]  ;;  %s2319_s5 = smov 90  }
  0x66   :  { %v333_v45 = vmul.f32 %v332_v44, %v2409_v1  ;;  %v335_v47 = vmul.f32 %v332_v44, %v2407_v0  ;;  %v334_v48 = vmul.f32 %v332_v44, %v2413_v4  ;;  %v355_v49 = vstv %s2061_s30  ;;  %s2078_s1 = sld [smem:[#allocation2 + $0x4]]  ;;  %s2081_s25 = sld [smem:[#allocation2 + $0x7]] }
  0x67   :  { %165 = vrot.lane.b32.xlu1 %v157_v13, %s2312_s0  ;;  %163 = vrot.lane.b32.xlu0 %v156_v14, %s2312_s0  ;;  %v357_v50 = vmul.f32 %v355_v49, %v2423_v11  ;;  %v356_v51 = vmul.f32 %v355_v49, %v2411_v3  ;;  %v377_v52 = vstv %s2062_s8  ;;  %v358_v54 = vmul.f32 %v355_v49, %v2421_v10  ;;  %s2079_s3 = sld [smem:[#allocation7 + $0x4]]  ;;  %s2082_s26 = sld [smem:[#allocation7 + $0x7]] }
  0x68   :  { %v378_v53 = vmul.f32 %v377_v52, %v2427_v12  ;;  %v380_v55 = vmul.f32 %v377_v52, %v2443_v19  ;;  %v379_v56 = vmul.f32 %v377_v52, %v2435_v15  ;;  %v399_v57 = vstv %s2063_s10  ;;  %s2080_s23 = sld [smem:[#allocation8 + $0x4]]  ;;  %s2083_s27 = sld [smem:[#allocation8 + $0x7]] }
  0x69   :  { %v401_v58 = vmul.f32 %v399_v57, %v2413_v4  ;;  %v400_v59 = vmul.f32 %v399_v57, %v2409_v1  ;;  %v422_v60 = vstv %s2064_s2  ;;  %v402_v62 = vmul.f32 %v399_v57, %v2407_v0  ;;  %s2084_s29 = sld [smem:[#allocation2 + $0xa]]  ;;  %s2087_s10 = sld [smem:[#allocation2 + $0xd]] }
  0x6a   :  { %v423_v61 = vmul.f32 %v422_v60, %v2411_v3  ;;  %v425_v63 = vmul.f32 %v422_v60, %v2421_v10  ;;  %v424_v2 = vmul.f32 %v422_v60, %v2423_v11  ;;  %v444_v5 = vstv %s2065_s11  ;;  %s2085_s30 = sld [smem:[#allocation7 + $0xa]]  ;;  %s2088_s2 = sld [smem:[#allocation7 + $0xd]] }
  0x6b   :  { %185 = vrot.lane.b32.xlu1 %v178_v17, %s2312_s0  ;;  %183 = vrot.lane.b32.xlu0 %v177_v18, %s2312_s0  ;;  %v446_v6 = vmul.f32 %v444_v5, %v2435_v15  ;;  %v445_v7 = vmul.f32 %v444_v5, %v2427_v12  ;;  %v466_v8 = vstv %s2066_s13  ;;  %v447_v13 = vmul.f32 %v444_v5, %v2443_v19  ;;  %s2086_s8 = sld [smem:[#allocation8 + $0xa]]  ;;  %s2089_s11 = sld [smem:[#allocation8 + $0xd]] }
  0x6c   :  { %v467_v9 = vmul.f32 %v466_v8, %v2409_v1  ;;  %v469_v14 = vmul.f32 %v466_v8, %v2407_v0  ;;  %v468_v16 = vmul.f32 %v466_v8, %v2413_v4  ;;  %v489_v17 = vstv %s2067_s14  ;;  %s2090_s13 = sld [smem:[#allocation2 + $0x10]] }
  0x6d   :  { %v491_v18 = vmul.f32 %v489_v17, %v2423_v11  ;;  %v490_v20 = vmul.f32 %v489_v17, %v2411_v3  ;;  %v645_v52 = vstv %s2074_s22  ;;  %s2091_s14 = sld [smem:[#allocation7 + $0x10]]  ;;  %s2098_s22 = sld [smem:[#allocation8 + $0x16]] }
  0x6f   :  { %205 = vrot.lane.b32.xlu1 %v199_v21, %s2313_s24  ;;  %187 = vrot.lane.b32.xlu0 %v179_v22, %s2312_s0  ;;  %v511_v21 = vstv %s2068_s15  ;;  %s2092_s15 = sld [smem:[#allocation8 + $0x10]] }
  0x70   :  { %v512_v22 = vmul.f32 %v511_v21, %v2427_v12  ;;  %v513_v25 = vmul.f32 %v511_v21, %v2435_v15 }
  0x73   :  { %209 = vrot.lane.b32.xlu1 %v201_v23, %s2313_s24  ;;  %207 = vrot.lane.b32.xlu0 %v200_v24, %s2313_s24  ;;  %v492_v23 = vmul.f32 %v489_v17, %v2421_v10  ;;  %v514_v24 = vmul.f32 %v511_v21, %v2443_v19 }
  0x77   :  { %230 = vrot.lane.b32.xlu1 %v223_v26, %s2313_s24  ;;  %228 = vrot.lane.b32.xlu0 %v222_v27, %s2313_s24  ;;  %v533_v26 = vstv %s2069_s17  ;;  %s2093_s17 = sld [smem:[#allocation2 + $0x13]] }
  0x78   :  { %v535_v27 = vmul.f32 %v533_v26, %v2413_v4  ;;  %v534_v28 = vmul.f32 %v533_v26, %v2409_v1 }
  0x7b   :  { %250 = vrot.lane.b32.xlu1 %v244_v29, %s2313_s24  ;;  %232 = vrot.lane.b32.xlu0 %v224_v30, %s2313_s24  ;;  %v556_v29 = vstv %s2070_s18  ;;  %s2094_s18 = sld [smem:[#allocation7 + $0x13]] }
  0x7c   :  { %v557_v30 = vmul.f32 %v556_v29, %v2411_v3  ;;  %v558_v33 = vmul.f32 %v556_v29, %v2423_v11 }
  0x7f   :  { %254 = vrot.lane.b32.xlu1 %v246_v31, %s2313_s24  ;;  %252 = vrot.lane.b32.xlu0 %v245_v32, %s2313_s24  ;;  %v536_v31 = vmul.f32 %v533_v26, %v2407_v0  ;;  %v559_v32 = vmul.f32 %v556_v29, %v2421_v10 }
  0x83   :  { %274 = vrot.lane.b32.xlu1 %v267_v34, %s2314_s28  ;;  %272 = vrot.lane.b32.xlu0 %v266_v35, %s2314_s28  ;;  %v578_v34 = vstv %s2071_s19  ;;  %s2095_s19 = sld [smem:[#allocation8 + $0x13]] }
  0x87   :  { %295 = vrot.lane.b32.xlu1 %v289_v37, %s2314_s28  ;;  %276 = vrot.lane.b32.xlu0 %v268_v38, %s2314_s28  ;;  %v580_v37 = vmul.f32 %v578_v34, %v2435_v15  ;;  %v579_v38 = vmul.f32 %v578_v34, %v2427_v12 }
  0x8b   :  { %299 = vrot.lane.b32.xlu1 %v291_v39, %s2314_s28  ;;  %297 = vrot.lane.b32.xlu0 %v290_v40, %s2314_s28  ;;  %v600_v39 = vstv %s2072_s20  ;;  %s2096_s20 = sld [smem:[#allocation2 + $0x16]] }
  0x8f   :  { %319 = vrot.lane.b32.xlu1 %v312_v42, %s2314_s28  ;;  %317 = vrot.lane.b32.xlu0 %v311_v43, %s2314_s28  ;;  %v601_v42 = vmul.f32 %v600_v39, %v2409_v1  ;;  %v581_v43 = vmul.f32 %v578_v34, %v2443_v19 }
  0x93   :  { %339 = vrot.lane.b32.xlu1 %v333_v45, %s2315_s9  ;;  %321 = vrot.lane.b32.xlu0 %v313_v46, %s2314_s28  ;;  %v603_v46 = vmul.f32 %v600_v39, %v2407_v0 }
  0x97   :  { %343 = vrot.lane.b32.xlu1 %v335_v47, %s2315_s9  ;;  %341 = vrot.lane.b32.xlu0 %v334_v48, %s2315_s9  ;;  %v602_v47 = vmul.f32 %v600_v39, %v2413_v4  ;;  %v623_v48 = vstv %s2073_s21  ;;  %v646_v4 = vmul.f32 %v645_v52, %v2427_v12  ;;  %s2097_s21 = sld [smem:[#allocation7 + $0x16]] }
  0x9b   :  { %364 = vrot.lane.b32.xlu1 %v357_v50, %s2315_s9  ;;  %362 = vrot.lane.b32.xlu0 %v356_v51, %s2315_s9  ;;  %v625_v50 = vmul.f32 %v623_v48, %v2423_v11  ;;  %v624_v51 = vmul.f32 %v623_v48, %v2411_v3  ;;  %v2591_v11 = vld [vmem:[#allocation11] sm:$0x1e] }
  0x9f   :  { %384 = vrot.lane.b32.xlu1 %v378_v53, %s2315_s9  ;;  %366 = vrot.lane.b32.xlu0 %v358_v54, %s2315_s9  ;;  %v626_v54 = vmul.f32 %v623_v48, %v2421_v10 }
  0xa3   :  { %388 = vrot.lane.b32.xlu1 %v380_v55, %s2315_s9  ;;  %386 = vrot.lane.b32.xlu0 %v379_v56, %s2315_s9  ;;  %v2589_v55 = vld [vmem:[#allocation11 + $0x8] sm:$0x1e]  ;;  %v727_v56 = vstv %s2078_s1  ;;  %s2099_s1 = sld [smem:[#allocation2 + $0x19]] }
  0xa4   :  { %v729_v60 = vmul.f32 %v727_v56, %v2589_v55  ;;  %v728_v10 = vmul.f32 %v727_v56, %v2591_v11 }
  0xa7   :  { %408 = vrot.lane.b32.xlu1 %v401_v58, %s2316_s12  ;;  %406 = vrot.lane.b32.xlu0 %v400_v59, %s2316_s12  ;;  %v648_v58 = vmul.f32 %v645_v52, %v2443_v19  ;;  %v647_v59 = vmul.f32 %v645_v52, %v2435_v15 }
  0xab   :  { %429 = vrot.lane.b32.xlu1 %v423_v61, %s2316_s12  ;;  %410 = vrot.lane.b32.xlu0 %v402_v62, %s2316_s12  ;;  %v2603_v61 = vld [vmem:[#allocation12] sm:$0x1e]  ;;  %v752_v62 = vstv %s2079_s3  ;;  %s2100_s3 = sld [smem:[#allocation7 + $0x19]] }
  0xac   :  { %v753_v8 = vmul.f32 %v752_v62, %v2603_v61 }
  0xae   :  { %v759_v21 = vrot.slane %v753_v8, 1 }
  0xaf   :  { %433 = vrot.lane.b32.xlu1 %v425_v63, %s2316_s12  ;;  %431 = vrot.lane.b32.xlu0 %v424_v2, %s2316_s12  ;;  %v2605_v63 = vld [vmem:[#allocation11 + $0x10] sm:$0x1e] }
  0xb3   :  { %453 = vrot.lane.b32.xlu1 %v446_v6, %s2316_s12  ;;  %451 = vrot.lane.b32.xlu0 %v445_v7, %s2316_s12  ;;  %v735_v6 = vrot.slane %v729_v60, 1  ;;  %v734_v7 = vrot.slane %v728_v10, 1 }
  0xb7   :  { %473 = vrot.lane.b32.xlu1 %v467_v9, %s2317_s16  ;;  %455 = vrot.lane.b32.xlu0 %v447_v13, %s2316_s12  ;;  %v730_v9 = vmul.f32 %v727_v56, %v2605_v63  ;;  %v2615_v13 = vld [vmem:[#allocation12 + $0x10] sm:$0x1e] }
  0xbb   :  { %477 = vrot.lane.b32.xlu1 %v469_v14, %s2317_s16  ;;  %475 = vrot.lane.b32.xlu0 %v468_v16, %s2317_s16  ;;  %v2617_v14 = vld [vmem:[#allocation12 + $0x8] sm:$0x1e] }
  0xbf   :  { %498 = vrot.lane.b32.xlu1 %v491_v18, %s2317_s16  ;;  %496 = vrot.lane.b32.xlu0 %v490_v20, %s2317_s16  ;;  %v755_v18 = vmul.f32 %v752_v62, %v2615_v13  ;;  %v754_v20 = vmul.f32 %v752_v62, %v2617_v14  ;;  %v852_v62 = vstv %s2083_s27  ;;  %s2879_s27 = sld [smem:[#allocation7]] }
  0xc1   :  { %v760_v29 = vrot.slane %v754_v20, 1 }
  0xc3   :  { %518 = vrot.lane.b32.xlu1 %v512_v22, %s2317_s16  ;;  %500 = vrot.lane.b32.xlu0 %v492_v23, %s2317_s16  ;;  %v736_v22 = vrot.slane %v730_v9, 1  ;;  %v2629_v23 = vadd.f32 %v2617_v14, %v2589_v55 }
  0xc7   :  { %522 = vrot.lane.b32.xlu1 %v514_v24, %s2317_s16  ;;  %520 = vrot.lane.b32.xlu0 %v513_v25, %s2317_s16  ;;  %v2633_v24 = vadd.f32 %v2603_v61, %v2591_v11  ;;  %v777_v25 = vstv %s2080_s23  ;;  %s2101_s23 = sld [smem:[#allocation8 + $0x19]] }
  0xcb   :  { %542 = vrot.lane.b32.xlu1 %v535_v27, %s2318_s4  ;;  %540 = vrot.lane.b32.xlu0 %v534_v28, %s2318_s4  ;;  %v761_v28 = vrot.slane %v755_v18, 1  ;;  %v853_v18 = vmul.f32 %v852_v62, %v2633_v24 }
  0xcf   :  { %563 = vrot.lane.b32.xlu1 %v557_v30, %s2318_s4  ;;  %544 = vrot.lane.b32.xlu0 %v536_v31, %s2318_s4  ;;  %v779_v30 = vmul.f32 %v777_v25, %v2629_v23  ;;  %v778_v31 = vmul.f32 %v777_v25, %v2633_v24 }
  0xd1   :  { %v2549_v35 = vpop.permute.xlu1 %142  ;;  %v2551_v36 = vpop.permute.xlu0 %138  ;;  %v784_v39 = vrot.slane %v778_v31, 1  ;;  %v877_v31 = vstv %s2084_s29  ;;  %s2881_s29 = sld [smem:[#allocation8]] }
  0xd3   :  { %567 = vrot.lane.b32.xlu1 %v559_v32, %s2318_s4  ;;  %565 = vrot.lane.b32.xlu0 %v558_v33, %s2318_s4  ;;  %v2645_v32 = vadd.f32 %v2615_v13, %v2605_v63  ;;  %v802_v33 = vstv %s2081_s25  ;;  %s103_s25 = sld [smem:[#allocation2]] }
  0xd4   :  { %v804_v52 = vmul.f32 %v802_v33, %v2589_v55 }
  0xd5   :  { %v2557_v40 = vpop.permute.xlu1 %161  ;;  %v2559_v41 = vpop.permute.xlu0 %140 }
  0xd7   :  { %587 = vrot.lane.b32.xlu1 %v580_v37, %s2318_s4  ;;  %585 = vrot.lane.b32.xlu0 %v579_v38, %s2318_s4  ;;  %v785_v38 = vrot.slane %v779_v30, 1  ;;  %v854_v30 = vmul.f32 %v852_v62, %v2629_v23 }
  0xd9   :  { %v2565_v44 = vpop.permute.xlu1 %165  ;;  %v2567_v45 = vpop.permute.xlu0 %163 }
  0xdb   :  { %607 = vrot.lane.b32.xlu1 %v601_v42, %s2319_s5  ;;  %589 = vrot.lane.b32.xlu0 %v581_v43, %s2318_s4  ;;  %v803_v42 = vmul.f32 %v802_v33, %v2591_v11  ;;  %v780_v43 = vmul.f32 %v777_v25, %v2645_v32  ;;  %v859_v25 = vrot.slane %v853_v18, 1 }
  0xdd   :  { %v2573_v49 = vpop.permute.xlu1 %185  ;;  %v2575_v1 = vpop.permute.xlu0 %183  ;;  %v809_v48 = vrot.slane %v803_v42, 1  ;;  %v860_v42 = vrot.slane %v854_v30, 1 }
  0xdf   :  { %611 = vrot.lane.b32.xlu1 %v603_v46, %s2319_s5  ;;  %609 = vrot.lane.b32.xlu0 %v602_v47, %s2319_s5 }
  0xe1   :  { %v2581_v53 = vpop.permute.xlu1 %205  ;;  %v2583_v0 = vpop.permute.xlu0 %187 }
  0xe3   :  { %632 = vrot.lane.b32.xlu1 %v625_v50, %s2319_s5  ;;  %630 = vrot.lane.b32.xlu0 %v624_v51, %s2319_s5  ;;  %v786_v50 = vrot.slane %v780_v43, 1  ;;  %v805_v51 = vmul.f32 %v802_v33, %v2605_v63  ;;  %v879_v43 = vmul.f32 %v877_v31, %v2589_v55 }
  0xe5   :  { %v2593_v3 = vpop.permute.xlu1 %209  ;;  %v2595_v57 = vpop.permute.xlu0 %207 }
  0xe7   :  { %652 = vrot.lane.b32.xlu1 %v646_v4, %s2319_s5  ;;  %634 = vrot.lane.b32.xlu0 %v626_v54, %s2319_s5  ;;  %v827_v4 = vstv %s2082_s26  ;;  %s2075_s26 = sld [smem:[#allocation2 + $0x1]] }
  0xe8   :  { %v829_v60 = vmul.f32 %v827_v4, %v2617_v14  ;;  %v828_v10 = vmul.f32 %v827_v4, %v2603_v61  ;;  %v830_v20 = vmul.f32 %v827_v4, %v2615_v13  ;;  %v885_v4 = vrot.slane %v879_v43, 1 }
  0xe9   :  { %v2607_v2 = vpop.permute.xlu1 %230  ;;  %v2609_v5 = vpop.permute.xlu0 %228  ;;  %v952_v43 = vstv %s2087_s10  ;;  %s2903_s10 = sld [smem:[#allocation7 + $0x5]] }
  0xea   :  { %v835_v8 = vrot.slane %v829_v60, 1  ;;  %v834_v9 = vrot.slane %v828_v10, 1  ;;  %v880_v60 = vmul.f32 %v877_v31, %v2605_v63 }
  0xeb   :  { %656 = vrot.lane.b32.xlu1 %v648_v58, %s2319_s5  ;;  %654 = vrot.lane.b32.xlu0 %v647_v59, %s2319_s5  ;;  %v811_v58 = vrot.slane %v805_v51, 1  ;;  %v810_v59 = vrot.slane %v804_v52, 1 }
  0xed   :  { %v2619_v16 = vpop.permute.xlu1 %250  ;;  %v2621_v17 = vpop.permute.xlu0 %232 }
  0xef   :  { %739 = vrot.lane.b32.xlu1 %v735_v6, %s2312_s0  ;;  %737 = vrot.lane.b32.xlu0 %v734_v7, %s2312_s0 }
  0xf1   :  { %v2635_v26 = vpop.permute.xlu1 %254  ;;  %v2637_v27 = vpop.permute.xlu0 %252 }
  0xf3   :  { %762 = vrot.lane.b32.xlu1 %v759_v21, %s2312_s0  ;;  %741 = vrot.lane.b32.xlu0 %v736_v22, %s2312_s0 }
  0xf5   :  { %v2647_v34 = vpop.permute.xlu1 %274  ;;  %v2649_v37 = vpop.permute.xlu0 %272 }
  0xf7   :  { %766 = vrot.lane.b32.xlu1 %v761_v28, %s2312_s0  ;;  %764 = vrot.lane.b32.xlu0 %v760_v29, %s2312_s0  ;;  %v836_v28 = vrot.slane %v830_v20, 1  ;;  %v855_v29 = vmul.f32 %v852_v62, %v2645_v32 }
  0xf9   :  { %v2655_v46 = vpop.permute.xlu1 %295  ;;  %v2657_v47 = vpop.permute.xlu0 %276 }
  0xfb   :  { %789 = vrot.lane.b32.xlu1 %v785_v38, %s2312_s0  ;;  %787 = vrot.lane.b32.xlu0 %v784_v39, %s2312_s0  ;;  %v861_v39 = vrot.slane %v855_v29, 1 }
  0xfd   :  { %v2663_v54 = vpop.permute.xlu1 %299  ;;  %v2665_v56 = vpop.permute.xlu0 %297 }
  0xff   :  { %812 = vrot.lane.b32.xlu1 %v809_v48, %s2313_s24  ;;  %791 = vrot.lane.b32.xlu0 %v786_v50, %s2312_s0  ;;  %v878_v48 = vmul.f32 %v877_v31, %v2591_v11  ;;  %v902_v50 = vstv %s2085_s30  ;;  %s2891_s30 = sld [smem:[#allocation2 + $0x5]] }
 0x100   :  { %v905_v18 = vmul.f32 %v902_v50, %v2615_v13  ;;  %v904_v20 = vmul.f32 %v902_v50, %v2617_v14 }
 0x101   :  { %v2671_v6 = vpop.permute.xlu1 %319  ;;  %v2673_v7 = vpop.permute.xlu0 %317 }
 0x102   :  { %v911_v30 = vrot.slane %v905_v18, 1  ;;  %v910_v31 = vrot.slane %v904_v20, 1 }
 0x103   :  { %816 = vrot.lane.b32.xlu1 %v811_v58, %s2313_s24  ;;  %814 = vrot.lane.b32.xlu0 %v810_v59, %s2313_s24  ;;  %v884_v58 = vrot.slane %v878_v48, 1  ;;  %v903_v59 = vmul.f32 %v902_v50, %v2603_v61 }
 0x105   :  { %v2679_v21 = vpop.permute.xlu1 %339  ;;  %v2681_v22 = vpop.permute.xlu0 %321 }
 0x106   :  { %3929 = vst [vmem:[#allocation24_spill] sm:$0xff] %v2679_v21 }
 0x107   :  { %839 = vrot.lane.b32.xlu1 %v835_v8, %s2313_s24  ;;  %837 = vrot.lane.b32.xlu0 %v834_v9, %s2313_s24  ;;  %v909_v8 = vrot.slane %v903_v59, 1  ;;  %v886_v9 = vrot.slane %v880_v60, 1  ;;  %v953_v59 = vmul.f32 %v952_v43, %v2591_v11 }
 0x109   :  { %v2687_v33 = vpop.permute.xlu1 %343  ;;  %v2689_v38 = vpop.permute.xlu0 %341  ;;  %v959_v18 = vrot.slane %v953_v59, 1  ;;  %v1002_v59 = vstv %s2089_s11  ;;  %s2969_s11 = sld [smem:[#allocation8 + $0x5]] }
 0x10a   :  { %3930 = vst [vmem:[#allocation25_spill] sm:$0xff] %v2687_v33 }
 0x10b   :  { %862 = vrot.lane.b32.xlu1 %v859_v25, %s2313_s24  ;;  %841 = vrot.lane.b32.xlu0 %v836_v28, %s2313_s24  ;;  %v927_v25 = vstv %s2086_s8  ;;  %s2893_s8 = sld [smem:[#allocation7 + $0x1]] }
 0x10c   :  { %v930_v60 = vmul.f32 %v927_v25, %v2645_v32 }
 0x10d   :  { %v2695_v51 = vpop.permute.xlu1 %364  ;;  %v2697_v52 = vpop.permute.xlu0 %362 }
 0x10e   :  { %3931 = vst [vmem:[#allocation26_spill] sm:$0xff] %v2695_v51  ;;  %3932 = vst [vmem:[#allocation27_spill] sm:$0xff] %v2697_v52  ;;  %v936_v20 = vrot.slane %v930_v60, 1 }
 0x10f   :  { %866 = vrot.lane.b32.xlu1 %v861_v39, %s2313_s24  ;;  %864 = vrot.lane.b32.xlu0 %v860_v42, %s2313_s24  ;;  %v929_v39 = vmul.f32 %v927_v25, %v2629_v23  ;;  %v928_v42 = vmul.f32 %v927_v25, %v2633_v24 }
 0x111   :  { %v2703_v10 = vpop.permute.xlu1 %384  ;;  %v2705_v62 = vpop.permute.xlu0 %366  ;;  %v690_v33 = vstv %s2893_s8  ;;  %s3743_s8 = sld [smem:[#allocation7 + $0x1a]] }
 0x112   :  { %3933 = vst [vmem:[#allocation28_spill] sm:$0xff] %v2703_v10  ;;  %3934 = vst [vmem:[#allocation29_spill] sm:$0xff] %v2705_v62  ;;  %v123_v62 = vstv %s2881_s29  ;;  %s3689_s29 = sld [smem:[#allocation2 + $0x1a]] }
 0x113   :  { %889 = vrot.lane.b32.xlu1 %v885_v4, %s2314_s28  ;;  %887 = vrot.lane.b32.xlu0 %v884_v58, %s2314_s28  ;;  %v935_v4 = vrot.slane %v929_v39, 1  ;;  %v934_v58 = vrot.slane %v928_v42, 1  ;;  %v977_v39 = vstv %s2088_s2  ;;  %s2907_s2 = sld [smem:[#allocation8 + $0x1]] }
 0x115   :  { %v2711_v28 = vpop.permute.xlu1 %388  ;;  %v2713_v29 = vpop.permute.xlu0 %386 }
 0x116   :  { %3935 = vst [vmem:[#allocation30_spill] sm:$0xff] %v2711_v28  ;;  %3936 = vst [vmem:[#allocation31_spill] sm:$0xff] %v2713_v29  ;;  %v2148_v28 = vld [vmem:[#allocation11] sm:$0xf]  ;;  %v112_v29 = vstv %s2879_s27  ;;  %s3678_s27 = sld [smem:[#allocation7 + $0x2]] }
 0x117   :  { %912 = vrot.lane.b32.xlu1 %v909_v8, %s2314_s28  ;;  %891 = vrot.lane.b32.xlu0 %v886_v9, %s2314_s28 }
 0x119   :  { %v2719_v48 = vpop.permute.xlu1 %408  ;;  %v2721_v50 = vpop.permute.xlu0 %406 }
 0x11a   :  { %3937 = vst [vmem:[#allocation32_spill] sm:$0xff] %v2719_v48  ;;  %3938 = vst [vmem:[#allocation33_spill] sm:$0xff] %v2721_v50 }
 0x11b   :  { %916 = vrot.lane.b32.xlu1 %v911_v30, %s2314_s28  ;;  %914 = vrot.lane.b32.xlu0 %v910_v31, %s2314_s28  ;;  %v955_v30 = vmul.f32 %v952_v43, %v2605_v63  ;;  %v954_v31 = vmul.f32 %v952_v43, %v2589_v55 }
 0x11d   :  { %v2727_v8 = vpop.permute.xlu1 %429  ;;  %v2729_v9 = vpop.permute.xlu0 %410  ;;  %v961_v25 = vrot.slane %v955_v30, 1  ;;  %v980_v30 = vmul.f32 %v977_v39, %v2615_v13 }
 0x11e   :  { %3939 = vst [vmem:[#allocation34_spill] sm:$0xff] %v2727_v8  ;;  %3940 = vst [vmem:[#allocation35_spill] sm:$0xff] %v2729_v9  ;;  %v960_v8 = vrot.slane %v954_v31, 1 }
 0x11f   :  { %939 = vrot.lane.b32.xlu1 %v935_v4, %s2314_s28  ;;  %937 = vrot.lane.b32.xlu0 %v934_v58, %s2314_s28  ;;  %v979_v4 = vmul.f32 %v977_v39, %v2617_v14  ;;  %v978_v58 = vmul.f32 %v977_v39, %v2603_v61 }
 0x121   :  { %v2735_v42 = vpop.permute.xlu1 %433  ;;  %v2737_v50 = vpop.permute.xlu0 %431 }
 0x122   :  { %3941 = vst [vmem:[#allocation36_spill] sm:$0xff] %v2735_v42  ;;  %3942 = vst [vmem:[#allocation37_spill] sm:$0xff] %v2737_v50  ;;  %v985_v42 = vrot.slane %v979_v4, 1  ;;  %v1027_v4 = vstv %s2090_s13  ;;  %s3001_s13 = sld [smem:[#allocation2 + $0x8]] }
 0x123   :  { %962 = vrot.lane.b32.xlu1 %v959_v18, %s2315_s9  ;;  %941 = vrot.lane.b32.xlu0 %v936_v20, %s2314_s28  ;;  %v984_v18 = vrot.slane %v978_v58, 1  ;;  %v1003_v20 = vmul.f32 %v1002_v59, %v2633_v24 }
 0x125   :  { %v2743_v60 = vpop.permute.xlu1 %453  ;;  %v2745_v43 = vpop.permute.xlu0 %451 }
 0x126   :  { %3943 = vst [vmem:[#allocation38_spill] sm:$0xff] %v2743_v60  ;;  %3944 = vst [vmem:[#allocation39_spill] sm:$0xff] %v2745_v43  ;;  %v1009_v43 = vrot.slane %v1003_v20, 1  ;;  %v986_v60 = vrot.slane %v980_v30, 1  ;;  %v1052_v20 = vstv %s2091_s14  ;;  %s3066_s14 = sld [smem:[#allocation7 + $0x8]] }
 0x127   :  { %966 = vrot.lane.b32.xlu1 %v961_v25, %s2315_s9  ;;  %964 = vrot.lane.b32.xlu0 %v960_v8, %s2315_s9  ;;  %v1005_v25 = vmul.f32 %v1002_v59, %v2645_v32  ;;  %v1004_v8 = vmul.f32 %v1002_v59, %v2629_v23 }
 0x129   :  { %v2751_v31 = vpop.permute.xlu1 %473  ;;  %v2753_v50 = vpop.permute.xlu0 %455  ;;  %v1011_v39 = vrot.slane %v1005_v25, 1  ;;  %v1030_v25 = vmul.f32 %v1027_v4, %v2605_v63 }
 0x12a   :  { %3945 = vst [vmem:[#allocation40_spill] sm:$0xff] %v2751_v31  ;;  %3946 = vst [vmem:[#allocation41_spill] sm:$0xff] %v2753_v50  ;;  %v1010_v31 = vrot.slane %v1004_v8, 1 }
 0x12b   :  { %989 = vrot.lane.b32.xlu1 %v985_v42, %s2315_s9  ;;  %987 = vrot.lane.b32.xlu0 %v984_v18, %s2315_s9  ;;  %v1029_v42 = vmul.f32 %v1027_v4, %v2589_v55  ;;  %v1028_v18 = vmul.f32 %v1027_v4, %v2591_v11 }
 0x12d   :  { %v2759_v58 = vpop.permute.xlu1 %477  ;;  %v2761_v9 = vpop.permute.xlu0 %475 }
 0x12e   :  { %3947 = vst [vmem:[#allocation42_spill] sm:$0xff] %v2759_v58  ;;  %3948 = vst [vmem:[#allocation43_spill] sm:$0xff] %v2761_v9  ;;  %v1035_v58 = vrot.slane %v1029_v42, 1  ;;  %v1077_v42 = vstv %s2092_s15  ;;  %s3086_s15 = sld [smem:[#allocation8 + $0x8]] }
 0x12f   :  { %1012 = vrot.lane.b32.xlu1 %v1009_v43, %s2315_s9  ;;  %991 = vrot.lane.b32.xlu0 %v986_v60, %s2315_s9  ;;  %v1034_v43 = vrot.slane %v1028_v18, 1  ;;  %v1053_v60 = vmul.f32 %v1052_v20, %v2603_v61 }
 0x131   :  { %v2767_v30 = vpop.permute.xlu1 %498  ;;  %v2769_v59 = vpop.permute.xlu0 %496 }
 0x132   :  { %3949 = vst [vmem:[#allocation44_spill] sm:$0xff] %v2767_v30  ;;  %3950 = vst [vmem:[#allocation45_spill] sm:$0xff] %v2769_v59  ;;  %v1059_v59 = vrot.slane %v1053_v60, 1  ;;  %v1036_v30 = vrot.slane %v1030_v25, 1  ;;  %v1102_v60 = vstv %s2093_s17  ;;  %s3111_s17 = sld [smem:[#allocation2 + $0xb]] }
 0x133   :  { %1016 = vrot.lane.b32.xlu1 %v1011_v39, %s2315_s9  ;;  %1014 = vrot.lane.b32.xlu0 %v1010_v31, %s2315_s9  ;;  %v1055_v39 = vmul.f32 %v1052_v20, %v2615_v13  ;;  %v1054_v31 = vmul.f32 %v1052_v20, %v2617_v14 }
 0x135   :  { %v2775_v8 = vpop.permute.xlu1 %518  ;;  %v2777_v9 = vpop.permute.xlu0 %500  ;;  %v1061_v4 = vrot.slane %v1055_v39, 1  ;;  %v1080_v39 = vmul.f32 %v1077_v42, %v2645_v32 }
 0x136   :  { %3951 = vst [vmem:[#allocation46_spill] sm:$0xff] %v2775_v8  ;;  %3952 = vst [vmem:[#allocation47_spill] sm:$0xff] %v2777_v9  ;;  %v1060_v8 = vrot.slane %v1054_v31, 1 }
 0x137   :  { %1039 = vrot.lane.b32.xlu1 %v1035_v58, %s2316_s12  ;;  %1037 = vrot.lane.b32.xlu0 %v1034_v43, %s2316_s12  ;;  %v1079_v58 = vmul.f32 %v1077_v42, %v2629_v23  ;;  %v1078_v43 = vmul.f32 %v1077_v42, %v2633_v24 }
 0x139   :  { %v2783_v18 = vpop.permute.xlu1 %522  ;;  %v2785_v50 = vpop.permute.xlu0 %520 }
 0x13a   :  { %3953 = vst [vmem:[#allocation48_spill] sm:$0xff] %v2783_v18  ;;  %3954 = vst [vmem:[#allocation49_spill] sm:$0xff] %v2785_v50  ;;  %v1085_v18 = vrot.slane %v1079_v58, 1  ;;  %v1127_v58 = vstv %s2094_s18  ;;  %s3127_s18 = sld [smem:[#allocation7 + $0xb]] }
 0x13b   :  { %1062 = vrot.lane.b32.xlu1 %v1059_v59, %s2316_s12  ;;  %1041 = vrot.lane.b32.xlu0 %v1036_v30, %s2316_s12  ;;  %v1084_v59 = vrot.slane %v1078_v43, 1  ;;  %v1103_v30 = vmul.f32 %v1102_v60, %v2591_v11 }
 0x13d   :  { %v2791_v25 = vpop.permute.xlu1 %542  ;;  %v2793_v20 = vpop.permute.xlu0 %540 }
 0x13e   :  { %3955 = vst [vmem:[#allocation50_spill] sm:$0xff] %v2791_v25  ;;  %3956 = vst [vmem:[#allocation51_spill] sm:$0xff] %v2793_v20  ;;  %v1109_v20 = vrot.slane %v1103_v30, 1  ;;  %v1086_v25 = vrot.slane %v1080_v39, 1  ;;  %v1152_v30 = vstv %s2095_s19  ;;  %s3147_s19 = sld [smem:[#allocation8 + $0xb]] }
 0x13f   :  { %1066 = vrot.lane.b32.xlu1 %v1061_v4, %s2316_s12  ;;  %1064 = vrot.lane.b32.xlu0 %v1060_v8, %s2316_s12  ;;  %v1105_v4 = vmul.f32 %v1102_v60, %v2605_v63  ;;  %v1104_v8 = vmul.f32 %v1102_v60, %v2589_v55 }
 0x141   :  { %v2799_v31 = vpop.permute.xlu1 %563  ;;  %v2801_v50 = vpop.permute.xlu0 %544  ;;  %v1111_v42 = vrot.slane %v1105_v4, 1  ;;  %v1130_v4 = vmul.f32 %v1127_v58, %v2615_v13 }
 0x142   :  { %3957 = vst [vmem:[#allocation52_spill] sm:$0xff] %v2799_v31  ;;  %3958 = vst [vmem:[#allocation53_spill] sm:$0xff] %v2801_v50  ;;  %v1110_v31 = vrot.slane %v1104_v8, 1 }
 0x143   :  { %1089 = vrot.lane.b32.xlu1 %v1085_v18, %s2316_s12  ;;  %1087 = vrot.lane.b32.xlu0 %v1084_v59, %s2316_s12  ;;  %v1129_v18 = vmul.f32 %v1127_v58, %v2617_v14  ;;  %v1128_v59 = vmul.f32 %v1127_v58, %v2603_v61 }
 0x145   :  { %v2807_v43 = vpop.permute.xlu1 %567  ;;  %v2809_v9 = vpop.permute.xlu0 %565 }
 0x146   :  { %3959 = vst [vmem:[#allocation54_spill] sm:$0xff] %v2807_v43  ;;  %3960 = vst [vmem:[#allocation55_spill] sm:$0xff] %v2809_v9  ;;  %v1135_v43 = vrot.slane %v1129_v18, 1  ;;  %v1177_v18 = vstv %s2096_s20  ;;  %s3192_s20 = sld [smem:[#allocation7 + $0xe]] }
 0x147   :  { %1112 = vrot.lane.b32.xlu1 %v1109_v20, %s2317_s16  ;;  %1091 = vrot.lane.b32.xlu0 %v1086_v25, %s2316_s12  ;;  %v1134_v20 = vrot.slane %v1128_v59, 1  ;;  %v1153_v25 = vmul.f32 %v1152_v30, %v2633_v24 }
 0x149   :  { %v2815_v39 = vpop.permute.xlu1 %587  ;;  %v2817_v60 = vpop.permute.xlu0 %585 }
 0x14a   :  { %3961 = vst [vmem:[#allocation56_spill] sm:$0xff] %v2815_v39  ;;  %3962 = vst [vmem:[#allocation57_spill] sm:$0xff] %v2817_v60  ;;  %v1159_v60 = vrot.slane %v1153_v25, 1  ;;  %v1136_v39 = vrot.slane %v1130_v4, 1  ;;  %v1202_v25 = vstv %s2097_s21  ;;  %s3202_s21 = sld [smem:[#allocation8 + $0xe]] }
 0x14b   :  { %1116 = vrot.lane.b32.xlu1 %v1111_v42, %s2317_s16  ;;  %1114 = vrot.lane.b32.xlu0 %v1110_v31, %s2317_s16  ;;  %v1155_v42 = vmul.f32 %v1152_v30, %v2645_v32  ;;  %v1154_v31 = vmul.f32 %v1152_v30, %v2629_v23 }
 0x14d   :  { %v2823_v8 = vpop.permute.xlu1 %607  ;;  %v2825_v9 = vpop.permute.xlu0 %589  ;;  %v1161_v58 = vrot.slane %v1155_v42, 1  ;;  %v1180_v42 = vmul.f32 %v1177_v18, %v2605_v63 }
 0x14e   :  { %3963 = vst [vmem:[#allocation58_spill] sm:$0xff] %v2823_v8  ;;  %3964 = vst [vmem:[#allocation59_spill] sm:$0xff] %v2825_v9  ;;  %v1160_v9 = vrot.slane %v1154_v31, 1 }
 0x14f   :  { %1139 = vrot.lane.b32.xlu1 %v1135_v43, %s2317_s16  ;;  %1137 = vrot.lane.b32.xlu0 %v1134_v20, %s2317_s16  ;;  %v1179_v43 = vmul.f32 %v1177_v18, %v2589_v55  ;;  %v1178_v20 = vmul.f32 %v1177_v18, %v2591_v11 }
 0x151   :  { %v2831_v59 = vpop.permute.xlu1 %611  ;;  %v2833_v50 = vpop.permute.xlu0 %609 }
 0x152   :  { %3965 = vst [vmem:[#allocation60_spill] sm:$0xff] %v2831_v59  ;;  %3966 = vst [vmem:[#allocation61_spill] sm:$0xff] %v2833_v50  ;;  %v1185_v59 = vrot.slane %v1179_v43, 1  ;;  %v1227_v43 = vstv %s2098_s22  ;;  %s3278_s22 = sld [smem:[#allocation2 + $0x11]] }
 0x153   :  { %1162 = vrot.lane.b32.xlu1 %v1159_v60, %s2317_s16  ;;  %1141 = vrot.lane.b32.xlu0 %v1136_v39, %s2317_s16  ;;  %v1184_v60 = vrot.slane %v1178_v20, 1  ;;  %v1203_v39 = vmul.f32 %v1202_v25, %v2603_v61 }
 0x155   :  { %v2839_v4 = vpop.permute.xlu1 %632  ;;  %v2841_v30 = vpop.permute.xlu0 %630 }
 0x156   :  { %3967 = vst [vmem:[#allocation62_spill] sm:$0xff] %v2839_v4  ;;  %3968 = vst [vmem:[#allocation63_spill] sm:$0xff] %v2841_v30  ;;  %v1209_v30 = vrot.slane %v1203_v39, 1  ;;  %v1186_v4 = vrot.slane %v1180_v42, 1  ;;  %v1252_v39 = vstv %s2099_s1  ;;  %s3585_s1 = sld [smem:[#allocation2 + $0x14]] }
 0x157   :  { %1166 = vrot.lane.b32.xlu1 %v1161_v58, %s2317_s16  ;;  %1164 = vrot.lane.b32.xlu0 %v1160_v9, %s2317_s16  ;;  %v1205_v58 = vmul.f32 %v1202_v25, %v2615_v13  ;;  %v1204_v9 = vmul.f32 %v1202_v25, %v2617_v14 }
 0x159   :  { %v2847_v31 = vpop.permute.xlu1 %652  ;;  %v2849_v8 = vpop.permute.xlu0 %634  ;;  %v1211_v18 = vrot.slane %v1205_v58, 1  ;;  %v1230_v58 = vmul.f32 %v1227_v43, %v2645_v32 }
 0x15a   :  { %3969 = vst [vmem:[#allocation64_spill] sm:$0xff] %v2847_v31  ;;  %3970 = vst [vmem:[#allocation65_spill] sm:$0xff] %v2849_v8  ;;  %v1210_v31 = vrot.slane %v1204_v9, 1  ;;  %v2146_v8 = vld [vmem:[#allocation11 + $0x10] sm:$0xf] }
 0x15b   :  { %1189 = vrot.lane.b32.xlu1 %v1185_v59, %s2318_s4  ;;  %1187 = vrot.lane.b32.xlu0 %v1184_v60, %s2318_s4  ;;  %v1229_v59 = vmul.f32 %v1227_v43, %v2629_v23  ;;  %v1228_v60 = vmul.f32 %v1227_v43, %v2633_v24 }
 0x15d   :  { %v2855_v20 = vpop.permute.xlu1 %656  ;;  %v2857_v50 = vpop.permute.xlu0 %654 }
 0x15e   :  { %3971 = vst [vmem:[#allocation66_spill] sm:$0xff] %v2855_v20  ;;  %3972 = vst [vmem:[#allocation67_spill] sm:$0xff] %v2857_v50  ;;  %v1235_v20 = vrot.slane %v1229_v59, 1  ;;  %v1254_v59 = vmul.f32 %v1252_v39, %v2589_v55 }
 0x15f   :  { %1212 = vrot.lane.b32.xlu1 %v1209_v30, %s2318_s4  ;;  %1191 = vrot.lane.b32.xlu0 %v1186_v4, %s2318_s4  ;;  %v1234_v30 = vrot.slane %v1228_v60, 1  ;;  %v1253_v4 = vmul.f32 %v1252_v39, %v2591_v11  ;;  %v1277_v60 = vstv %s2100_s3  ;;  %s2121_s3 = sld [smem:[#allocation7 + $0x14]] }
 0x161   :  { %v2863_v42 = vpop.permute.xlu1 %739  ;;  %v2865_v25 = vpop.permute.xlu0 %737 }
 0x162   :  { %3973 = vst [vmem:[#allocation68_spill] sm:$0xff] %v2863_v42  ;;  %3974 = vst [vmem:[#allocation69_spill] sm:$0xff] %v2865_v25  ;;  %v1255_v42 = vmul.f32 %v1252_v39, %v2605_v63  ;;  %v1302_v39 = vstv %s2101_s23  ;;  %s2123_s23 = sld [smem:[#allocation2 + $0x17]] }
 0x163   :  { %1216 = vrot.lane.b32.xlu1 %v1211_v18, %s2318_s4  ;;  %1214 = vrot.lane.b32.xlu0 %v1210_v31, %s2318_s4  ;;  %v1259_v31 = vrot.slane %v1253_v4, 1  ;;  %v1236_v18 = vrot.slane %v1230_v58, 1  ;;  %v1278_v4 = vmul.f32 %v1277_v60, %v2603_v61  ;;  %v104_v58 = vstv %s103_s25  ;;  %s2102_s25 = sld [smem:[#allocation2 + $0x2]] }
 0x164   :  { %v107_v48 = vmul.f32 %v2146_v8, %v104_v58  ;;  %v105_v10 = vmul.f32 %v2148_v28, %v104_v58 }
 0x165   :  { %v2871_v9 = vpop.permute.xlu1 %762  ;;  %v2873_v50 = vpop.permute.xlu0 %741 }
 0x166   :  { %3975 = vst [vmem:[#allocation70_spill] sm:$0xff] %v2871_v9  ;;  %3976 = vst [vmem:[#allocation71_spill] sm:$0xff] %v2873_v50  ;;  %v1261_v50 = vrot.slane %v1255_v42, 1  ;;  %v1303_v42 = vmul.f32 %v1302_v39, %v2633_v24 }
 0x167   :  { %1239 = vrot.lane.b32.xlu1 %v1235_v20, %s2318_s4  ;;  %1237 = vrot.lane.b32.xlu0 %v1234_v30, %s2318_s4  ;;  %v1260_v20 = vrot.slane %v1254_v59, 1  ;;  %v1279_v30 = vmul.f32 %v1277_v60, %v2617_v14  ;;  %v1284_v59 = vrot.slane %v1278_v4, 1  ;;  %v1305_v4 = vmul.f32 %v1302_v39, %v2645_v32 }
 0x169   :  { %v2883_v43 = vpop.permute.xlu1 %766  ;;  %v2885_v9 = vpop.permute.xlu0 %764 }
 0x16a   :  { %3977 = vst [vmem:[#allocation72_spill] sm:$0xff] %v2883_v43  ;;  %3978 = vst [vmem:[#allocation73_spill] sm:$0xff] %v2885_v9  ;;  %v1280_v9 = vmul.f32 %v1277_v60, %v2615_v13 }
 0x16b   :  { %1262 = vrot.lane.b32.xlu1 %v1259_v31, %s2319_s5  ;;  %1241 = vrot.lane.b32.xlu0 %v1236_v18, %s2318_s4  ;;  %v673_v31 = vstv %s2075_s26  ;;  %v1285_v18 = vrot.slane %v1279_v30, 1  ;;  %s2124_s26 = sld [smem:[#allocation7 + $0x17]] }
 0x16c   :  { %v2914_v60 = vmul.f32 %v673_v31, %v2591_v11  ;;  %v2917_v8 = vmul.f32 %v673_v31, %v2589_v55  ;;  %v2920_v30 = vmul.f32 %v673_v31, %v2605_v63  ;;  %v1286_v28 = vrot.slane %v1280_v9, 1  ;;  %v2149_v55 = vld [vmem:[#allocation12 + $0x10] sm:$0xf]  ;;  %v2150_v63 = vld [vmem:[#allocation12] sm:$0xf] }
 0x16d   :  { %v2895_v25 = vpop.permute.xlu1 %789  ;;  %v2897_v43 = vpop.permute.xlu0 %787  ;;  %v1387_v11 = vstv %s2891_s30  ;;  %v115_v52 = vmul.f32 %v2149_v55, %v112_v29  ;;  %v113_v31 = vmul.f32 %v2150_v63, %v112_v29  ;;  %v145_v9 = vsel %vm144_vm0, %v2551_v36, %v2559_v41  ;;  %s3693_s30 = sld [smem:[#allocation8 + $0x2]] }
 0x16e   :  { %3979 = vst [vmem:[#allocation74_spill] sm:$0xff] %v2895_v25  ;;  %3980 = vst [vmem:[#allocation75_spill] sm:$0xff] %v2897_v43  ;;  %v2147_v25 = vld [vmem:[#allocation11 + $0x8] sm:$0xf]  ;;  %v1311_v63 = vrot.slane %v1305_v4, 1  ;;  %v167_v4 = vsel %vm144_vm0, %v2557_v40, %v2567_v45 }
 0x16f   :  { %1266 = vrot.lane.b32.xlu1 %v1261_v50, %s2319_s5  ;;  %1264 = vrot.lane.b32.xlu0 %v1260_v20, %s2319_s5  ;;  %v106_v43 = vmul.f32 %v2147_v25, %v104_v58  ;;  %3983 = vst [vmem:[#allocation78_spill] sm:$0xff] %v2917_v8  ;;  %3984 = vst [vmem:[#allocation79_spill] sm:$0xff] %v2920_v30  ;;  %v1309_v25 = vrot.slane %v1303_v42, 1  ;;  %v1304_v58 = vmul.f32 %v1302_v39, %v2629_v23  ;;  %v2151_v42 = vld [vmem:[#allocation12 + $0x8] sm:$0xf] }
 0x170   :  { %v114_v51 = vmul.f32 %v2151_v42, %v112_v29  ;;  %v2939_v39 = vmul.f32 %v123_v62, %v2443_v19  ;;  %v2962_v29 = vmul.f32 %v690_v33, %v2603_v61  ;;  %v1412_v19 = vstv %s2903_s10  ;;  %v2967_v30 = vld [vmem:[#allocation11 + $0x10] sm:$0x3c]  ;;  %v2997_v40 = vld [vmem:[#allocation12 + $0x10] sm:$0x3c]  ;;  %s2320_s10 = smov [#allocation14]  }
 0x171   :  { %v2909_v50 = vpop.permute.xlu1 %812  ;;  %v2911_v20 = vpop.permute.xlu0 %791  ;;  %v1310_v42 = vrot.slane %v1304_v58, 1  ;;  %3990 = vst [vmem:[#allocation85_spill] sm:$0xff] %v2997_v40 }
 0x172   :  { %3981 = vst [vmem:[#allocation76_spill] sm:$0xff] %v2909_v50  ;;  %3982 = vst [vmem:[#allocation77_spill] sm:$0xff] %v2911_v20  ;;  %v2926_v50 = vld [vmem:[#allocation11 + $0x8] sm:$0x3c]  ;;  %v2929_v20 = vld [vmem:[#allocation11] sm:$0x3c] }
 0x173   :  { %1289 = vrot.lane.b32.xlu1 %v1285_v18, %s2319_s5  ;;  %1287 = vrot.lane.b32.xlu0 %v1284_v59, %s2319_s5  ;;  %v124_v18 = vmul.f32 %v123_v62, %v2427_v12  ;;  %v2936_v59 = vmul.f32 %v123_v62, %v2435_v15  ;;  %v146_v12 = vsel %vm144_vm0, %v2559_v41, %v2549_v35 }
 0x174   :  { %v1389_v36 = vmul.f32 %v1387_v11, %v2926_v50  ;;  %v1388_v15 = vmul.f32 %v1387_v11, %v2929_v20  ;;  %v2957_v41 = vadd.f32 %v2549_v35, %v107_v48  ;;  %v2977_v35 = vmul.f32 %v690_v33, %v2617_v14 }
 0x175   :  { %v2942_v21 = vpop.permute.xlu1 %816  ;;  %v2944_v55 = vpop.permute.xlu0 %814  ;;  %v189_v14 = vsel %vm144_vm0, %v2575_v1, %v2573_v49 }
 0x176   :  { %3985 = vst [vmem:[#allocation80_spill] sm:$0xff] %v2942_v21  ;;  %3986 = vst [vmem:[#allocation81_spill] sm:$0xff] %v2944_v55  ;;  %v2959_v21 = vadd.f32 %v145_v9, %v105_v10  ;;  %v2964_v55 = vld [vmem:[#allocation12] sm:$0x3c]  ;;  %v710_v10 = vstv %s2907_s2  ;;  %v1395_v58 = vrot.slane %v1389_v36, 2  ;;  %v1390_v9 = vmul.f32 %v1387_v11, %v2967_v30  ;;  %s2024_s2 = sshll.u32 %s2320_s10, 4  ;;  %s2025_s2 = int_to_ptr.vmem [resolvable:$true] %s2024_s2 }
 0x177   :  { %1312 = vrot.lane.b32.xlu1 %v1309_v25, %s2319_s5  ;;  %1291 = vrot.lane.b32.xlu0 %v1286_v28, %s2319_s5  ;;  %3987 = vst [vmem:[#allocation82_spill] sm:$0xff] %v2964_v55  ;;  %v2971_v25 = vadd.f32 %v146_v12, %v106_v43  ;;  %v2974_v28 = vmul.f32 %v690_v33, %v2615_v13  ;;  %v1394_v13 = vrot.slane %v1388_v15, 2  ;;  %v2999_v12 = vld [vmem:[#allocation12 + $0x8] sm:$0x3c]  ;;  %p2253_p7 = scmp.lt.s32.totalorder %s2025_s2, %s2025_s2 }
 0x178   :  { %v168_v43 = vsel %vm144_vm0, %v2567_v45, %v2565_v44  ;;  %v1413_v33 = vmul.f32 %v1412_v19, %v2964_v55  ;;  %3991 = vst [vmem:[#allocation86_spill] sm:$0xff] %v2999_v12  ;;  %v3005_v36 = vmul.f32 %v710_v10, %v2633_v24  ;;  %v3008_v1 = vmul.f32 %v710_v10, %v2629_v23  ;;  %v4016_v24 = vld [vmem:[#allocation41_spill] sm:$0xff] }
 0x179   :  { %v2980_v48 = vpop.permute.xlu1 %839  ;;  %v2982_v61 = vpop.permute.xlu0 %837  ;;  %v3011_v15 = vmul.f32 %v710_v10, %v2645_v32  ;;  %v172_v11 = vadd.f32 %v167_v4, %v113_v31  ;;  %v194_v45 = vadd.f32 %v189_v14, %v124_v18  ;;  %v1415_v23 = vmul.f32 %v1412_v19, %v2997_v40 }
 0x17a   :  { %3988 = vst [vmem:[#allocation83_spill] sm:$0xff] %v2980_v48  ;;  %3989 = vst [vmem:[#allocation84_spill] sm:$0xff] %v2982_v61  ;;  %v1414_v8 = vmul.f32 %v1412_v19, %v2999_v12  ;;  %v1396_v32 = vrot.slane %v1390_v9, 2  ;;  %v1437_v10 = vstv %s2969_s11  ;;  %v190_v4 = vsel %vm144_vm0, %v2573_v49, %v2583_v0  ;;  %s2321_s11 = smov [#allocation15]  }
 0x17b   :  { %1316 = vrot.lane.b32.xlu1 %v1311_v63, %s2319_s5  ;;  %1314 = vrot.lane.b32.xlu0 %v1310_v42, %s2319_s5  ;;  %v174_v63 = vadd.f32 %v2565_v44, %v115_v52  ;;  %v173_v42 = vadd.f32 %v168_v43, %v114_v51  ;;  %v1419_v44 = vrot.slane %v1413_v33, 2  ;;  %v3026_v51 = vadd.f32 %v2999_v12, %v2926_v50 }
 0x17c   :  { %v3030_v52 = vadd.f32 %v2964_v55, %v2929_v20  ;;  %v196_v43 = vadd.f32 %v2583_v0, %v2939_v39  ;;  %v234_v9 = vsel %vm211_vm1, %v2609_v5, %v2607_v2  ;;  %v235_v49 = vsel %vm211_vm1, %v2607_v2, %v2621_v17 }
 0x17d   :  { %v3015_v61 = vpop.permute.xlu1 %862  ;;  %v3017_v48 = vpop.permute.xlu0 %841  ;;  %3993 = vst [vmem:[#allocation88_spill] sm:$0xff] %v3026_v51  ;;  %v1421_v0 = vrot.slane %v1415_v23, 2  ;;  %v1420_v39 = vrot.slane %v1414_v8, 2  ;;  %v1462_v18 = vstv %s3001_s13  ;;  %v3064_v19 = vadd.f32 %v2997_v40, %v2967_v30  ;;  %s2034_s13 = sshll.u32 %s2321_s11, 4  ;;  %s2035_s13 = int_to_ptr.vmem [resolvable:$true] %s2034_s13 }
 0x17e   :  { %3992 = vst [vmem:[#allocation87_spill] sm:$0xff] %v3015_v61  ;;  %v195_v5 = vadd.f32 %v190_v4, %v2936_v59  ;;  %v219_v2 = vadd.f32 %v2593_v3, %v2957_v41  ;;  %v257_v31 = vsel %vm211_vm1, %v2637_v27, %v2635_v26  ;;  %v279_v59 = vsel %vm278_vm2, %v2649_v37, %v2647_v34 }
 0x17f   :  { %1399 = vrot.lane.b32.xlu1 %v1395_v58, %s2312_s0  ;;  %1397 = vrot.lane.b32.xlu0 %v1394_v13, %s2312_s0  ;;  %v212_v58 = vsel %vm211_vm1, %v2581_v53, %v2595_v57  ;;  %v213_v13 = vsel %vm211_vm1, %v2595_v57, %v2593_v3  ;;  %v1439_v53 = vmul.f32 %v1437_v10, %v3026_v51 }
 0x180   :  { %v1438_v57 = vmul.f32 %v1437_v10, %v3030_v52  ;;  %v217_v8 = vadd.f32 %v212_v58, %v2959_v21  ;;  %v218_v23 = vadd.f32 %v213_v13, %v2971_v25  ;;  %v240_v21 = vadd.f32 %v235_v49, %v173_v42  ;;  %v3997_v49 = vld [vmem:[#allocation25_spill] sm:$0xff] }
 0x181   :  { %v3047_v14 = vpop.permute.xlu1 %866  ;;  %v3049_v33 = vpop.permute.xlu0 %864  ;;  %v241_v41 = vadd.f32 %v2621_v17, %v174_v63  ;;  %v1463_v25 = vmul.f32 %v1462_v18, %v2929_v20  ;;  %v1445_v37 = vrot.slane %v1439_v53, 2  ;;  %v1440_v58 = vmul.f32 %v1437_v10, %v3064_v19 }
 0x182   :  { %3994 = vst [vmem:[#allocation89_spill] sm:$0xff] %v3047_v14  ;;  %3995 = vst [vmem:[#allocation90_spill] sm:$0xff] %v3049_v33  ;;  %v262_v13 = vadd.f32 %v257_v31, %v195_v5  ;;  %v284_v17 = vadd.f32 %v279_v59, %v217_v8  ;;  %v286_v63 = vadd.f32 %v2657_v47, %v219_v2  ;;  %v3999_v59 = vld [vmem:[#allocation27_spill] sm:$0xff]  ;;  %v4030_v14 = vld [vmem:[#allocation48_spill] sm:$0xff] }
 0x183   :  { %1422 = vrot.lane.b32.xlu1 %v1419_v44, %s2312_s0  ;;  %1401 = vrot.lane.b32.xlu0 %v1396_v32, %s2312_s0  ;;  %v239_v44 = vadd.f32 %v234_v9, %v172_v11  ;;  %v256_v32 = vsel %vm211_vm1, %v2619_v16, %v2637_v27  ;;  %v280_v16 = vsel %vm278_vm2, %v2647_v34, %v2657_v47  ;;  %v1444_v11 = vrot.slane %v1438_v57, 2  ;;  %v4032_v33 = vld [vmem:[#allocation50_spill] sm:$0xff] }
 0x184   :  { %v263_v27 = vadd.f32 %v2635_v26, %v196_v43  ;;  %v261_v42 = vadd.f32 %v256_v32, %v194_v45  ;;  %v285_v9 = vadd.f32 %v280_v16, %v218_v23  ;;  %v301_v26 = vsel %vm278_vm2, %v2655_v46, %v2665_v56  ;;  %v3996_v46 = vld [vmem:[#allocation24_spill] sm:$0xff]  ;;  %v3998_v32 = vld [vmem:[#allocation26_spill] sm:$0xff] }
 0x185   :  { %v3082_v4 = vpop.permute.xlu1 %889  ;;  %v3084_v3 = vpop.permute.xlu0 %887  ;;  %v302_v34 = vsel %vm278_vm2, %v2665_v56, %v2663_v54  ;;  %v323_v43 = vsel %vm278_vm2, %v2673_v7, %v2671_v6  ;;  %v324_v47 = vsel %vm278_vm2, %v2671_v6, %v2681_v22  ;;  %v346_v31 = vsel %vm345_vm3, %v3996_v46, %v2689_v38 }
 0x186   :  { %v347_v56 = vsel %vm345_vm3, %v2689_v38, %v3997_v49  ;;  %v1446_v7 = vrot.slane %v1440_v58, 2  ;;  %v1464_v53 = vmul.f32 %v1462_v18, %v2926_v50  ;;  %v1487_v6 = vstv %s3066_s14  ;;  %s2248_s14 = scalar_lea.vmem %s2025_s2, 192 }
 0x187   :  { %1426 = vrot.lane.b32.xlu1 %v1421_v0, %s2312_s0  ;;  %1424 = vrot.lane.b32.xlu0 %v1420_v39, %s2312_s0  ;;  %v1469_v0 = vrot.slane %v1463_v25, 2  ;;  %v1465_v39 = vmul.f32 %v1462_v18, %v2967_v30  ;;  %v308_v57 = vadd.f32 %v2663_v54, %v241_v41  ;;  %v306_v5 = vadd.f32 %v301_v26, %v239_v44  ;;  %v4001_v44 = vld [vmem:[#allocation29_spill] sm:$0xff]  ;;  %p2249_p6 = scmp.ne.s32.totalorder %s2025_s2, %s2248_s14  ;;  %p2254_p8 = scmp.lt.s32.totalorder %s2248_s14, %s2248_s14 }
 0x188   :  { %v307_v2 = vadd.f32 %v302_v34, %v240_v21  ;;  %v328_v8 = vadd.f32 %v323_v43, %v261_v42  ;;  %v329_v38 = vadd.f32 %v324_v47, %v262_v13  ;;  %v330_v23 = vadd.f32 %v2681_v22, %v263_v27  ;;  %v4002_v13 = vld [vmem:[#allocation31_spill] sm:$0xff]  ;;  %v4004_v43 = vld [vmem:[#allocation30_spill] sm:$0xff] }
 0x189   :  { %v3107_v10 = vpop.permute.xlu1 %912  ;;  %v3109_v45 = vpop.permute.xlu0 %891  ;;  %v368_v16 = vsel %vm345_vm3, %v3999_v59, %v3998_v32  ;;  %v1512_v18 = vstv %s3086_s15  ;;  %v351_v58 = vadd.f32 %v346_v31, %v284_v17  ;;  %v352_v46 = vadd.f32 %v347_v56, %v285_v9  ;;  %v4003_v17 = vld [vmem:[#allocation28_spill] sm:$0xff]  ;;  %p2255_p9 = por %p2254_p8, %p2253_p7 }
 0x18a   :  { %v1489_v54 = vmul.f32 %v1487_v6, %v2999_v12  ;;  %v369_v21 = vsel %vm345_vm3, %v3998_v32, %v4001_v44  ;;  %v1471_v22 = vrot.slane %v1465_v39, 2  ;;  %v1470_v41 = vrot.slane %v1464_v53, 2  ;;  %v4007_v39 = vld [vmem:[#allocation32_spill] sm:$0xff]  ;;  %v4008_v53 = vld [vmem:[#allocation33_spill] sm:$0xff] }
 0x18b   :  { %1449 = vrot.lane.b32.xlu1 %v1445_v37, %s2312_s0  ;;  %1447 = vrot.lane.b32.xlu0 %v1444_v11, %s2312_s0  ;;  %v353_v11 = vadd.f32 %v3997_v49, %v286_v63  ;;  %v1488_v27 = vmul.f32 %v1487_v6, %v2964_v55  ;;  %v373_v42 = vadd.f32 %v368_v16, %v306_v5  ;;  %p2256_p10 = pnand %p2255_p9, %p2249_p6 }
 0x18c   :  { %v390_v63 = vsel %vm345_vm3, %v4003_v17, %v4002_v13  ;;  %v1513_v9 = vmul.f32 %v1512_v18, %v3030_v52  ;;  %v1490_v26 = vmul.f32 %v1487_v6, %v2997_v40  ;;  %v375_v34 = vadd.f32 %v4001_v44, %v308_v57 }
 0x18d   :  { %v3134_v25 = vpop.permute.xlu1 %916  ;;  %v3136_v37 = vpop.permute.xlu0 %914  ;;  %v391_v47 = vsel %vm345_vm3, %v4002_v13, %v4004_v43  ;;  %v3163_v56 = vmul.f32 %v1512_v18, %v3064_v19  ;;  %v413_v6 = vsel %vm412_vm4, %v4008_v53, %v4007_v39  ;;  %v1495_v57 = vrot.slane %v1489_v54, 2 }
 0x18e   :  { %4000 = vst [vmem:[#allocation24_spill] sm:$0xff] %v3134_v25  ;;  %v3170_v5 = vmul.f32 %v1512_v18, %v3026_v51  ;;  %v397_v32 = vadd.f32 %v4004_v43, %v330_v23  ;;  %v395_v59 = vadd.f32 %v390_v63, %v328_v8  ;;  %v1494_v16 = vrot.slane %v1488_v27, 2  ;;  %v4009_v18 = vld [vmem:[#allocation35_spill] sm:$0xff]  ;;  %v4011_v27 = vld [vmem:[#allocation37_spill] sm:$0xff]  ;;  %v4013_v43 = vld [vmem:[#allocation36_spill] sm:$0xff] }
 0x18f   :  { %1472 = vrot.lane.b32.xlu1 %v1469_v0, %s2313_s24  ;;  %1451 = vrot.lane.b32.xlu0 %v1446_v7, %s2312_s0  ;;  %v1537_v0 = vstv %s3111_s17  ;;  %v374_v7 = vadd.f32 %v369_v21, %v307_v2  ;;  %s3172_s0 = sld [smem:[#allocation2 + $0xe]]  ;;  %v1562_v44 = vstv %s3127_s18  ;;  %v396_v2 = vadd.f32 %v391_v47, %v329_v38  ;;  %v4023_v25 = vld [vmem:[#allocation45_spill] sm:$0xff] }
 0x190   :  { %v1519_v21 = vrot.slane %v1513_v9, 2  ;;  %v1496_v13 = vrot.slane %v1490_v26, 2  ;;  %v3179_v17 = vmul.f32 %v1537_v0, %v2926_v50  ;;  %v418_v54 = vadd.f32 %v413_v6, %v351_v58  ;;  %v4012_v58 = vld [vmem:[#allocation34_spill] sm:$0xff] }
 0x191   :  { %v3158_v31 = vpop.permute.xlu1 %939  ;;  %v3160_v49 = vpop.permute.xlu0 %937  ;;  %v414_v53 = vsel %vm412_vm4, %v4007_v39, %v4009_v18  ;;  %v420_v38 = vadd.f32 %v4009_v18, %v353_v11  ;;  %v435_v63 = vsel %vm412_vm4, %v4012_v58, %v4011_v27  ;;  %v1520_v9 = vrot.slane %v3170_v5, 2  ;;  %v4014_v5 = vld [vmem:[#allocation38_spill] sm:$0xff]  ;;  %v4015_v18 = vld [vmem:[#allocation39_spill] sm:$0xff] }
 0x192   :  { %4005 = vst [vmem:[#allocation25_spill] sm:$0xff] %v3158_v31  ;;  %4006 = vst [vmem:[#allocation26_spill] sm:$0xff] %v3160_v49  ;;  %v3200_v26 = vmul.f32 %v1562_v44, %v2964_v55  ;;  %v436_v47 = vsel %vm412_vm4, %v4011_v27, %v4013_v43  ;;  %v3210_v11 = vmul.f32 %v1537_v0, %v2967_v30  ;;  %v1587_v39 = vstv %s3147_s19  ;;  %v4022_v49 = vld [vmem:[#allocation44_spill] sm:$0xff] }
 0x193   :  { %1476 = vrot.lane.b32.xlu1 %v1471_v22, %s2313_s24  ;;  %1474 = vrot.lane.b32.xlu0 %v1470_v41, %s2313_s24  ;;  %v1521_v22 = vrot.slane %v3163_v56, 2  ;;  %v3190_v41 = vmul.f32 %v1537_v0, %v2929_v20  ;;  %v3213_v56 = vmul.f32 %v1562_v44, %v2997_v40  ;;  %v419_v6 = vadd.f32 %v414_v53, %v352_v46 }
 0x194   :  { %v457_v58 = vsel %vm412_vm4, %v4015_v18, %v4014_v5  ;;  %v1545_v27 = vrot.slane %v3179_v17, 2  ;;  %v440_v0 = vadd.f32 %v435_v63, %v373_v42  ;;  %v458_v62 = vsel %vm412_vm4, %v4014_v5, %v4016_v24 }
 0x195   :  { %v3184_v23 = vpop.permute.xlu1 %962  ;;  %v3186_v8 = vpop.permute.xlu0 %941  ;;  %v1544_v53 = vrot.slane %v3190_v41, 2  ;;  %v441_v18 = vadd.f32 %v436_v47, %v374_v7  ;;  %v3234_v17 = vmul.f32 %v1587_v39, %v3026_v51  ;;  %v462_v31 = vadd.f32 %v457_v58, %v395_v59  ;;  %v4018_v47 = vld [vmem:[#allocation40_spill] sm:$0xff] }
 0x196   :  { %4010 = vst [vmem:[#allocation27_spill] sm:$0xff] %v3186_v8  ;;  %v3242_v41 = vmul.f32 %v1587_v39, %v3030_v52  ;;  %v463_v7 = vadd.f32 %v458_v62, %v396_v2  ;;  %v464_v63 = vadd.f32 %v4016_v24, %v397_v32  ;;  %v3260_v62 = vmul.f32 %v1587_v39, %v3064_v19 }
 0x197   :  { %1499 = vrot.lane.b32.xlu1 %v1495_v57, %s2313_s24  ;;  %1497 = vrot.lane.b32.xlu0 %v1494_v16, %s2313_s24  ;;  %v3221_v57 = vmul.f32 %v1562_v44, %v2999_v12  ;;  %v442_v16 = vadd.f32 %v4013_v43, %v375_v34  ;;  %v1612_v44 = vstv %s3172_s0  ;;  %v4017_v43 = vld [vmem:[#allocation43_spill] sm:$0xff]  ;;  %v1637_v24 = vstv %s3192_s20 }
 0x198   :  { %v480_v59 = vsel %vm479_vm5, %v4018_v47, %v4017_v43  ;;  %v3257_v42 = vmul.f32 %v1612_v44, %v2929_v20  ;;  %v3266_v47 = vmul.f32 %v1612_v44, %v2967_v30 }
 0x199   :  { %v3227_v8 = vpop.permute.xlu1 %966  ;;  %v3229_v46 = vpop.permute.xlu0 %964  ;;  %v485_v5 = vadd.f32 %v480_v59, %v418_v54  ;;  %v3284_v59 = vmul.f32 %v1637_v24, %v2999_v12 }
 0x19b   :  { %1522 = vrot.lane.b32.xlu1 %v1519_v21, %s2313_s24  ;;  %1501 = vrot.lane.b32.xlu0 %v1496_v13, %s2313_s24  ;;  %v4019_v21 = vld [vmem:[#allocation42_spill] sm:$0xff] }
 0x19c   :  { %v481_v13 = vsel %vm479_vm5, %v4017_v43, %v4019_v21  ;;  %v487_v32 = vadd.f32 %v4019_v21, %v420_v38  ;;  %v1662_v43 = vstv %s3202_s21  ;;  %v4024_v21 = vld [vmem:[#allocation47_spill] sm:$0xff] }
 0x19d   :  { %v3252_v58 = vpop.permute.xlu1 %989  ;;  %v3254_v34 = vpop.permute.xlu0 %987  ;;  %v486_v38 = vadd.f32 %v481_v13, %v419_v6  ;;  %v503_v54 = vsel %vm479_vm5, %v4022_v49, %v4024_v21  ;;  %v4033_v6 = vld [vmem:[#allocation51_spill] sm:$0xff] }
 0x19e   :  { %4020 = vst [vmem:[#allocation29_spill] sm:$0xff] %v3252_v58  ;;  %4021 = vst [vmem:[#allocation31_spill] sm:$0xff] %v3254_v34  ;;  %v502_v34 = vsel %vm479_vm5, %v4023_v25, %v4022_v49  ;;  %v3276_v58 = vmul.f32 %v1612_v44, %v2926_v50  ;;  %v3287_v25 = vmul.f32 %v1637_v24, %v2964_v55 }
 0x19f   :  { %1526 = vrot.lane.b32.xlu1 %v1521_v22, %s2313_s24  ;;  %1524 = vrot.lane.b32.xlu0 %v1520_v9, %s2313_s24  ;;  %v4025_v22 = vld [vmem:[#allocation49_spill] sm:$0xff]  ;;  %v4026_v9 = vld [vmem:[#allocation46_spill] sm:$0xff]  ;;  %v3299_v49 = vmul.f32 %v1662_v43, %v3030_v52  ;;  %v507_v12 = vadd.f32 %v502_v34, %v440_v0  ;;  %v547_v13 = vsel %vm546_vm6, %v4033_v6, %v4032_v33  ;;  %s3315_s24 = sld [smem:[#allocation8 + $0x11]]  ;;  %v4036_v6 = vld [vmem:[#allocation52_spill] sm:$0xff] }
 0x1a0   :  { %v524_v39 = vsel %vm479_vm5, %v4026_v9, %v4025_v22  ;;  %v525_v55 = vsel %vm479_vm5, %v4025_v22, %v4030_v14  ;;  %v3306_v9 = vmul.f32 %v1637_v24, %v2997_v40  ;;  %v531_v34 = vadd.f32 %v4030_v14, %v464_v63  ;;  %v4039_v63 = vld [vmem:[#allocation54_spill] sm:$0xff] }
 0x1a1   :  { %v3292_v2 = vpop.permute.xlu1 %1012  ;;  %v3294_v44 = vpop.permute.xlu0 %991  ;;  %4029 = vst [vmem:[#allocation32_spill] sm:$0xff] %v3299_v49  ;;  %v529_v22 = vadd.f32 %v524_v39, %v462_v31  ;;  %v552_v31 = vadd.f32 %v547_v13, %v485_v5  ;;  %v4042_v40 = vrot.slane %v3200_v26, 2  ;;  %v4043_v5 = vrot.slane %v3210_v11, 2  ;;  %v4046_v26 = vld [vmem:[#allocation59_spill] sm:$0xff]  ;;  %v4047_v11 = vld [vmem:[#allocation60_spill] sm:$0xff]  ;;  %v4053_v49 = vld [vmem:[#allocation66_spill] sm:$0xff] }
 0x1a2   :  { %4027 = vst [vmem:[#allocation28_spill] sm:$0xff] %v3292_v2  ;;  %4028 = vst [vmem:[#allocation30_spill] sm:$0xff] %v3294_v44  ;;  %v508_v2 = vadd.f32 %v503_v54, %v441_v18  ;;  %v509_v44 = vadd.f32 %v4024_v21, %v442_v16  ;;  %v530_v16 = vadd.f32 %v525_v55, %v463_v7  ;;  %v4034_v21 = vld [vmem:[#allocation53_spill] sm:$0xff]  ;;  %v4040_v18 = vld [vmem:[#allocation56_spill] sm:$0xff] }
 0x1a3   :  { %4031 = vst [vmem:[#allocation33_spill] sm:$0xff] %v3306_v9  ;;  %1549 = vrot.lane.b32.xlu1 %v1545_v27, %s2314_s28  ;;  %1547 = vrot.lane.b32.xlu0 %v1544_v53, %s2314_s28  ;;  %v548_v54 = vsel %vm546_vm6, %v4032_v33, %v4034_v21  ;;  %v4035_v27 = vld [vmem:[#allocation55_spill] sm:$0xff]  ;;  %v3336_v7 = vmul.f32 %v1662_v43, %v3064_v19 }
 0x1a4   :  { %v569_v53 = vsel %vm546_vm6, %v4036_v6, %v4035_v27  ;;  %v570_v39 = vsel %vm546_vm6, %v4035_v27, %v4039_v63  ;;  %v554_v33 = vadd.f32 %v4034_v21, %v487_v32  ;;  %v4041_v6 = vld [vmem:[#allocation57_spill] sm:$0xff]  ;;  %v3349_v13 = vmul.f32 %v1662_v43, %v3026_v51  ;;  %v4049_v51 = vld [vmem:[#allocation63_spill] sm:$0xff] }
 0x1a5   :  { %v3326_v0 = vpop.permute.xlu1 %1016  ;;  %v3328_v61 = vpop.permute.xlu0 %1014  ;;  %v591_v24 = vsel %vm546_vm6, %v4041_v6, %v4040_v18  ;;  %v1687_v27 = vstv %s3278_s22  ;;  %v553_v55 = vadd.f32 %v548_v54, %v486_v38  ;;  %v576_v14 = vadd.f32 %v4039_v63, %v509_v44  ;;  %v4044_v21 = vld [vmem:[#allocation61_spill] sm:$0xff]  ;;  %v4052_v63 = vld [vmem:[#allocation64_spill] sm:$0xff] }
 0x1a6   :  { %4037 = vst [vmem:[#allocation35_spill] sm:$0xff] %v3326_v0  ;;  %4038 = vst [vmem:[#allocation37_spill] sm:$0xff] %v3328_v61  ;;  %v574_v32 = vadd.f32 %v569_v53, %v507_v12  ;;  %v4045_v0 = vld [vmem:[#allocation58_spill] sm:$0xff]  ;;  %v575_v61 = vadd.f32 %v570_v39, %v508_v2  ;;  %v615_v43 = vsel %vm613_vm7, %v4044_v21, %v4047_v11  ;;  %v4050_v2 = vld [vmem:[#allocation65_spill] sm:$0xff] }
 0x1a7   :  { %1572 = vrot.lane.b32.xlu1 %v4042_v40, %s2314_s28  ;;  %1551 = vrot.lane.b32.xlu0 %v4043_v5, %s2314_s28  ;;  %v614_v6 = vsel %vm613_vm7, %v4045_v0, %v4044_v21  ;;  %v592_v40 = vsel %vm546_vm6, %v4040_v18, %v4046_v26  ;;  %v4048_v5 = vld [vmem:[#allocation62_spill] sm:$0xff]  ;;  %v596_v54 = vadd.f32 %v591_v24, %v529_v22  ;;  %v4051_v18 = vld [vmem:[#allocation67_spill] sm:$0xff]  ;;  %v4054_v22 = vrot.slane %v3213_v56, 2 }
 0x1a8   :  { %v636_v38 = vsel %vm613_vm7, %v4049_v51, %v4048_v5  ;;  %v598_v0 = vadd.f32 %v4046_v26, %v531_v34  ;;  %v637_v53 = vsel %vm613_vm7, %v4048_v5, %v4050_v2  ;;  %v658_v39 = vsel %vm613_vm7, %v4052_v63, %v4051_v18 }
 0x1a9   :  { %v3365_v44 = vpop.permute.xlu1 %1039  ;;  %v3367_v12 = vpop.permute.xlu0 %1037  ;;  %v621_v21 = vadd.f32 %v4047_v11, %v554_v33  ;;  %v619_v9 = vadd.f32 %v614_v6, %v552_v31  ;;  %v659_v51 = vsel %vm613_vm7, %v4051_v18, %v4053_v49  ;;  %v4055_v34 = vrot.slane %v3221_v57, 2 }
 0x1aa   :  { %v3387_v24 = vstv %s3315_s24  ;;  %v597_v26 = vadd.f32 %v592_v40, %v530_v16  ;;  %v620_v5 = vadd.f32 %v615_v43, %v553_v55  ;;  %v641_v63 = vadd.f32 %v636_v38, %v574_v32 }
 0x1ab   :  { %1576 = vrot.lane.b32.xlu1 %v4054_v22, %s2314_s28  ;;  %1574 = vrot.lane.b32.xlu0 %v4055_v34, %s2314_s28  ;;  %v3390_v33 = vmul.f32 %v1687_v27, %v2926_v50  ;;  %v642_v31 = vadd.f32 %v637_v53, %v575_v61  ;;  %v643_v6 = vadd.f32 %v4050_v2, %v576_v14  ;;  %v4056_v61 = vrot.slane %v2914_v60, 1  ;;  %v4063_v2 = vld [vmem:[#allocation69_spill] sm:$0xff] }
 0x1ac   :  { %v665_v11 = vadd.f32 %v4053_v49, %v598_v0  ;;  %v663_v18 = vadd.f32 %v658_v39, %v596_v54  ;;  %v664_v57 = vadd.f32 %v659_v51, %v597_v26  ;;  %v3399_v34 = vmul.f32 %v1687_v27, %v2929_v20  ;;  %v4057_v49 = vld [vmem:[#allocation79_spill] sm:$0xff]  ;;  %v4062_v0 = vld [vmem:[#allocation68_spill] sm:$0xff]  ;;  %v4064_v39 = vld [vmem:[#allocation78_spill] sm:$0xff] }
 0x1ad   :  { %v3394_v56 = vpop.permute.xlu1 %1062  ;;  %v3396_v22 = vpop.permute.xlu0 %1041  ;;  %v3403_v16 = vmul.f32 %v3387_v24, %v3030_v52  ;;  %v3406_v55 = vmul.f32 %v1687_v27, %v2967_v30  ;;  %v686_v14 = vadd.f32 %v4056_v61, %v619_v9  ;;  %v4058_v32 = vrot.slane %v4057_v49, 1  ;;  %v4066_v51 = vld [vmem:[#allocation71_spill] sm:$0xff] }
 0x1ae   :  { %v4059_v43 = vrot.slane %v3234_v17, 2  ;;  %v4060_v38 = vrot.slane %v3242_v41, 2  ;;  %v1671_v54 = vrot.slane %v3336_v7, 2  ;;  %v3421_v27 = vmul.f32 %v3387_v24, %v3064_v19  ;;  %v4106_v7 = vld [vmem:[#allocation88_spill] sm:$0xff] }
 0x1af   :  { %v688_v40 = vadd.f32 %v4058_v32, %v621_v21  ;;  %v4061_v60 = vrot.slane %v2962_v29, 1  ;;  %v743_v53 = vsel %vm144_vm0, %v4063_v2, %v4062_v0  ;;  %v4065_v17 = vrot.slane %v4064_v39, 1  ;;  %v4072_v39 = vld [vmem:[#allocation70_spill] sm:$0xff] }
 0x1b0   :  { %1599 = vrot.lane.b32.xlu1 %v4059_v43, %s2314_s28  ;;  %1597 = vrot.lane.b32.xlu0 %v4060_v38, %s2314_s28  ;;  %v744_v41 = vsel %vm144_vm0, %v4062_v0, %v4066_v51  ;;  %v4067_v26 = vrot.slane %v2974_v28, 1  ;;  %v4068_v49 = vrot.slane %v2977_v35, 1  ;;  %v4069_v29 = vrot.slane %v3005_v36, 1  ;;  %v4074_v35 = vld [vmem:[#allocation74_spill] sm:$0xff] }
 0x1b1   :  { %v703_v9 = vadd.f32 %v4061_v60, %v641_v63  ;;  %v687_v21 = vadd.f32 %v4065_v17, %v620_v5  ;;  %v4070_v43 = vrot.slane %v3011_v15, 1  ;;  %v3441_v60 = vpop.permute.xlu1 %1066  ;;  %v3443_v2 = vpop.permute.xlu0 %1064  ;;  %v4071_v5 = vld [vmem:[#allocation73_spill] sm:$0xff]  ;;  %v4073_v17 = vld [vmem:[#allocation72_spill] sm:$0xff] }
 0x1b2   :  { %v705_v61 = vadd.f32 %v4067_v26, %v643_v6  ;;  %v704_v32 = vadd.f32 %v4068_v49, %v642_v31  ;;  %v723_v63 = vadd.f32 %v4069_v29, %v663_v18  ;;  %v768_v0 = vsel %vm144_vm0, %v4072_v39, %v4071_v5  ;;  %v4075_v31 = vld [vmem:[#allocation75_spill] sm:$0xff]  ;;  %v4079_v39 = vld [vmem:[#allocation77_spill] sm:$0xff] }
 0x1b3   :  { %v725_v38 = vadd.f32 %v4070_v43, %v665_v11  ;;  %v769_v28 = vsel %vm144_vm0, %v4071_v5, %v4073_v17  ;;  %v793_v36 = vsel %vm144_vm0, %v4075_v31, %v4074_v35  ;;  %v4076_v6 = vrot.slane %v3008_v1, 1 }
 0x1b4   :  { %v748_v11 = vadd.f32 %v743_v53, %v686_v14  ;;  %v749_v18 = vadd.f32 %v744_v41, %v687_v21  ;;  %v750_v26 = vadd.f32 %v4066_v51, %v688_v40  ;;  %v4077_v49 = vrot.slane %v3257_v42, 2  ;;  %v4081_v14 = vld [vmem:[#allocation76_spill] sm:$0xff] }
 0x1b5   :  { %v724_v15 = vadd.f32 %v4076_v6, %v664_v57  ;;  %v4078_v29 = vrot.slane %v3260_v62, 2  ;;  %v1670_v43 = vrot.slane %v3349_v13, 2  ;;  %v775_v5 = vadd.f32 %v4073_v17, %v705_v61  ;;  %v4080_v57 = vld [vmem:[#allocation81_spill] sm:$0xff]  ;;  %v4082_v53 = vld [vmem:[#allocation80_spill] sm:$0xff]  ;;  %v3475_v31 = vpop.permute.xlu1 %1089  ;;  %v3477_v61 = vpop.permute.xlu0 %1087 }
 0x1b6   :  { %1622 = vrot.lane.b32.xlu1 %v4077_v49, %s2315_s9  ;;  %v794_v1 = vsel %vm144_vm0, %v4074_v35, %v4079_v39  ;;  %v818_v40 = vsel %vm211_vm1, %v4081_v14, %v4080_v57  ;;  %v819_v42 = vsel %vm211_vm1, %v4080_v57, %v4082_v53  ;;  %v773_v21 = vadd.f32 %v768_v0, %v703_v9  ;;  %v4083_v35 = vld [vmem:[#allocation83_spill] sm:$0xff]  ;;  %v4084_v6 = vld [vmem:[#allocation84_spill] sm:$0xff] }
 0x1b7   :  { %1601 = vrot.lane.b32.xlu0 %v4078_v29, %s2314_s28  ;;  %v774_v51 = vadd.f32 %v769_v28, %v704_v32  ;;  %v798_v62 = vadd.f32 %v793_v36, %v723_v63  ;;  %v800_v41 = vadd.f32 %v4079_v39, %v725_v38  ;;  %v825_v17 = vadd.f32 %v4082_v53, %v750_v26  ;;  %v4089_v53 = vld [vmem:[#allocation90_spill] sm:$0xff]  ;;  %s3557_s28 = sld [smem:[#allocation7 + $0x11]] }
 0x1b8   :  { %v843_v49 = vsel %vm211_vm1, %v4084_v6, %v4083_v35  ;;  %v893_v29 = vsel %vm278_vm2, %v3084_v3, %v3082_v4  ;;  %v894_v9 = vsel %vm278_vm2, %v3082_v4, %v3109_v45  ;;  %v799_v32 = vadd.f32 %v794_v1, %v724_v15  ;;  %v4094_v6 = vld [vmem:[#allocation24_spill] sm:$0xff] }
 0x1b9   :  { %v823_v63 = vadd.f32 %v818_v40, %v748_v11  ;;  %v824_v38 = vadd.f32 %v819_v42, %v749_v18  ;;  %v4085_v0 = vrot.slane %v3266_v47, 2  ;;  %v4086_v28 = vrot.slane %v3276_v58, 2  ;;  %v1113_v39 = vpop.permute.xlu1 %1112  ;;  %v3507_v1 = vpop.permute.xlu0 %1091  ;;  %v4090_v42 = vld [vmem:[#allocation87_spill] sm:$0xff] }
 0x1ba   :  { %v1695_v36 = vrot.slane %v3390_v33, 2  ;;  %v844_v3 = vsel %vm211_vm1, %v4083_v35, %v3017_v48  ;;  %v900_v26 = vadd.f32 %v3109_v45, %v825_v17  ;;  %v968_v4 = vsel %vm345_vm3, %v3184_v23, %v3229_v46  ;;  %v4093_v17 = vld [vmem:[#allocation31_spill] sm:$0xff] }
 0x1bb   :  { %1626 = vrot.lane.b32.xlu1 %v4085_v0, %s2315_s9  ;;  %1624 = vrot.lane.b32.xlu0 %v4086_v28, %s2315_s9  ;;  %v969_v47 = vsel %vm345_vm3, %v3229_v46, %v3227_v8  ;;  %v848_v15 = vadd.f32 %v843_v49, %v773_v21  ;;  %v850_v58 = vadd.f32 %v3017_v48, %v775_v5  ;;  %v4087_v40 = vrot.slane %v3284_v59, 2  ;;  %v4091_v21 = vld [vmem:[#allocation89_spill] sm:$0xff] }
 0x1bc   :  { %v898_v11 = vadd.f32 %v893_v29, %v823_v63  ;;  %v899_v18 = vadd.f32 %v894_v9, %v824_v38  ;;  %v918_v45 = vsel %vm278_vm2, %v3107_v10, %v3136_v37  ;;  %v975_v57 = vadd.f32 %v3227_v8, %v900_v26 }
 0x1bd   :  { %v1043_v23 = vsel %vm412_vm4, %v3367_v12, %v3365_v44  ;;  %v1044_v46 = vsel %vm412_vm4, %v3365_v44, %v3396_v22  ;;  %v849_v48 = vadd.f32 %v844_v3, %v774_v51  ;;  %v4088_v10 = vrot.slane %v3287_v25, 2  ;;  %v4092_v51 = vld [vmem:[#allocation29_spill] sm:$0xff]  ;;  %v1117_v9 = vpop.permute.xlu1 %1116  ;;  %v1115_v63 = vpop.permute.xlu0 %1114 }
 0x1be   :  { %v973_v5 = vadd.f32 %v968_v4, %v898_v11  ;;  %v974_v14 = vadd.f32 %v969_v47, %v899_v18  ;;  %v1694_v8 = vrot.slane %v3399_v34, 2  ;;  %v868_v12 = vsel %vm211_vm1, %v4090_v42, %v4089_v53 }
 0x1bf   :  { %1649 = vrot.lane.b32.xlu1 %v4087_v40, %s2315_s9  ;;  %1647 = vrot.lane.b32.xlu0 %v4088_v10, %s2315_s9  ;;  %v869_v44 = vsel %vm211_vm1, %v4089_v53, %v4091_v21  ;;  %v993_v35 = vsel %vm345_vm3, %v4093_v17, %v4092_v51  ;;  %v1050_v59 = vadd.f32 %v3396_v22, %v975_v57  ;;  %v4099_v57 = vld [vmem:[#allocation30_spill] sm:$0xff]  ;;  %v4102_v17 = vld [vmem:[#allocation27_spill] sm:$0xff] }
 0x1c0   :  { %v919_v25 = vsel %vm278_vm2, %v3136_v37, %v4094_v6  ;;  %v923_v49 = vadd.f32 %v918_v45, %v848_v15  ;;  %v1048_v34 = vadd.f32 %v1043_v23, %v973_v5  ;;  %v1049_v29 = vadd.f32 %v1044_v46, %v974_v14  ;;  %v4095_v37 = vld [vmem:[#allocation32_spill] sm:$0xff]  ;;  %v4097_v15 = vld [vmem:[#allocation33_spill] sm:$0xff]  ;;  %v4101_v40 = vld [vmem:[#allocation26_spill] sm:$0xff] }
 0x1c1   :  { %v1068_v38 = vsel %vm412_vm4, %v3394_v56, %v3443_v2  ;;  %v3542_v0 = vadd.f32 %v1117_v9, %v1050_v59  ;;  %v1118_v28 = vsel %vm479_vm5, %v1113_v39, %v1115_v63  ;;  %v1119_v3 = vsel %vm479_vm5, %v1115_v63, %v1117_v9  ;;  %v4100_v14 = vld [vmem:[#allocation25_spill] sm:$0xff]  ;;  %v1140_v42 = vpop.permute.xlu1 %1139  ;;  %v4105_v59 = vld [vmem:[#allocation35_spill] sm:$0xff] }
 0x1c2   :  { %v998_v22 = vadd.f32 %v993_v35, %v923_v49  ;;  %v3546_v26 = vadd.f32 %v1118_v28, %v1048_v34  ;;  %v3548_v4 = vadd.f32 %v1119_v3, %v1049_v29  ;;  %v4096_v47 = vrot.slane %v4095_v37, 2 }
 0x1c3   :  { %v4098_v11 = vrot.slane %v4097_v15, 2  ;;  %v1744_v56 = vrot.slane %v3403_v16, 2  ;;  %v875_v18 = vadd.f32 %v4091_v21, %v800_v41  ;;  %v873_v39 = vadd.f32 %v868_v12, %v798_v62  ;;  %v1138_v16 = vpop.permute.xlu0 %1137 }
 0x1c4   :  { %1672 = vrot.lane.b32.xlu1 %v4096_v47, %s2315_s9  ;;  %v925_v45 = vadd.f32 %v4094_v6, %v850_v58  ;;  %v994_v23 = vsel %vm345_vm3, %v4092_v51, %v4099_v57  ;;  %v874_v46 = vadd.f32 %v869_v44, %v799_v32  ;;  %v924_v5 = vadd.f32 %v919_v25, %v849_v48  ;;  %v4104_v51 = vld [vmem:[#allocation28_spill] sm:$0xff] }
 0x1c5   :  { %1651 = vrot.lane.b32.xlu0 %v4098_v11, %s2315_s9  ;;  %v943_v10 = vsel %vm278_vm2, %v4101_v40, %v4100_v14  ;;  %v1073_v53 = vadd.f32 %v1068_v38, %v998_v22  ;;  %v944_v41 = vsel %vm278_vm2, %v4100_v14, %v4102_v17  ;;  %v1069_v58 = vsel %vm412_vm4, %v3443_v2, %v3441_v60  ;;  %v4103_v2 = vld [vmem:[#allocation37_spill] sm:$0xff]  ;;  %v1163_v34 = vpop.permute.xlu1 %1162 }
 0x1c6   :  { %v1000_v62 = vadd.f32 %v4099_v57, %v925_v45  ;;  %v1143_v32 = vsel %vm479_vm5, %v1138_v16, %v1140_v42  ;;  %v950_v48 = vadd.f32 %v4102_v17, %v875_v18  ;;  %v999_v12 = vadd.f32 %v994_v23, %v924_v5  ;;  %v4109_v16 = vld [vmem:[#allocation85_spill] sm:$0xff] }
 0x1c7   :  { %v3576_v21 = vadd.f32 %v1143_v32, %v1073_v53  ;;  %v1696_v44 = vrot.slane %v3406_v55, 2  ;;  %v1018_v35 = vsel %vm345_vm3, %v4104_v51, %v4103_v2  ;;  %v1019_v6 = vsel %vm345_vm3, %v4103_v2, %v4105_v59  ;;  %v1142_v29 = vpop.permute.xlu0 %1141 }
 0x1c8   :  { %1676 = vrot.lane.b32.xlu1 %v1671_v54, %s2315_s9  ;;  %v1075_v25 = vadd.f32 %v3441_v60, %v1000_v62  ;;  %v1739_v54 = vmul.f32 %v3387_v24, %v4106_v7  ;;  %v948_v13 = vadd.f32 %v943_v10, %v873_v39  ;;  %v1025_v55 = vadd.f32 %v4105_v59, %v950_v48 }
 0x1c9   :  { %1674 = vrot.lane.b32.xlu0 %v1670_v43, %s2315_s9  ;;  %v949_v43 = vadd.f32 %v944_v41, %v874_v46  ;;  %v1074_v49 = vadd.f32 %v1069_v58, %v999_v12  ;;  %v1093_v9 = vsel %vm412_vm4, %v3477_v61, %v3475_v31  ;;  %v1094_v63 = vsel %vm412_vm4, %v3475_v31, %v3507_v1  ;;  %v1167_v15 = vpop.permute.xlu1 %1166  ;;  %s2122_s9 = sld [smem:[#allocation8 + $0x14]] }
 0x1ca   :  { %v1144_v60 = vsel %vm479_vm5, %v1140_v42, %v1142_v29  ;;  %v1150_v38 = vadd.f32 %v1142_v29, %v1075_v25  ;;  %v1023_v24 = vadd.f32 %v1018_v35, %v948_v13  ;;  %v1712_v22 = vstv %s3557_s28 }
 0x1cb   :  { %v1024_v28 = vadd.f32 %v1019_v6, %v949_v43  ;;  %v1149_v3 = vadd.f32 %v1144_v60, %v1074_v49  ;;  %v1100_v37 = vadd.f32 %v3507_v1, %v1025_v55  ;;  %v1165_v31 = vpop.permute.xlu0 %1164  ;;  %v1746_v11 = vrot.slane %v3421_v27, 2  ;;  %v4108_v1 = vld [vmem:[#allocation82_spill] sm:$0xff] }
 0x1cc   :  { %1699 = vrot.lane.b32.xlu1 %v1695_v36, %s2316_s12  ;;  %v1098_v61 = vadd.f32 %v1093_v9, %v1023_v24  ;;  %v1745_v18 = vrot.slane %v1739_v54, 2  ;;  %v1168_v45 = vsel %vm479_vm5, %v1163_v34, %v1165_v31  ;;  %v1169_v33 = vsel %vm479_vm5, %v1165_v31, %v1167_v15  ;;  %v4107_v36 = vld [vmem:[#allocation86_spill] sm:$0xff] }
 0x1cd   :  { %1697 = vrot.lane.b32.xlu0 %v1694_v8, %s2316_s12  ;;  %v1099_v47 = vadd.f32 %v1094_v63, %v1024_v28  ;;  %v3611_v39 = vadd.f32 %v1167_v15, %v1100_v37  ;;  %v1714_v57 = vmul.f32 %v1712_v22, %v4107_v36  ;;  %v1713_v46 = vmul.f32 %v1712_v22, %v4108_v1  ;;  %v1190_v27 = vpop.permute.xlu1 %1189 }
 0x1ce   :  { %v1173_v8 = vadd.f32 %v1168_v45, %v1098_v61  ;;  %v1762_v5 = vstv %s3585_s1  ;;  %v1715_v17 = vmul.f32 %v1712_v22, %v4109_v16  ;;  %v1787_v43 = vstv %s2121_s3 }
 0x1cf   :  { %v1174_v23 = vadd.f32 %v1169_v33, %v1099_v47  ;;  %v1188_v14 = vpop.permute.xlu0 %1187  ;;  %v1763_v10 = vmul.f32 %v1762_v5, %v2929_v20  ;;  %v1719_v42 = vrot.slane %v1713_v46, 2  ;;  %v1765_v58 = vmul.f32 %v1762_v5, %v2967_v30 }
 0x1d0   :  { %1747 = vrot.lane.b32.xlu1 %v1744_v56, %s2316_s12  ;;  %v1193_v40 = vsel %vm546_vm6, %v1188_v14, %v1190_v27  ;;  %v1720_v56 = vrot.slane %v1714_v57, 2  ;;  %v1721_v12 = vrot.slane %v1715_v17, 2  ;;  %v1812_v2 = vstv %s2122_s9 }
 0x1d1   :  { %1701 = vrot.lane.b32.xlu0 %v1696_v44, %s2316_s12  ;;  %v3623_v53 = vadd.f32 %v1193_v40, %v3546_v26  ;;  %v1213_v41 = vpop.permute.xlu1 %1212  ;;  %v1769_v48 = vrot.slane %v1763_v10, 2  ;;  %v1764_v44 = vmul.f32 %v1762_v5, %v2926_v50  ;;  %v1771_v59 = vrot.slane %v1765_v58, 2  ;;  %v3675_v5 = vld [vmem:[#allocation11] sm:$0x3c] }
 0x1d2   :  { %v1814_v25 = vmul.f32 %v1812_v2, %v4106_v7  ;;  %v1813_v13 = vmul.f32 %v1812_v2, %v3030_v52  ;;  %v1788_v63 = vmul.f32 %v1787_v43, %v4108_v1  ;;  %v1815_v60 = vmul.f32 %v1812_v2, %v3064_v19 }
 0x1d3   :  { %v1192_v62 = vpop.permute.xlu0 %1191  ;;  %v1770_v50 = vrot.slane %v1764_v44, 2  ;;  %v1790_v28 = vmul.f32 %v1787_v43, %v4109_v16  ;;  %v1837_v31 = vstv %s2123_s23 }
 0x1d4   :  { %1751 = vrot.lane.b32.xlu1 %v1746_v11, %s2316_s12  ;;  %v1194_v32 = vsel %vm546_vm6, %v1190_v27, %v1192_v62  ;;  %v1200_v20 = vadd.f32 %v1192_v62, %v3542_v0  ;;  %v1820_v29 = vrot.slane %v1814_v25, 2  ;;  %v1794_v47 = vrot.slane %v1788_v63, 2  ;;  %v3686_v62 = vld [vmem:[#allocation11 + $0x10] sm:$0x3c] }
 0x1d5   :  { %1749 = vrot.lane.b32.xlu0 %v1745_v18, %s2316_s12  ;;  %v1199_v26 = vadd.f32 %v1194_v32, %v3548_v4  ;;  %v1217_v51 = vpop.permute.xlu1 %1216  ;;  %v1821_v15 = vrot.slane %v1815_v60, 2  ;;  %v1796_v45 = vrot.slane %v1790_v28, 2  ;;  %v1838_v27 = vmul.f32 %v3675_v5, %v1837_v31 }
 0x1d6   :  { %v3635_v6 = vadd.f32 %v1217_v51, %v1150_v38  ;;  %v1840_v58 = vmul.f32 %v3686_v62, %v1837_v31 }
 0x1d7   :  { %v1215_v35 = vpop.permute.xlu0 %1214 }
 0x1d8   :  { %1724 = vrot.lane.b32.xlu1 %v1720_v56, %s2316_s12  ;;  %v1218_v30 = vsel %vm546_vm6, %v1213_v41, %v1215_v35  ;;  %v1219_v0 = vsel %vm546_vm6, %v1215_v35, %v1217_v51  ;;  %v1844_v41 = vrot.slane %v1838_v27, 2  ;;  %v1846_v35 = vrot.slane %v1840_v58, 2 }
 0x1d9   :  { %1722 = vrot.lane.b32.xlu0 %v1719_v42, %s2316_s12  ;;  %v1223_v4 = vadd.f32 %v1218_v30, %v3576_v21  ;;  %v3641_v54 = vadd.f32 %v1219_v0, %v1149_v3  ;;  %v1240_v55 = vpop.permute.xlu1 %1239  ;;  %v1819_v21 = vrot.slane %v1813_v13, 2  ;;  %v1789_v3 = vmul.f32 %v1787_v43, %v4107_v36 }
 0x1da   :  { %v1333_v42 = vstv %s2102_s25  ;;  %v1862_v30 = vstv %s2124_s26  ;;  %v1350_v43 = vstv %s3678_s27 }
 0x1db   :  { %v1238_v49 = vpop.permute.xlu0 %1237  ;;  %v1795_v33 = vrot.slane %v1789_v3, 2  ;;  %v1336_v0 = vmul.f32 %v3686_v62, %v1333_v42  ;;  %v3728_v3 = vld [vmem:[#allocation12 + $0x10] sm:$0x3c] }
 0x1dc   :  { %1772 = vrot.lane.b32.xlu1 %v1769_v48, %s2317_s16  ;;  %v1243_v34 = vsel %vm546_vm6, %v1238_v49, %v1240_v55  ;;  %v1334_v48 = vmul.f32 %v3675_v5, %v1333_v42  ;;  %v1865_v27 = vmul.f32 %v3728_v3, %v1862_v30 }
 0x1dd   :  { %1726 = vrot.lane.b32.xlu0 %v1721_v12, %s2316_s12  ;;  %v3647_v9 = vadd.f32 %v1243_v34, %v1173_v8  ;;  %s2125_s12 = sld [smem:[#allocation8 + $0x17]]  ;;  %v1263_v38 = vpop.permute.xlu1 %1262  ;;  %v3665_v8 = vld [vmem:[#allocation11 + $0x8] sm:$0x3c]  ;;  %v3712_v34 = vld [vmem:[#allocation12 + $0x8] sm:$0x3c]  ;;  %v1342_v28 = vrot.slane %v1336_v0, 2 }
 0x1df   :  { %v1242_v24 = vpop.permute.xlu0 %1241 }
 0x1e0   :  { %1776 = vrot.lane.b32.xlu1 %v1771_v59, %s2317_s16  ;;  %v1244_v22 = vsel %vm546_vm6, %v1240_v55, %v1242_v24  ;;  %v1250_v37 = vadd.f32 %v1242_v24, %v3611_v39 }
 0x1e1   :  { %1774 = vrot.lane.b32.xlu0 %v1770_v50, %s2317_s16  ;;  %v3657_v61 = vadd.f32 %v1244_v22, %v1174_v23  ;;  %v1267_v11 = vpop.permute.xlu1 %1266  ;;  %v1839_v23 = vmul.f32 %v3665_v8, %v1837_v31  ;;  %v1340_v50 = vrot.slane %v1334_v48, 2  ;;  %v1871_v48 = vrot.slane %v1865_v27, 2 }
 0x1e2   :  { %v3661_v57 = vadd.f32 %v1267_v11, %v1200_v20 }
 0x1e3   :  { %v1265_v18 = vpop.permute.xlu0 %1264  ;;  %v1887_v14 = vstv %s2125_s12  ;;  %v1845_v17 = vrot.slane %v1839_v23, 2 }
 0x1e4   :  { %1824 = vrot.lane.b32.xlu1 %v1820_v29, %s2317_s16  ;;  %v1268_v36 = vsel %vm613_vm7, %v1263_v38, %v1265_v18  ;;  %v1269_v39 = vsel %vm613_vm7, %v1265_v18, %v1267_v11  ;;  %v1889_v59 = vmul.f32 %v1887_v14, %v4106_v7  ;;  %v1864_v29 = vmul.f32 %v3712_v34, %v1862_v30  ;;  %v3723_v38 = vld [vmem:[#allocation12] sm:$0x3c] }
 0x1e5   :  { %1822 = vrot.lane.b32.xlu0 %v1819_v21, %s2317_s16  ;;  %v3669_v1 = vadd.f32 %v1268_v36, %v3623_v53  ;;  %v3671_v46 = vadd.f32 %v1269_v39, %v1199_v26  ;;  %v1290_v40 = vpop.permute.xlu1 %1289  ;;  %v1888_v53 = vmul.f32 %v1887_v14, %v3030_v52  ;;  %v1890_v26 = vmul.f32 %v1887_v14, %v3064_v19 }
 0x1e6   :  { %v1895_v60 = vrot.slane %v1889_v59, 2  ;;  %v1863_v24 = vmul.f32 %v3723_v38, %v1862_v30  ;;  %v1351_v22 = vmul.f32 %v3723_v38, %v1350_v43  ;;  %v1352_v11 = vmul.f32 %v3712_v34, %v1350_v43 }
 0x1e7   :  { %v1288_v10 = vpop.permute.xlu0 %1287  ;;  %v1894_v2 = vrot.slane %v1888_v53, 2  ;;  %v1896_v13 = vrot.slane %v1890_v26, 2  ;;  %v1370_v18 = vstv %s3693_s30 }
 0x1e8   :  { %1797 = vrot.lane.b32.xlu1 %v1794_v47, %s2317_s16  ;;  %v1293_v56 = vsel %vm613_vm7, %v1288_v10, %v1290_v40  ;;  %v1869_v39 = vrot.slane %v1863_v24, 2  ;;  %v1371_v10 = vmul.f32 %v1370_v18, %v3030_v52 }
 0x1e9   :  { %1826 = vrot.lane.b32.xlu0 %v1821_v15, %s2317_s16  ;;  %v3682_v16 = vadd.f32 %v1293_v56, %v1223_v4  ;;  %v1313_v32 = vpop.permute.xlu1 %1312  ;;  %v1346_v15 = vadd.f32 %v1340_v50, %v3669_v1  ;;  %v1348_v1 = vadd.f32 %v1342_v28, %v3661_v57 }
 0x1eb   :  { %v1292_v20 = vpop.permute.xlu0 %1291 }
 0x1ec   :  { %1801 = vrot.lane.b32.xlu1 %v1796_v45, %s2317_s16  ;;  %v1294_v12 = vsel %vm613_vm7, %v1290_v40, %v1292_v20  ;;  %v3697_v44 = vadd.f32 %v1292_v20, %v3635_v6  ;;  %v1335_v6 = vmul.f32 %v3665_v8, %v1333_v42  ;;  %v1357_v40 = vrot.slane %v1351_v22, 2 }
 0x1ed   :  { %1799 = vrot.lane.b32.xlu0 %v1795_v33, %s2317_s16  ;;  %v3700_v51 = vadd.f32 %v1294_v12, %v3641_v54  ;;  %v1317_v25 = vpop.permute.xlu1 %1316  ;;  %s3726_s16 = sld [smem:[#allocation8 + $0x1a]]  ;;  %v1870_v33 = vrot.slane %v1864_v29, 2 }
 0x1ee   :  { %v3708_v55 = vadd.f32 %v1317_v25, %v1250_v37  ;;  %v1912_v37 = vstv %s3689_s29  ;;  %v1341_v31 = vrot.slane %v1335_v6, 2 }
 0x1ef   :  { %v1315_v4 = vpop.permute.xlu0 %1314  ;;  %v1913_v23 = vmul.f32 %v3675_v5, %v1912_v37  ;;  %v1914_v5 = vmul.f32 %v3665_v8, %v1912_v37 }
 0x1f0   :  { %1849 = vrot.lane.b32.xlu1 %v1845_v17, %s2318_s4  ;;  %v1318_v54 = vsel %vm613_vm7, %v1313_v32, %v1315_v4  ;;  %v1319_v49 = vsel %vm613_vm7, %v1315_v4, %v1317_v25  ;;  %v1347_v53 = vadd.f32 %v1341_v31, %v3671_v46  ;;  %v1358_v17 = vrot.slane %v1352_v11, 2 }
 0x1f1   :  { %1847 = vrot.lane.b32.xlu0 %v1844_v41, %s2318_s4  ;;  %v3716_v21 = vadd.f32 %v1318_v54, %v3647_v9  ;;  %v3719_v63 = vadd.f32 %v1319_v49, %v3657_v61  ;;  %v1353_v9 = vmul.f32 %v3728_v3, %v1350_v43  ;;  %v1400_v61 = vpop.permute.xlu1 %1399  ;;  %v1915_v41 = vmul.f32 %v3686_v62, %v1912_v37 }
 0x1f2   :  { %v1919_v57 = vrot.slane %v1913_v23, 2  ;;  %v1377_v46 = vrot.slane %v1371_v10, 2  ;;  %v1373_v62 = vmul.f32 %v1370_v18, %v3064_v19  ;;  %v1364_v59 = vadd.f32 %v1358_v17, %v3700_v51 }
 0x1f3   :  { %v1398_v47 = vpop.permute.xlu0 %1397  ;;  %v1359_v14 = vrot.slane %v1353_v9, 2  ;;  %v1962_v26 = vstv %s3726_s16  ;;  %v1921_v0 = vrot.slane %v1915_v41, 2  ;;  %v1920_v25 = vrot.slane %v1914_v5, 2 }
 0x1f4   :  { %1897 = vrot.lane.b32.xlu1 %v1894_v2, %s2318_s4  ;;  %v1403_v45 = vsel %vm144_vm0, %v1398_v47, %v1400_v61  ;;  %v1372_v2 = vmul.f32 %v1370_v18, %v4106_v7  ;;  %v1937_v54 = vstv %s3743_s8  ;;  %v1379_v51 = vrot.slane %v1373_v62, 2 }
 0x1f5   :  { %1851 = vrot.lane.b32.xlu0 %v1846_v35, %s2318_s4  ;;  %v3737_v36 = vadd.f32 %v1403_v45, %v1346_v15  ;;  %v1423_v56 = vpop.permute.xlu1 %1422  ;;  %v1365_v12 = vadd.f32 %v1359_v14, %v3697_v44  ;;  %v1363_v35 = vadd.f32 %v1357_v40, %v3682_v16  ;;  %v1964_v44 = vmul.f32 %v1962_v26, %v4106_v7 }
 0x1f6   :  { %v1963_v16 = vmul.f32 %v1962_v26, %v3030_v52  ;;  %v1378_v24 = vrot.slane %v1372_v2, 2  ;;  %v1938_v9 = vmul.f32 %v3723_v38, %v1937_v54  ;;  %v1965_v52 = vmul.f32 %v1962_v26, %v3064_v19 }
 0x1f7   :  { %v1402_v42 = vpop.permute.xlu0 %1401  ;;  %v1970_v22 = vrot.slane %v1964_v44, 2  ;;  %v1939_v19 = vmul.f32 %v3712_v34, %v1937_v54 }
 0x1f8   :  { %1901 = vrot.lane.b32.xlu1 %v1896_v13, %s2318_s4  ;;  %v1404_v58 = vsel %vm144_vm0, %v1400_v61, %v1402_v42  ;;  %v1410_v32 = vadd.f32 %v1402_v42, %v1348_v1  ;;  %v1969_v37 = vrot.slane %v1963_v16, 2  ;;  %v1385_v61 = vadd.f32 %v1379_v51, %v3708_v55 }
 0x1f9   :  { %1899 = vrot.lane.b32.xlu0 %v1895_v60, %s2318_s4  ;;  %v1409_v20 = vadd.f32 %v1404_v58, %v1347_v53  ;;  %v1427_v8 = vpop.permute.xlu1 %1426  ;;  %v1383_v60 = vadd.f32 %v1377_v46, %v3716_v21  ;;  %v1384_v15 = vadd.f32 %v1378_v24, %v3719_v63  ;;  %v1944_v18 = vrot.slane %v1938_v9, 2 }
 0x1fa   :  { %v1435_v4 = vadd.f32 %v1427_v8, %v1365_v12  ;;  %v1971_v45 = vrot.slane %v1965_v52, 2  ;;  %v1945_v10 = vrot.slane %v1939_v19, 2 }
 0x1fb   :  { %v1425_v30 = vpop.permute.xlu0 %1424 }
 0x1fc   :  { %1874 = vrot.lane.b32.xlu1 %v1870_v33, %s2318_s4  ;;  %v1428_v50 = vsel %vm144_vm0, %v1423_v56, %v1425_v30  ;;  %v1429_v13 = vsel %vm144_vm0, %v1425_v30, %v1427_v8  ;;  %v1940_v33 = vmul.f32 %v3728_v3, %v1937_v54 }
 0x1fd   :  { %1872 = vrot.lane.b32.xlu0 %v1869_v39, %s2318_s4  ;;  %v1433_v6 = vadd.f32 %v1428_v50, %v1363_v35  ;;  %v1434_v43 = vadd.f32 %v1429_v13, %v1364_v59  ;;  %v1450_v49 = vpop.permute.xlu1 %1449 }
 0x1fe   :  { %v1946_v40 = vrot.slane %v1940_v33, 2 }
 0x1ff   :  { %v1448_v29 = vpop.permute.xlu0 %1447 }
 0x200   :  { %1922 = vrot.lane.b32.xlu1 %v1919_v57, %s2319_s5  ;;  %v1453_v28 = vsel %vm144_vm0, %v1448_v29, %v1450_v49 }
 0x201   :  { %1876 = vrot.lane.b32.xlu0 %v1871_v48, %s2318_s4  ;;  %v1458_v7 = vadd.f32 %v1453_v28, %v1383_v60  ;;  %v1473_v47 = vpop.permute.xlu1 %1472  ;;  %s3821_s4 = sld [smem:[#allocation10]] }
 0x203   :  { %v1452_v21 = vpop.permute.xlu0 %1451 }
 0x204   :  { %1926 = vrot.lane.b32.xlu1 %v1921_v0, %s2319_s5  ;;  %v1454_v31 = vsel %vm144_vm0, %v1450_v49, %v1452_v21  ;;  %v1460_v11 = vadd.f32 %v1452_v21, %v1385_v61 }
 0x205   :  { %1924 = vrot.lane.b32.xlu0 %v1920_v25, %s2319_s5  ;;  %v1459_v38 = vadd.f32 %v1454_v31, %v1384_v15  ;;  %v1477_v39 = vpop.permute.xlu1 %1476 }
 0x206   :  { %v1485_v23 = vadd.f32 %v1477_v39, %v1410_v32 }
 0x207   :  { %v1475_v55 = vpop.permute.xlu0 %1474 }
 0x208   :  { %1974 = vrot.lane.b32.xlu1 %v1970_v22, %s2319_s5  ;;  %v1478_v63 = vsel %vm211_vm1, %v1473_v47, %v1475_v55  ;;  %v1479_v27 = vsel %vm211_vm1, %v1475_v55, %v1477_v39 }
 0x209   :  { %1972 = vrot.lane.b32.xlu0 %v1969_v37, %s2319_s5  ;;  %v1483_v1 = vadd.f32 %v1478_v63, %v3737_v36  ;;  %v1484_v14 = vadd.f32 %v1479_v27, %v1409_v20  ;;  %v1500_v56 = vpop.permute.xlu1 %1499 }
 0x20b   :  { %v1498_v3 = vpop.permute.xlu0 %1497 }
 0x20c   :  { %1947 = vrot.lane.b32.xlu1 %v1944_v18, %s2319_s5  ;;  %v1503_v34 = vsel %vm211_vm1, %v1498_v3, %v1500_v56 }
 0x20d   :  { %1976 = vrot.lane.b32.xlu0 %v1971_v45, %s2319_s5  ;;  %v1508_v53 = vadd.f32 %v1503_v34, %v1433_v6  ;;  %v1523_v42 = vpop.permute.xlu1 %1522 }
 0x20f   :  { %v1502_v17 = vpop.permute.xlu0 %1501 }
 0x210   :  { %1951 = vrot.lane.b32.xlu1 %v1946_v40, %s2319_s5  ;;  %v1504_v36 = vsel %vm211_vm1, %v1500_v56, %v1502_v17  ;;  %v1510_v41 = vadd.f32 %v1502_v17, %v1435_v4 }
 0x211   :  { %1949 = vrot.lane.b32.xlu0 %v1945_v10, %s2319_s5  ;;  %v1509_v5 = vadd.f32 %v1504_v36, %v1434_v43  ;;  %v1527_v58 = vpop.permute.xlu1 %1526  ;;  %s3823_s5 = sld [smem:[#allocation10 + $0x1]] }
 0x212   :  { %v1535_v20 = vadd.f32 %v1527_v58, %v1460_v11 }
 0x213   :  { %v1525_v32 = vpop.permute.xlu0 %1524 }
 0x214   :  { %v1528_v57 = vsel %vm211_vm1, %v1523_v42, %v1525_v32  ;;  %v1529_v48 = vsel %vm211_vm1, %v1525_v32, %v1527_v58 }
 0x215   :  { %v1533_v26 = vadd.f32 %v1528_v57, %v1458_v7  ;;  %v1534_v12 = vadd.f32 %v1529_v48, %v1459_v38  ;;  %v1550_v46 = vpop.permute.xlu1 %1549 }
 0x217   :  { %v1548_v2 = vpop.permute.xlu0 %1547 }
 0x218   :  { %v1553_v62 = vsel %vm278_vm2, %v1548_v2, %v1550_v46 }
 0x219   :  { %v1558_v8 = vadd.f32 %v1553_v62, %v1483_v1  ;;  %v1573_v35 = vpop.permute.xlu1 %1572 }
 0x21b   :  { %v1552_v59 = vpop.permute.xlu0 %1551 }
 0x21c   :  { %v1554_v30 = vsel %vm278_vm2, %v1550_v46, %v1552_v59  ;;  %v1560_v0 = vadd.f32 %v1552_v59, %v1485_v23 }
 0x21d   :  { %v1559_v25 = vadd.f32 %v1554_v30, %v1484_v14  ;;  %v1577_v4 = vpop.permute.xlu1 %1576 }
 0x21e   :  { %v1585_v13 = vadd.f32 %v1577_v4, %v1510_v41 }
 0x21f   :  { %v1575_v50 = vpop.permute.xlu0 %1574 }
 0x220   :  { %v1578_v44 = vsel %vm278_vm2, %v1573_v35, %v1575_v50  ;;  %v1579_v6 = vsel %vm278_vm2, %v1575_v50, %v1577_v4 }
 0x221   :  { %v1583_v43 = vadd.f32 %v1578_v44, %v1508_v53  ;;  %v1584_v16 = vadd.f32 %v1579_v6, %v1509_v5 }
 0x222   :  { %v1600_v54 = vpop.permute.xlu1 %1599 }
 0x223   :  { %v1598_v51 = vpop.permute.xlu0 %1597 }
 0x224   :  { %v1603_v49 = vsel %vm278_vm2, %v1598_v51, %v1600_v54 }
 0x225   :  { %v1608_v29 = vadd.f32 %v1603_v49, %v1533_v26 }
 0x228   :  { %v1623_v60 = vpop.permute.xlu1 %1622 }
 0x229   :  { %v1602_v24 = vpop.permute.xlu0 %1601 }
 0x22a   :  { %v1604_v28 = vsel %vm278_vm2, %v1600_v54, %v1602_v24  ;;  %v1610_v9 = vadd.f32 %v1602_v24, %v1535_v20 }
 0x22b   :  { %v1609_v7 = vadd.f32 %v1604_v28, %v1534_v12 }
 0x22d   :  { %v1627_v22 = vpop.permute.xlu1 %1626  ;;  %v1625_v37 = vpop.permute.xlu0 %1624 }
 0x22e   :  { %v1635_v52 = vadd.f32 %v1627_v22, %v1560_v0  ;;  %v1628_v61 = vsel %vm345_vm3, %v1623_v60, %v1625_v37  ;;  %v1629_v47 = vsel %vm345_vm3, %v1625_v37, %v1627_v22 }
 0x22f   :  { %v1633_v15 = vadd.f32 %v1628_v61, %v1558_v8  ;;  %v1634_v21 = vadd.f32 %v1629_v47, %v1559_v25 }
 0x231   :  { %v1650_v31 = vpop.permute.xlu1 %1649  ;;  %v1648_v11 = vpop.permute.xlu0 %1647 }
 0x232   :  { %v1653_v18 = vsel %vm345_vm3, %v1648_v11, %v1650_v31 }
 0x233   :  { %v1658_v38 = vadd.f32 %v1653_v18, %v1583_v43 }
 0x236   :  { %v1673_v45 = vpop.permute.xlu1 %1672 }
 0x237   :  { %v1652_v33 = vpop.permute.xlu0 %1651 }
 0x238   :  { %v1654_v19 = vsel %vm345_vm3, %v1650_v31, %v1652_v33  ;;  %v1660_v39 = vadd.f32 %v1652_v33, %v1585_v13 }
 0x239   :  { %v1659_v55 = vadd.f32 %v1654_v19, %v1584_v16 }
 0x23a   :  { %v1677_v23 = vpop.permute.xlu1 %1676 }
 0x23b   :  { %v1675_v63 = vpop.permute.xlu0 %1674  ;;  %v1685_v6 = vadd.f32 %v1677_v23, %v1610_v9 }
 0x23c   :  { %v1678_v27 = vsel %vm345_vm3, %v1673_v45, %v1675_v63  ;;  %v1679_v0 = vsel %vm345_vm3, %v1675_v63, %v1677_v23 }
 0x23d   :  { %v1683_v1 = vadd.f32 %v1678_v27, %v1608_v29  ;;  %v1684_v43 = vadd.f32 %v1679_v0, %v1609_v7 }
 0x23e   :  { %v1700_v14 = vpop.permute.xlu1 %1699 }
 0x23f   :  { %v1698_v40 = vpop.permute.xlu0 %1697 }
 0x240   :  { %v1703_v25 = vsel %vm412_vm4, %v1698_v40, %v1700_v14 }
 0x241   :  { %v1708_v16 = vadd.f32 %v1703_v25, %v1633_v15 }
 0x242   :  { %v1748_v10 = vpop.permute.xlu1 %1747 }
 0x243   :  { %v1702_v56 = vpop.permute.xlu0 %1701 }
 0x244   :  { %v1704_v13 = vsel %vm412_vm4, %v1700_v14, %v1702_v56  ;;  %v1710_v51 = vadd.f32 %v1702_v56, %v1635_v52 }
 0x245   :  { %v1709_v24 = vadd.f32 %v1704_v13, %v1634_v21 }
 0x246   :  { %v1752_v3 = vpop.permute.xlu1 %1751 }
 0x247   :  { %v1750_v34 = vpop.permute.xlu0 %1749  ;;  %v1760_v28 = vadd.f32 %v1752_v3, %v1685_v6 }
 0x248   :  { %v1753_v44 = vsel %vm412_vm4, %v1748_v10, %v1750_v34  ;;  %v1754_v54 = vsel %vm412_vm4, %v1750_v34, %v1752_v3 }
 0x249   :  { %v1758_v22 = vadd.f32 %v1753_v44, %v1683_v1  ;;  %v1759_v31 = vadd.f32 %v1754_v54, %v1684_v43 }
 0x24a   :  { %v1725_v53 = vpop.permute.xlu1 %1724 }
 0x24b   :  { %v1723_v42 = vpop.permute.xlu0 %1722 }
 0x24c   :  { %v1728_v49 = vsel %vm412_vm4, %v1723_v42, %v1725_v53 }
 0x24d   :  { %v1733_v15 = vadd.f32 %v1728_v49, %v1658_v38 }
 0x24e   :  { %v1773_v17 = vpop.permute.xlu1 %1772 }
 0x24f   :  { %v1727_v36 = vpop.permute.xlu0 %1726 }
 0x250   :  { %v1729_v37 = vsel %vm412_vm4, %v1725_v53, %v1727_v36  ;;  %v1735_v21 = vadd.f32 %v1727_v36, %v1660_v39 }
 0x251   :  { %v1734_v33 = vadd.f32 %v1729_v37, %v1659_v55 }
 0x252   :  { %v1777_v41 = vpop.permute.xlu1 %1776 }
 0x253   :  { %v1775_v5 = vpop.permute.xlu0 %1774  ;;  %v1785_v19 = vadd.f32 %v1777_v41, %v1710_v51 }
 0x254   :  { %v1778_v29 = vsel %vm479_vm5, %v1773_v17, %v1775_v5  ;;  %v1779_v9 = vsel %vm479_vm5, %v1775_v5, %v1777_v41 }
 0x255   :  { %v1783_v11 = vadd.f32 %v1778_v29, %v1708_v16  ;;  %v1784_v63 = vadd.f32 %v1779_v9, %v1709_v24  ;;  %v2008_v24 = vstv %s3823_s5 }
 0x256   :  { %v1825_v58 = vpop.permute.xlu1 %1824 }
 0x257   :  { %v1823_v32 = vpop.permute.xlu0 %1822 }
 0x258   :  { %v1828_v60 = vsel %vm479_vm5, %v1823_v32, %v1825_v58 }
 0x259   :  { %v1833_v18 = vadd.f32 %v1828_v60, %v1758_v22  ;;  %v1990_v60 = vstv %s3821_s4 }
 0x25a   :  { %v1798_v20 = vpop.permute.xlu1 %1797 }
 0x25b   :  { %v1827_v57 = vpop.permute.xlu0 %1826 }
 0x25c   :  { %v1829_v45 = vsel %vm479_vm5, %v1825_v58, %v1827_v57  ;;  %v1835_v27 = vadd.f32 %v1827_v57, %v1760_v28 }
 0x25d   :  { %v1834_v56 = vadd.f32 %v1829_v45, %v1759_v31 }
 0x25e   :  { %v1802_v48 = vpop.permute.xlu1 %1801 }
 0x25f   :  { %v1800_v26 = vpop.permute.xlu0 %1799  ;;  %v1810_v53 = vadd.f32 %v1802_v48, %v1735_v21 }
 0x260   :  { %v1803_v55 = vsel %vm479_vm5, %v1798_v20, %v1800_v26  ;;  %v1804_v17 = vsel %vm479_vm5, %v1800_v26, %v1802_v48 }
 0x261   :  { %v1809_v48 = vadd.f32 %v1804_v17, %v1734_v33 }
 0x262   :  { %v1850_v12 = vpop.permute.xlu1 %1849 }
 0x263   :  { %v1848_v46 = vpop.permute.xlu0 %1847 }
 0x264   :  { %v1853_v7 = vsel %vm546_vm6, %v1848_v46, %v1850_v12 }
 0x265   :  { %v1858_v1 = vadd.f32 %v1853_v7, %v1783_v11 }
 0x266   :  { %v1898_v2 = vpop.permute.xlu1 %1897 }
 0x267   :  { %v1852_v62 = vpop.permute.xlu0 %1851 }
 0x268   :  { %v1854_v3 = vsel %vm546_vm6, %v1850_v12, %v1852_v62  ;;  %v1860_v36 = vadd.f32 %v1852_v62, %v1785_v19 }
 0x269   :  { %v1859_v58 = vadd.f32 %v1854_v3, %v1784_v63 }
 0x26a   :  { %v1902_v8 = vpop.permute.xlu1 %1901 }
 0x26b   :  { %v1900_v35 = vpop.permute.xlu0 %1899  ;;  %v1910_v41 = vadd.f32 %v1902_v8, %v1835_v27 }
 0x26c   :  { %v1903_v52 = vsel %vm546_vm6, %v1898_v2, %v1900_v35  ;;  %v1904_v38 = vsel %vm546_vm6, %v1900_v35, %v1902_v8 }
 0x26d   :  { %v1908_v14 = vadd.f32 %v1903_v52, %v1833_v18  ;;  %v1909_v32 = vadd.f32 %v1904_v38, %v1834_v56 }
 0x26e   :  { %v1875_v59 = vpop.permute.xlu1 %1874 }
 0x26f   :  { %v1873_v30 = vpop.permute.xlu0 %1872 }
 0x270   :  { %v1878_v57 = vsel %vm546_vm6, %v1873_v30, %v1875_v59 }
 0x272   :  { %v1923_v4 = vpop.permute.xlu1 %1922 }
 0x273   :  { %v3803_v50 = vpop.permute.xlu0 %1876 }
 0x274   :  { %v1879_v20 = vsel %vm546_vm6, %v1875_v59, %v3803_v50  ;;  %v1885_v8 = vadd.f32 %v3803_v50, %v1810_v53 }
 0x275   :  { %v1884_v44 = vadd.f32 %v1879_v20, %v1809_v48 }
 0x276   :  { %v1927_v61 = vpop.permute.xlu1 %1926 }
 0x277   :  { %v1925_v47 = vpop.permute.xlu0 %1924  ;;  %v1935_v35 = vadd.f32 %v1927_v61, %v1860_v36 }
 0x278   :  { %v1928_v23 = vsel %vm613_vm7, %v1923_v4, %v1925_v47  ;;  %v1929_v5 = vsel %vm613_vm7, %v1925_v47, %v1927_v61  ;;  %v1808_v4 = vadd.f32 %v1803_v55, %v1733_v15 }
 0x279   :  { %v1933_v39 = vadd.f32 %v1928_v23, %v1858_v1  ;;  %v1934_v26 = vadd.f32 %v1929_v5, %v1859_v58 }
 0x27a   :  { %v1975_v40 = vpop.permute.xlu1 %1974  ;;  %v1883_v30 = vadd.f32 %v1878_v57, %v1808_v4 }
 0x27b   :  { %v1973_v10 = vpop.permute.xlu0 %1972 }
 0x27c   :  { %v1978_v34 = vsel %vm613_vm7, %v1973_v10, %v1975_v40 }
 0x27d   :  { %v1983_v42 = vadd.f32 %v1978_v34, %v1908_v14 }
 0x27e   :  { %v1948_v46 = vpop.permute.xlu1 %1947 }
 0x27f   :  { %v2001_v12 = vsub.f32 %v1983_v42, %v1933_v39  ;;  %v1977_v2 = vpop.permute.xlu0 %1976 }
 0x280   :  { %v1979_v0 = vsel %vm613_vm7, %v1975_v40, %v1977_v2  ;;  %v1985_v25 = vadd.f32 %v1977_v2, %v1910_v41 }
 0x281   :  { %v1984_v62 = vadd.f32 %v1979_v0, %v1909_v32 }
 0x282   :  { %v2003_v13 = vsub.f32 %v1985_v25, %v1935_v35  ;;  %v1952_v43 = vpop.permute.xlu1 %1951 }
 0x283   :  { %v2002_v6 = vsub.f32 %v1984_v62, %v1934_v26  ;;  %v1950_v16 = vpop.permute.xlu0 %1949  ;;  %v1960_v54 = vadd.f32 %v1952_v43, %v1885_v8 }
 0x284   :  { %v1953_v59 = vsel %vm613_vm7, %v1948_v46, %v1950_v16  ;;  %v1954_v51 = vsel %vm613_vm7, %v1950_v16, %v1952_v43 }
 0x285   :  { %v1958_v49 = vadd.f32 %v1953_v59, %v1883_v30  ;;  %v1959_v29 = vadd.f32 %v1954_v51, %v1884_v44  ;;  %v1988_v28 = vsub.f32 %v1935_v35, %v1960_v54  ;;  %v2006_v22 = vsub.f32 %v2003_v13, %v1960_v54 }
 0x287   :  { %v1986_v37 = vsub.f32 %v1933_v39, %v1958_v49  ;;  %v1987_v50 = vsub.f32 %v1934_v26, %v1959_v29  ;;  %v2004_v61 = vsub.f32 %v2001_v12, %v1958_v49  ;;  %v2005_v47 = vsub.f32 %v2002_v6, %v1959_v29 }
 0x288   :  { %v1993_v31 = vadd.f32 %v1990_v60, %v1988_v28  ;;  %v2011_v9 = vadd.f32 %v2008_v24, %v2006_v22 }
 0x289   :  { %v1991_v7 = vadd.f32 %v1990_v60, %v1986_v37  ;;  %v1992_v52 = vadd.f32 %v1990_v60, %v1987_v50  ;;  %v2009_v15 = vadd.f32 %v2008_v24, %v2004_v61  ;;  %v2010_v11 = vadd.f32 %v2008_v24, %v2005_v47 }
 0x28a   :  { %2000 = vst.msk [vmem:[#allocation14 + $0x8] sm:$0xf] %vm1999_vm8, %v1993_v31  ;;  %2017 = vst.msk [vmem:[#allocation15 + $0x8] sm:$0xf] %vm1999_vm8, %v2011_v9 }
 0x28b   :  { %v1996_v18 = vcombine.low %v1991_v7, %v1992_v52  ;;  %v2014_v45 = vcombine.low %v2009_v15, %v2010_v11 }
 0x28d   :  { %1998 = vst [vmem:[#allocation14] sm:$0xff] %v1996_v18  ;;  %2016 = vst [vmem:[#allocation15] sm:$0xff] %v2014_v45 }
 0x28e   :  { %2259 = shalt.err (!%p2256_p10)
}
 0x28f   :  { %s2260_s18 = scalar_lea.hbm %s3868_s6, 192 }
 0x290   :  { %p2261_p11 = scmp.ne.s32.totalorder %s3868_s6, %s2260_s18  ;;  %p2264_p12 = scmp.lt.u32.totalorder %s2260_s18, %s3868_s6 }
 0x292   :  { %p2266_p13 = pnand %p2264_p12, %p2261_p11 }
 0x294   :  { %2269 = shalt.err (!%p2266_p13)
}
 0x295   :  { %2027 = dma.vmem_to_hbm [thread:$0]  %s2025_s2, 192, %s3868_s6, [#allocation4]  }
 0x296   :  { %s2270_s28 = scalar_lea.vmem %s2035_s13, 192  ;;  %p2275_p1 = scmp.lt.s32.totalorder %s2035_s13, %s2035_s13 }
 0x297   :  { %p2271_p0 = scmp.ne.s32.totalorder %s2035_s13, %s2270_s28  ;;  %p2276_p2 = scmp.lt.s32.totalorder %s2270_s28, %s2270_s28 }
 0x299   :  { %p2277_p3 = por %p2276_p2, %p2275_p1 }
 0x29b   :  { %p2278_p4 = pnand %p2277_p3, %p2271_p0 }
 0x29d   :  { %2281 = shalt.err (!%p2278_p4)
}
 0x29e   :  { %s2282_s3 = scalar_lea.hbm %s3869_s7, 192 }
 0x29f   :  { %p2283_p5 = scmp.ne.s32.totalorder %s3869_s7, %s2282_s3  ;;  %p2286_p6 = scmp.lt.u32.totalorder %s2282_s3, %s3869_s7 }
 0x2a1   :  { %p2288_p7 = pnand %p2286_p6, %p2283_p5 }
 0x2a3   :  { %2291 = shalt.err (!%p2288_p7)
}
 0x2a4   :  { %2037 = dma.vmem_to_hbm [thread:$0]  %s2035_s13, 192, %s3869_s7, [#allocation16]  }
 0x2a5   :  { %2302 = dma.done.wait [#allocation4], 192  }
 0x2a6   :  { %2303 = vsyncadd [#allocation4], 4294967104 }
 0x2a7   :  { %2304 = dma.done.wait [#allocation16], 192  }
 0x2a8   :  { %2305 = vsyncadd [#allocation16], 4294967104 }
 0x2a9   :  { %2044 = vsyncpa [#allocation3], 1 }
 0x2aa   :  { %2045 = vsyncpa [#allocation13], 1 }
 0x2ab   :  { %2046 = vsyncpa [#allocation4], 1 }
 0x2ac   :  { %2047 = vsyncpa [#allocation16], 1 }
 0x2ad   :  { %2048 = vsyncpa [#allocation5], 1 }
 0x2ae   :  { %2049 = vsyncpa [#allocation6], 1 }
 0x2af   :  { %2050 = vsyncpa [#allocation9], 1 }

</bundles_post_ra>
